<compile_context>
chip_gen: v5e
topology: v5e:2x2
jax: 0.10.0
libtpu: 0.0.40
codegen_flags: <defaults>
</compile_context>

<pallas_src>
import jax
import jax.numpy as jnp
from jax.experimental import pallas as pl
from jax.experimental.pallas import tpu as pltpu


# ------------------------------- fused kernel ------------------------------- #

def _down_fused_kernel(xr_ref, xi_ref, w1_ref, b1_ref, w2_ref, b2_ref,
                       o_ref, pad1_ref, pad2_ref):
    # xr_ref/xi_ref: (1, Hp, 2, Wq, 2*Cin)   Wq = Wp + 2 (wrapper zero-padded W by 4)
    # w1_ref: (9*2*Cin, C1) bf16   b1_ref: (1, C1) f32
    # w2_ref: (9, C1, C1)   bf16   b2_ref: (1, C1) f32        C1 = 2*Cout
    # o_ref : (1, Hp, Wp, C1) f32
    # pad1_ref: ((Hp+2)*Wq + 2, 2*Cin) f32   flattened zero-halo conv1 input
    # pad2_ref: ((Hp+2)*Wq + 2, C1)   bf16   flattened zero-halo conv2 input
    _, Hp, _, Wq, Cin2 = xr_ref.shape
    Cin = Cin2 // 2
    Wp = Wq - 2
    C1 = o_ref.shape[-1]
    M = Hp * Wq                       # flattened conv rows (incl. 2 junk cols per row)
    lead = Wp + 3                     # flat offset of interior (1,1); also head-halo rows
    tail = (Hp + 1) * Wq + 1          # first flat row past the interior store

    # ---- ComplexMaxPool2d(2): keep the complex value of max |z|^2 per 2x2 window
    # (strict '>' keeps the first max; candidate order (dy,dx)=(0,0),(0,1),(1,0),(1,1)).
    best_r = best_i = best_m = None
    for dy in range(2):
        r_pl = xr_ref[0, :, dy, :, :]                     # (Hp, Wq, 2*Cin)
        i_pl = xi_ref[0, :, dy, :, :]
        for dx in range(2):
            cr = r_pl[:, :, dx * Cin:(dx + 1) * Cin]      # (Hp, Wq, Cin)
            ci = i_pl[:, :, dx * Cin:(dx + 1) * Cin]
            cm = cr * cr + ci * ci
            if best_r is None:
                best_r, best_i, best_m = cr, ci, cm
            else:
                sel = cm > best_m
                best_r = jnp.where(sel, cr, best_r)
                best_i = jnp.where(sel, ci, best_i)
                best_m = jnp.where(sel, cm, best_m)

    # ---- conv1 input: zero only the two halo stripes (rest is rewritten every step)
    pad1_ref[0:lead, :] = jnp.zeros((lead, Cin2), pad1_ref.dtype)
    pad1_ref[tail:tail + Wp + 3, :] = jnp.zeros((Wp + 3, Cin2), pad1_ref.dtype)
    # Pooled slab stores contiguously at the interior offset; its 2 zero junk columns per
    # row land exactly on the halo columns.  Two channel-slice stores (no lane concat).
    pad1_ref[lead:lead + M, 0:Cin] = best_r.reshape(M, Cin)
    pad1_ref[lead:lead + M, Cin:Cin2] = best_i.reshape(M, Cin)

    # ---- ComplexConv2d #1 (3x3, pad 1) + bias + CReLU: ONE im2col matmul (K = 9*2*Cin)
    taps = []
    for kh in range(3):
        for kw in range(3):
            off = kh * Wq + kw
            taps.append(pad1_ref[off:off + M, :])         # contiguous (M, 2*Cin) window
    lhs1 = jnp.concatenate(taps, axis=-1).astype(jnp.bfloat16)   # (M, 9*2*Cin)
    acc1 = jnp.dot(lhs1, w1_ref[...], preferred_element_type=jnp.float32)
    act1 = jnp.maximum(acc1 + b1_ref[...], 0.0)                  # (M, C1)

    # Junk columns (j >= Wp) must be zeroed: they land on pad2's halo columns.
    col = jax.lax.broadcasted_iota(jnp.int32, (M, 1), 0) % Wq
    act1 = jnp.where(col < Wp, act1, 0.0)

    # ---- conv2 input (same flat layout, bf16)
    pad2_ref[0:lead, :] = jnp.zeros((lead, C1), pad2_ref.dtype)
    pad2_ref[tail:tail + Wp + 3, :] = jnp.zeros((Wp + 3, C1), pad2_ref.dtype)
    pad2_ref[lead:lead + M, :] = act1.astype(pad2_ref.dtype)

    # ---- ComplexConv2d #2 (3x3, pad 1) + bias + CReLU: 9 contiguous-window matmuls (K=C1)
    acc2 = None
    for kh in range(3):
        for kw in range(3):
            off = kh * Wq + kw
            part = jnp.dot(pad2_ref[off:off + M, :], w2_ref[kh * 3 + kw],
                           preferred_element_type=jnp.float32)
            acc2 = part if acc2 is None else acc2 + part
    act2 = jnp.maximum(acc2 + b2_ref[...], 0.0)                  # (M, C1)

    # ---- strip junk columns once; Hp lane-dense (Wp, C1=128) row stores
    for i in range(Hp):
        o_ref[0, i] = act2[i * Wq:i * Wq + Wp, :]


# --------------------------- parameters / forward --------------------------- #

def make_complex_conv_params(key, cin, cout, k=3):
    """ComplexConv2d = two real Conv2d (conv_r, conv_i); PyTorch-like uniform init."""
    kr, ki, kbr, kbi = jax.random.split(key, 4)
    bound = 1.0 / float(jnp.sqrt(cin * k * k))
    wr = jax.random.uniform(kr, (k, k, cin, cout), jnp.float32, -bound, bound)
    wi = jax.random.uniform(ki, (k, k, cin, cout), jnp.float32, -bound, bound)
    br = jax.random.uniform(kbr, (cout,), jnp.float32, -bound, bound)
    bi = jax.random.uniform(kbi, (cout,), jnp.float32, -bound, bound)
    return wr, wi, br, bi


def stack_complex_conv(wr, wi, br, bi):
    """Real conv on [real||imag]-stacked channels equivalent to the complex conv."""
    top = jnp.concatenate([wr, wi], axis=-1)      # real-in  -> [real-out | imag-out]
    bot = jnp.concatenate([-wi, wr], axis=-1)     # imag-in  -> [real-out | imag-out]
    W = jnp.concatenate([top, bot], axis=2)       # (3, 3, 2*Cin, 2*Cout)
    b = jnp.concatenate([br, bi], axis=0)         # (2*Cout,)
    return W, b


def down_init(key, in_channels, out_channels):
    k1, k2 = jax.random.split(key)
    w1r, w1i, b1r, b1i = make_complex_conv_params(k1, in_channels, out_channels)
    w2r, w2i, b2r, b2i = make_complex_conv_params(k2, out_channels, out_channels)
    return dict(w1r=w1r, w1i=w1i, b1r=b1r, b1i=b1i,
                w2r=w2r, w2i=w2i, b2r=b2r, b2i=b2i)


def down_forward(params, xr, xi):
    """xr, xi: (N, C, H, W) NCHW (PyTorch layout). Returns (yr, yi) in NCHW."""
    N, Cin, H, W = xr.shape
    assert H % 2 == 0 and W % 2 == 0, "ComplexMaxPool2d(2) requires even H and W"
    Hp, Wp = H // 2, W // 2
    Wq = Wp + 2
    Cout = params["w1r"].shape[-1]
    Cin2, C1 = 2 * Cin, 2 * Cout

    # NCHW -> NHWC with 4 zero columns appended (fuses with the transpose; makes the
    # pooled width Wp+2 with exactly-zero junk columns so the kernel's padded-scratch
    # stores are contiguous).
    # TODO(synk): keep the surrounding network NHWC end-to-end to drop these transposes.
    def to_view(x):
        x = jnp.transpose(x, (0, 2, 3, 1))
        x = jnp.pad(x, ((0, 0), (0, 0), (0, 4), (0, 0)))
        return x.reshape(N, Hp, 2, Wq, Cin2)   # free reshape exposing the 2x2 window

    xr5, xi5 = to_view(xr), to_view(xi)

    w1, b1 = stack_complex_conv(params["w1r"], params["w1i"], params["b1r"], params["b1i"])
    w2, b2 = stack_complex_conv(params["w2r"], params["w2i"], params["b2r"], params["b2i"])
    w1_flat = w1.reshape(9 * Cin2, C1).astype(jnp.bfloat16)   # im2col RHS, K = 9*2*Cin
    w2_taps = w2.reshape(9, C1, C1).astype(jnp.bfloat16)
    b1 = b1.reshape(1, C1)
    b2 = b2.reshape(1, C1)

    R = (Hp + 2) * Wq + 2   # flat padded rows (+2 absorbs the last tap's window overrun)

    out = pl.pallas_call(
        _down_fused_kernel,
        out_shape=jax.ShapeDtypeStruct((N, Hp, Wp, C1), jnp.float32),
        grid=(N,),
        in_specs=[
            pl.BlockSpec((1, Hp, 2, Wq, Cin2), lambda n: (n, 0, 0, 0, 0)),
            pl.BlockSpec((1, Hp, 2, Wq, Cin2), lambda n: (n, 0, 0, 0, 0)),
            pl.BlockSpec((9 * Cin2, C1), lambda n: (0, 0)),
            pl.BlockSpec((1, C1), lambda n: (0, 0)),
            pl.BlockSpec((9, C1, C1), lambda n: (0, 0, 0)),
            pl.BlockSpec((1, C1), lambda n: (0, 0)),
        ],
        out_specs=pl.BlockSpec((1, Hp, Wp, C1), lambda n: (n, 0, 0, 0)),
        scratch_shapes=[
            pltpu.VMEM((R, Cin2), jnp.float32),     # pooled conv1 input, flat, zero halo
            pltpu.VMEM((R, C1), jnp.bfloat16),      # conv1 activation, flat, zero halo
        ],
        compiler_params=pltpu.CompilerParams(dimension_semantics=("parallel",)),
    )(xr5, xi5, w1_flat, b1, w2_taps, b2)

    yr = jnp.transpose(out[..., :Cout], (0, 3, 1, 2))
    yi = jnp.transpose(out[..., Cout:], (0, 3, 1, 2))
    return yr, yi


# ------------------------------ pure-JAX reference -------------------------- #

def _ref_complex_pool(xr, xi):  # NCHW
    N, C, H, W = xr.shape
    Hp, Wp = H // 2, W // 2

    def cand(x):
        x = x.reshape(N, C, Hp, 2, Wp, 2)
        return jnp.transpose(x, (0, 3, 5, 1, 2, 4)).reshape(N, 4, C, Hp, Wp)

    xr4, xi4 = cand(xr), cand(xi)
    idx = jnp.argmax(xr4 * xr4 + xi4 * xi4, axis=1)
    or_ = jnp.take_along_axis(xr4, idx[:, None], axis=1)[:, 0]
    oi_ = jnp.take_along_axis(xi4, idx[:, None], axis=1)[:, 0]
    return or_, oi_


def _ref_complex_conv_relu(xr, xi, wr, wi, br, bi):  # NCHW in, HWIO weights
    dn = ("NCHW", "HWIO", "NCHW")
    conv = lambda x, w: jax.lax.conv_general_dilated(
        x, w, (1, 1), ((1, 1), (1, 1)), dimension_numbers=dn,
        precision=jax.lax.Precision.HIGHEST)
    yr = conv(xr, wr) - conv(xi, wi) + br[None, :, None, None]
    yi = conv(xr, wi) + conv(xi, wr) + bi[None, :, None, None]
    return jnp.maximum(yr, 0.0), jnp.maximum(yi, 0.0)


def ref_down(params, xr, xi):
    pr, pi = _ref_complex_pool(xr, xi)
    hr, hi = _ref_complex_conv_relu(pr, pi, params["w1r"], params["w1i"],
                                    params["b1r"], params["b1i"])
    hr, hi = _ref_complex_conv_relu(hr, hi, params["w2r"], params["w2i"],
                                    params["b2r"], params["b2i"])
    return hr, hi


# ----------------------------------- main ----------------------------------- #

if __name__ == "__main__":
    key = jax.random.PRNGKey(0)
    kx, kp = jax.random.split(key)
    N, Cin, H, W = 2, 4, 16, 16
    Cout = 64   # stacked complex channels = 128 -> lane-dense stores / MXU N dim

    kxr, kxi = jax.random.split(kx)
    xr = jax.random.normal(kxr, (N, Cin, H, W), jnp.float32)
    xi = jax.random.normal(kxi, (N, Cin, H, W), jnp.float32)
    params = down_init(kp, Cin, Cout)

    fwd = jax.jit(down_forward)
    yr, yi = fwd(params, xr, xi)
    jax.block_until_ready((yr, yi))

    assert yr.shape == (N, Cout, H // 2, W // 2) and yi.shape == yr.shape

    # Reference uses HIGHEST-precision convs; kernel uses the bf16 single-pass MXU path,
    # so tolerance accounts for bf16 rounding across two stacked 3x3 convs.
    ryr, ryi = ref_down(params, xr, xi)
    assert jnp.allclose(yr, ryr, atol=5e-2, rtol=5e-2), "real part mismatch"
    assert jnp.allclose(yi, ryi, atol=5e-2, rtol=5e-2), "imag part mismatch"

    print("KERNEL_OK")
</pallas_src>

<mosaic_0001>
module attributes {stable_mosaic.version = 11 : i64} {
  func.func @_down_fused_kernel(%arg0: i32, %arg1: memref<1x8x2x10x8xf32, #tpu.memory_space<vmem>>, %arg2: memref<1x8x2x10x8xf32, #tpu.memory_space<vmem>>, %arg3: memref<72x128xbf16, #tpu.memory_space<vmem>>, %arg4: memref<1x128xf32, #tpu.memory_space<vmem>>, %arg5: memref<9x128x128xbf16, #tpu.memory_space<vmem>>, %arg6: memref<1x128xf32, #tpu.memory_space<vmem>>, %arg7: memref<1x8x8x128xf32, #tpu.memory_space<vmem>>, %arg8: memref<102x8xf32, #tpu.memory_space<vmem>>, %arg9: memref<102x128xbf16, #tpu.memory_space<vmem>>) attributes {dimension_semantics = [#tpu.dimension_semantics<parallel>], iteration_bounds = array<i64: 2>, scalar_prefetch = 0 : i64, scratch_operands = 2 : i64, tpu.core_type = #tpu.core_type<tc>, window_params = [{transform_indices = @transform_0, window_bounds = array<i64: 1, 8, 2, 10, 8>}, {transform_indices = @transform_1, window_bounds = array<i64: 1, 8, 2, 10, 8>}, {pipeline_mode = #tpu.pipeline_mode<synchronous>, transform_indices = @transform_2, window_bounds = array<i64: 72, 128>}, {pipeline_mode = #tpu.pipeline_mode<synchronous>, transform_indices = @transform_3, window_bounds = array<i64: 1, 128>}, {pipeline_mode = #tpu.pipeline_mode<synchronous>, transform_indices = @transform_4, window_bounds = array<i64: 9, 128, 128>}, {pipeline_mode = #tpu.pipeline_mode<synchronous>, transform_indices = @transform_5, window_bounds = array<i64: 1, 128>}, {transform_indices = @transform_6, window_bounds = array<i64: 1, 8, 8, 128>}]} {
    %c0 = arith.constant 0 : index
    %c0_0 = arith.constant 0 : index
    %c0_1 = arith.constant 0 : index
    %c0_2 = arith.constant 0 : index
    %c0_3 = arith.constant 0 : index
    %0 = vector.load %arg1[%c0, %c0_0, %c0_1, %c0_2, %c0_3] : memref<1x8x2x10x8xf32, #tpu.memory_space<vmem>>, vector<1x8x1x10x8xf32>
    %1 = vector.shape_cast %0 : vector<1x8x1x10x8xf32> to vector<8x10x8xf32>
    %c0_4 = arith.constant 0 : index
    %c0_5 = arith.constant 0 : index
    %c0_6 = arith.constant 0 : index
    %c0_7 = arith.constant 0 : index
    %c0_8 = arith.constant 0 : index
    %2 = vector.load %arg2[%c0_4, %c0_5, %c0_6, %c0_7, %c0_8] : memref<1x8x2x10x8xf32, #tpu.memory_space<vmem>>, vector<1x8x1x10x8xf32>
    %3 = vector.shape_cast %2 : vector<1x8x1x10x8xf32> to vector<8x10x8xf32>
    %4 = vector.extract_strided_slice %1 {offsets = [0, 0, 0], sizes = [8, 10, 4], strides = [1, 1, 1]} : vector<8x10x8xf32> to vector<8x10x4xf32>
    %5 = vector.extract_strided_slice %3 {offsets = [0, 0, 0], sizes = [8, 10, 4], strides = [1, 1, 1]} : vector<8x10x8xf32> to vector<8x10x4xf32>
    %6 = arith.mulf %4, %4 : vector<8x10x4xf32>
    %7 = arith.mulf %5, %5 : vector<8x10x4xf32>
    %8 = arith.addf %6, %7 : vector<8x10x4xf32>
    %9 = vector.extract_strided_slice %1 {offsets = [0, 0, 4], sizes = [8, 10, 4], strides = [1, 1, 1]} : vector<8x10x8xf32> to vector<8x10x4xf32>
    %10 = vector.extract_strided_slice %3 {offsets = [0, 0, 4], sizes = [8, 10, 4], strides = [1, 1, 1]} : vector<8x10x8xf32> to vector<8x10x4xf32>
    %11 = arith.mulf %9, %9 : vector<8x10x4xf32>
    %12 = arith.mulf %10, %10 : vector<8x10x4xf32>
    %13 = arith.addf %11, %12 : vector<8x10x4xf32>
    %14 = arith.cmpf ogt, %13, %8 : vector<8x10x4xf32>
    %15 = arith.select %14, %9, %4 : vector<8x10x4xi1>, vector<8x10x4xf32>
    %16 = arith.select %14, %10, %5 : vector<8x10x4xi1>, vector<8x10x4xf32>
    %17 = arith.select %14, %13, %8 : vector<8x10x4xi1>, vector<8x10x4xf32>
    %c0_9 = arith.constant 0 : index
    %c0_10 = arith.constant 0 : index
    %c1 = arith.constant 1 : index
    %c0_11 = arith.constant 0 : index
    %c0_12 = arith.constant 0 : index
    %18 = vector.load %arg1[%c0_9, %c0_10, %c1, %c0_11, %c0_12] : memref<1x8x2x10x8xf32, #tpu.memory_space<vmem>>, vector<1x8x1x10x8xf32>
    %19 = vector.shape_cast %18 : vector<1x8x1x10x8xf32> to vector<8x10x8xf32>
    %c0_13 = arith.constant 0 : index
    %c0_14 = arith.constant 0 : index
    %c1_15 = arith.constant 1 : index
    %c0_16 = arith.constant 0 : index
    %c0_17 = arith.constant 0 : index
    %20 = vector.load %arg2[%c0_13, %c0_14, %c1_15, %c0_16, %c0_17] : memref<1x8x2x10x8xf32, #tpu.memory_space<vmem>>, vector<1x8x1x10x8xf32>
    %21 = vector.shape_cast %20 : vector<1x8x1x10x8xf32> to vector<8x10x8xf32>
    %22 = vector.extract_strided_slice %19 {offsets = [0, 0, 0], sizes = [8, 10, 4], strides = [1, 1, 1]} : vector<8x10x8xf32> to vector<8x10x4xf32>
    %23 = vector.extract_strided_slice %21 {offsets = [0, 0, 0], sizes = [8, 10, 4], strides = [1, 1, 1]} : vector<8x10x8xf32> to vector<8x10x4xf32>
    %24 = arith.mulf %22, %22 : vector<8x10x4xf32>
    %25 = arith.mulf %23, %23 : vector<8x10x4xf32>
    %26 = arith.addf %24, %25 : vector<8x10x4xf32>
    %27 = arith.cmpf ogt, %26, %17 : vector<8x10x4xf32>
    %28 = arith.select %27, %22, %15 : vector<8x10x4xi1>, vector<8x10x4xf32>
    %29 = arith.select %27, %23, %16 : vector<8x10x4xi1>, vector<8x10x4xf32>
    %30 = arith.select %27, %26, %17 : vector<8x10x4xi1>, vector<8x10x4xf32>
    %31 = vector.extract_strided_slice %19 {offsets = [0, 0, 4], sizes = [8, 10, 4], strides = [1, 1, 1]} : vector<8x10x8xf32> to vector<8x10x4xf32>
    %32 = vector.extract_strided_slice %21 {offsets = [0, 0, 4], sizes = [8, 10, 4], strides = [1, 1, 1]} : vector<8x10x8xf32> to vector<8x10x4xf32>
    %33 = arith.mulf %31, %31 : vector<8x10x4xf32>
    %34 = arith.mulf %32, %32 : vector<8x10x4xf32>
    %35 = arith.addf %33, %34 : vector<8x10x4xf32>
    %36 = arith.cmpf ogt, %35, %30 : vector<8x10x4xf32>
    %37 = arith.select %36, %31, %28 : vector<8x10x4xi1>, vector<8x10x4xf32>
    %38 = arith.select %36, %32, %29 : vector<8x10x4xi1>, vector<8x10x4xf32>
    %cst = arith.constant 0.000000e+00 : f32
    %39 = vector.broadcast %cst : f32 to vector<11x8xf32>
    %c0_18 = arith.constant 0 : index
    %c0_19 = arith.constant 0 : index
    %40 = vector.load %arg8[%c0_18, %c0_19] : memref<102x8xf32, #tpu.memory_space<vmem>>, vector<11x8xf32>
    tpu.vector_store %arg8[%c0_18, %c0_19], %39 {strides = array<i32>} : memref<102x8xf32, #tpu.memory_space<vmem>>, vector<11x8xf32>,
    %cst_20 = arith.constant 0.000000e+00 : f32
    %41 = vector.broadcast %cst_20 : f32 to vector<11x8xf32>
    %c91 = arith.constant 91 : index
    %c0_21 = arith.constant 0 : index
    %42 = vector.load %arg8[%c91, %c0_21] : memref<102x8xf32, #tpu.memory_space<vmem>>, vector<11x8xf32>
    tpu.vector_store %arg8[%c91, %c0_21], %41 {strides = array<i32>} : memref<102x8xf32, #tpu.memory_space<vmem>>, vector<11x8xf32>,
    %43 = vector.shape_cast %37 : vector<8x10x4xf32> to vector<80x4xf32>
    %c11 = arith.constant 11 : index
    %c0_22 = arith.constant 0 : index
    %44 = vector.load %arg8[%c11, %c0_22] : memref<102x8xf32, #tpu.memory_space<vmem>>, vector<80x4xf32>
    tpu.vector_store %arg8[%c11, %c0_22], %43 {strides = array<i32>} : memref<102x8xf32, #tpu.memory_space<vmem>>, vector<80x4xf32>,
    %45 = vector.shape_cast %38 : vector<8x10x4xf32> to vector<80x4xf32>
    %c11_23 = arith.constant 11 : index
    %c4 = arith.constant 4 : index
    %46 = vector.load %arg8[%c11_23, %c4] : memref<102x8xf32, #tpu.memory_space<vmem>>, vector<80x4xf32>
    tpu.vector_store %arg8[%c11_23, %c4], %45 {strides = array<i32>} : memref<102x8xf32, #tpu.memory_space<vmem>>, vector<80x4xf32>,
    %c0_24 = arith.constant 0 : index
    %c0_25 = arith.constant 0 : index
    %47 = vector.load %arg8[%c0_24, %c0_25] : memref<102x8xf32, #tpu.memory_space<vmem>>, vector<80x8xf32>
    %c1_26 = arith.constant 1 : index
    %c0_27 = arith.constant 0 : index
    %48 = vector.load %arg8[%c1_26, %c0_27] : memref<102x8xf32, #tpu.memory_space<vmem>>, vector<80x8xf32>
    %c2 = arith.constant 2 : index
    %c0_28 = arith.constant 0 : index
    %49 = vector.load %arg8[%c2, %c0_28] : memref<102x8xf32, #tpu.memory_space<vmem>>, vector<80x8xf32>
    %c10 = arith.constant 10 : index
    %c0_29 = arith.constant 0 : index
    %50 = vector.load %arg8[%c10, %c0_29] : memref<102x8xf32, #tpu.memory_space<vmem>>, vector<80x8xf32>
    %c11_30 = arith.constant 11 : index
    %c0_31 = arith.constant 0 : index
    %51 = vector.load %arg8[%c11_30, %c0_31] : memref<102x8xf32, #tpu.memory_space<vmem>>, vector<80x8xf32>
    %c12 = arith.constant 12 : index
    %c0_32 = arith.constant 0 : index
    %52 = vector.load %arg8[%c12, %c0_32] : memref<102x8xf32, #tpu.memory_space<vmem>>, vector<80x8xf32>
    %c20 = arith.constant 20 : index
    %c0_33 = arith.constant 0 : index
    %53 = vector.load %arg8[%c20, %c0_33] : memref<102x8xf32, #tpu.memory_space<vmem>>, vector<80x8xf32>
    %c21 = arith.constant 21 : index
    %c0_34 = arith.constant 0 : index
    %54 = vector.load %arg8[%c21, %c0_34] : memref<102x8xf32, #tpu.memory_space<vmem>>, vector<80x8xf32>
    %c22 = arith.constant 22 : index
    %c0_35 = arith.constant 0 : index
    %55 = vector.load %arg8[%c22, %c0_35] : memref<102x8xf32, #tpu.memory_space<vmem>>, vector<80x8xf32>
    %56 = tpu.concatenate %47, %48, %49, %50, %51, %52, %53, %54, %55 in 1 : vector<80x8xf32>, vector<80x8xf32>, vector<80x8xf32>, vector<80x8xf32>, vector<80x8xf32>, vector<80x8xf32>, vector<80x8xf32>, vector<80x8xf32>, vector<80x8xf32> -> vector<80x72xf32>
    %57 = arith.truncf %56 : vector<80x72xf32> to vector<80x72xbf16>
    %c0_36 = arith.constant 0 : index
    %c0_37 = arith.constant 0 : index
    %58 = vector.load %arg3[%c0_36, %c0_37] : memref<72x128xbf16, #tpu.memory_space<vmem>>, vector<72x128xbf16>
    %cst_38 = arith.constant dense<0.000000e+00> : vector<80x128xf32>
    %59 = tpu.matmul %57, %58, %cst_38 {dimension_numbers = #tpu.dot_dimension_numbers<[1], [0], [0], [1], [0, 0, 1, 1], [], []>} : vector<80x72xbf16>, vector<72x128xbf16>, vector<80x128xf32> -> vector<80x128xf32>
    %c0_39 = arith.constant 0 : index
    %c0_40 = arith.constant 0 : index
    %60 = vector.load %arg4[%c0_39, %c0_40] : memref<1x128xf32, #tpu.memory_space<vmem>>, vector<1x128xf32>
    %61 = vector.broadcast %60 : vector<1x128xf32> to vector<80x128xf32>
    %62 = arith.addf %59, %61 : vector<80x128xf32>
    %cst_41 = arith.constant 0.000000e+00 : f32
    %63 = vector.broadcast %cst_41 : f32 to vector<80x128xf32>
    %64 = arith.maximumf %62, %63 : vector<80x128xf32>
    %65 = tpu.iota {dimensions = array<i32: 0>} : vector<80x1xi32>
    %c10_i32 = arith.constant 10 : i32
    %c0_i32 = arith.constant 0 : i32
    %66 = arith.cmpi eq, %c10_i32, %c0_i32 : i32
    %c1_i32 = arith.constant 1 : i32
    %67 = arith.select %66, %c1_i32, %c10_i32 : i32
    %68 = vector.broadcast %67 : i32 to vector<80x1xi32>
    %69 = arith.remsi %65, %68 : vector<80x1xi32>
    %c0_i32_42 = arith.constant 0 : i32
    %70 = vector.broadcast %c0_i32_42 : i32 to vector<80x1xi32>
    %71 = arith.cmpi ne, %69, %70 : vector<80x1xi32>
    %c0_i32_43 = arith.constant 0 : i32
    %72 = vector.broadcast %c0_i32_43 : i32 to vector<80x1xi32>
    %73 = arith.cmpi slt, %69, %72 : vector<80x1xi32>
    %c0_i32_44 = arith.constant 0 : i32
    %74 = arith.cmpi slt, %67, %c0_i32_44 : i32
    %75 = vector.broadcast %74 : i1 to vector<80x1xi1>
    %76 = vector.broadcast %75 : vector<80x1xi1> to vector<80x1xi1>
    %77 = arith.xori %73, %76 : vector<80x1xi1>
    %78 = arith.andi %77, %71 : vector<80x1xi1>
    %79 = vector.broadcast %67 : i32 to vector<80x1xi32>
    %80 = arith.addi %69, %79 : vector<80x1xi32>
    %81 = arith.select %78, %80, %69 : vector<80x1xi1>, vector<80x1xi32>
    %c8_i32 = arith.constant 8 : i32
    %82 = vector.broadcast %c8_i32 : i32 to vector<80x1xi32>
    %83 = arith.cmpi slt, %81, %82 : vector<80x1xi32>
    %cst_45 = arith.constant 0.000000e+00 : f32
    %84 = vector.shape_cast %83 : vector<80x1xi1> to vector<80x1xi1>
    %85 = vector.broadcast %84 : vector<80x1xi1> to vector<80x128xi1>
    %86 = vector.broadcast %cst_45 : f32 to vector<80x128xf32>
    %87 = arith.select %85, %64, %86 : vector<80x128xi1>, vector<80x128xf32>
    %cst_46 = arith.constant 0.000000e+00 : bf16
    %88 = vector.broadcast %cst_46 : bf16 to vector<11x128xbf16>
    %c0_47 = arith.constant 0 : index
    %c0_48 = arith.constant 0 : index
    %89 = vector.load %arg9[%c0_47, %c0_48] : memref<102x128xbf16, #tpu.memory_space<vmem>>, vector<11x128xbf16>
    tpu.vector_store %arg9[%c0_47, %c0_48], %88 {strides = array<i32>} : memref<102x128xbf16, #tpu.memory_space<vmem>>, vector<11x128xbf16>,
    %cst_49 = arith.constant 0.000000e+00 : bf16
    %90 = vector.broadcast %cst_49 : bf16 to vector<11x128xbf16>
    %c91_50 = arith.constant 91 : index
    %c0_51 = arith.constant 0 : index
    %91 = vector.load %arg9[%c91_50, %c0_51] : memref<102x128xbf16, #tpu.memory_space<vmem>>, vector<11x128xbf16>
    tpu.vector_store %arg9[%c91_50, %c0_51], %90 {strides = array<i32>} : memref<102x128xbf16, #tpu.memory_space<vmem>>, vector<11x128xbf16>,
    %92 = arith.truncf %87 : vector<80x128xf32> to vector<80x128xbf16>
    %c11_52 = arith.constant 11 : index
    %c0_53 = arith.constant 0 : index
    %93 = vector.load %arg9[%c11_52, %c0_53] : memref<102x128xbf16, #tpu.memory_space<vmem>>, vector<80x128xbf16>
    tpu.vector_store %arg9[%c11_52, %c0_53], %92 {strides = array<i32>} : memref<102x128xbf16, #tpu.memory_space<vmem>>, vector<80x128xbf16>,
    %c0_54 = arith.constant 0 : index
    %c0_55 = arith.constant 0 : index
    %94 = vector.load %arg9[%c0_54, %c0_55] : memref<102x128xbf16, #tpu.memory_space<vmem>>, vector<80x128xbf16>
    %c0_56 = arith.constant 0 : index
    %c0_57 = arith.constant 0 : index
    %c0_58 = arith.constant 0 : index
    %95 = vector.load %arg5[%c0_56, %c0_57, %c0_58] : memref<9x128x128xbf16, #tpu.memory_space<vmem>>, vector<1x128x128xbf16>
    %96 = vector.shape_cast %95 : vector<1x128x128xbf16> to vector<128x128xbf16>
    %cst_59 = arith.constant dense<0.000000e+00> : vector<80x128xf32>
    %97 = tpu.matmul %94, %96, %cst_59 {dimension_numbers = #tpu.dot_dimension_numbers<[1], [0], [0], [1], [0, 0, 1, 1], [], []>} : vector<80x128xbf16>, vector<128x128xbf16>, vector<80x128xf32> -> vector<80x128xf32>
    %c1_60 = arith.constant 1 : index
    %c0_61 = arith.constant 0 : index
    %98 = vector.load %arg9[%c1_60, %c0_61] : memref<102x128xbf16, #tpu.memory_space<vmem>>, vector<80x128xbf16>
    %c1_62 = arith.constant 1 : index
    %c0_63 = arith.constant 0 : index
    %c0_64 = arith.constant 0 : index
    %99 = vector.load %arg5[%c1_62, %c0_63, %c0_64] : memref<9x128x128xbf16, #tpu.memory_space<vmem>>, vector<1x128x128xbf16>
    %100 = vector.shape_cast %99 : vector<1x128x128xbf16> to vector<128x128xbf16>
    %cst_65 = arith.constant dense<0.000000e+00> : vector<80x128xf32>
    %101 = tpu.matmul %98, %100, %cst_65 {dimension_numbers = #tpu.dot_dimension_numbers<[1], [0], [0], [1], [0, 0, 1, 1], [], []>} : vector<80x128xbf16>, vector<128x128xbf16>, vector<80x128xf32> -> vector<80x128xf32>
    %102 = arith.addf %97, %101 : vector<80x128xf32>
    %c2_66 = arith.constant 2 : index
    %c0_67 = arith.constant 0 : index
    %103 = vector.load %arg9[%c2_66, %c0_67] : memref<102x128xbf16, #tpu.memory_space<vmem>>, vector<80x128xbf16>
    %c2_68 = arith.constant 2 : index
    %c0_69 = arith.constant 0 : index
    %c0_70 = arith.constant 0 : index
    %104 = vector.load %arg5[%c2_68, %c0_69, %c0_70] : memref<9x128x128xbf16, #tpu.memory_space<vmem>>, vector<1x128x128xbf16>
    %105 = vector.shape_cast %104 : vector<1x128x128xbf16> to vector<128x128xbf16>
    %cst_71 = arith.constant dense<0.000000e+00> : vector<80x128xf32>
    %106 = tpu.matmul %103, %105, %cst_71 {dimension_numbers = #tpu.dot_dimension_numbers<[1], [0], [0], [1], [0, 0, 1, 1], [], []>} : vector<80x128xbf16>, vector<128x128xbf16>, vector<80x128xf32> -> vector<80x128xf32>
    %107 = arith.addf %102, %106 : vector<80x128xf32>
    %c10_72 = arith.constant 10 : index
    %c0_73 = arith.constant 0 : index
    %108 = vector.load %arg9[%c10_72, %c0_73] : memref<102x128xbf16, #tpu.memory_space<vmem>>, vector<80x128xbf16>
    %c3 = arith.constant 3 : index
    %c0_74 = arith.constant 0 : index
    %c0_75 = arith.constant 0 : index
    %109 = vector.load %arg5[%c3, %c0_74, %c0_75] : memref<9x128x128xbf16, #tpu.memory_space<vmem>>, vector<1x128x128xbf16>
    %110 = vector.shape_cast %109 : vector<1x128x128xbf16> to vector<128x128xbf16>
    %cst_76 = arith.constant dense<0.000000e+00> : vector<80x128xf32>
    %111 = tpu.matmul %108, %110, %cst_76 {dimension_numbers = #tpu.dot_dimension_numbers<[1], [0], [0], [1], [0, 0, 1, 1], [], []>} : vector<80x128xbf16>, vector<128x128xbf16>, vector<80x128xf32> -> vector<80x128xf32>
    %112 = arith.addf %107, %111 : vector<80x128xf32>
    %c11_77 = arith.constant 11 : index
    %c0_78 = arith.constant 0 : index
    %113 = vector.load %arg9[%c11_77, %c0_78] : memref<102x128xbf16, #tpu.memory_space<vmem>>, vector<80x128xbf16>
    %c4_79 = arith.constant 4 : index
    %c0_80 = arith.constant 0 : index
    %c0_81 = arith.constant 0 : index
    %114 = vector.load %arg5[%c4_79, %c0_80, %c0_81] : memref<9x128x128xbf16, #tpu.memory_space<vmem>>, vector<1x128x128xbf16>
    %115 = vector.shape_cast %114 : vector<1x128x128xbf16> to vector<128x128xbf16>
    %cst_82 = arith.constant dense<0.000000e+00> : vector<80x128xf32>
    %116 = tpu.matmul %113, %115, %cst_82 {dimension_numbers = #tpu.dot_dimension_numbers<[1], [0], [0], [1], [0, 0, 1, 1], [], []>} : vector<80x128xbf16>, vector<128x128xbf16>, vector<80x128xf32> -> vector<80x128xf32>
    %117 = arith.addf %112, %116 : vector<80x128xf32>
    %c12_83 = arith.constant 12 : index
    %c0_84 = arith.constant 0 : index
    %118 = vector.load %arg9[%c12_83, %c0_84] : memref<102x128xbf16, #tpu.memory_space<vmem>>, vector<80x128xbf16>
    %c5 = arith.constant 5 : index
    %c0_85 = arith.constant 0 : index
    %c0_86 = arith.constant 0 : index
    %119 = vector.load %arg5[%c5, %c0_85, %c0_86] : memref<9x128x128xbf16, #tpu.memory_space<vmem>>, vector<1x128x128xbf16>
    %120 = vector.shape_cast %119 : vector<1x128x128xbf16> to vector<128x128xbf16>
    %cst_87 = arith.constant dense<0.000000e+00> : vector<80x128xf32>
    %121 = tpu.matmul %118, %120, %cst_87 {dimension_numbers = #tpu.dot_dimension_numbers<[1], [0], [0], [1], [0, 0, 1, 1], [], []>} : vector<80x128xbf16>, vector<128x128xbf16>, vector<80x128xf32> -> vector<80x128xf32>
    %122 = arith.addf %117, %121 : vector<80x128xf32>
    %c20_88 = arith.constant 20 : index
    %c0_89 = arith.constant 0 : index
    %123 = vector.load %arg9[%c20_88, %c0_89] : memref<102x128xbf16, #tpu.memory_space<vmem>>, vector<80x128xbf16>
    %c6 = arith.constant 6 : index
    %c0_90 = arith.constant 0 : index
    %c0_91 = arith.constant 0 : index
    %124 = vector.load %arg5[%c6, %c0_90, %c0_91] : memref<9x128x128xbf16, #tpu.memory_space<vmem>>, vector<1x128x128xbf16>
    %125 = vector.shape_cast %124 : vector<1x128x128xbf16> to vector<128x128xbf16>
    %cst_92 = arith.constant dense<0.000000e+00> : vector<80x128xf32>
    %126 = tpu.matmul %123, %125, %cst_92 {dimension_numbers = #tpu.dot_dimension_numbers<[1], [0], [0], [1], [0, 0, 1, 1], [], []>} : vector<80x128xbf16>, vector<128x128xbf16>, vector<80x128xf32> -> vector<80x128xf32>
    %127 = arith.addf %122, %126 : vector<80x128xf32>
    %c21_93 = arith.constant 21 : index
    %c0_94 = arith.constant 0 : index
    %128 = vector.load %arg9[%c21_93, %c0_94] : memref<102x128xbf16, #tpu.memory_space<vmem>>, vector<80x128xbf16>
    %c7 = arith.constant 7 : index
    %c0_95 = arith.constant 0 : index
    %c0_96 = arith.constant 0 : index
    %129 = vector.load %arg5[%c7, %c0_95, %c0_96] : memref<9x128x128xbf16, #tpu.memory_space<vmem>>, vector<1x128x128xbf16>
    %130 = vector.shape_cast %129 : vector<1x128x128xbf16> to vector<128x128xbf16>
    %cst_97 = arith.constant dense<0.000000e+00> : vector<80x128xf32>
    %131 = tpu.matmul %128, %130, %cst_97 {dimension_numbers = #tpu.dot_dimension_numbers<[1], [0], [0], [1], [0, 0, 1, 1], [], []>} : vector<80x128xbf16>, vector<128x128xbf16>, vector<80x128xf32> -> vector<80x128xf32>
    %132 = arith.addf %127, %131 : vector<80x128xf32>
    %c22_98 = arith.constant 22 : index
    %c0_99 = arith.constant 0 : index
    %133 = vector.load %arg9[%c22_98, %c0_99] : memref<102x128xbf16, #tpu.memory_space<vmem>>, vector<80x128xbf16>
    %c8 = arith.constant 8 : index
    %c0_100 = arith.constant 0 : index
    %c0_101 = arith.constant 0 : index
    %134 = vector.load %arg5[%c8, %c0_100, %c0_101] : memref<9x128x128xbf16, #tpu.memory_space<vmem>>, vector<1x128x128xbf16>
    %135 = vector.shape_cast %134 : vector<1x128x128xbf16> to vector<128x128xbf16>
    %cst_102 = arith.constant dense<0.000000e+00> : vector<80x128xf32>
    %136 = tpu.matmul %133, %135, %cst_102 {dimension_numbers = #tpu.dot_dimension_numbers<[1], [0], [0], [1], [0, 0, 1, 1], [], []>} : vector<80x128xbf16>, vector<128x128xbf16>, vector<80x128xf32> -> vector<80x128xf32>
    %137 = arith.addf %132, %136 : vector<80x128xf32>
    %c0_103 = arith.constant 0 : index
    %c0_104 = arith.constant 0 : index
    %138 = vector.load %arg6[%c0_103, %c0_104] : memref<1x128xf32, #tpu.memory_space<vmem>>, vector<1x128xf32>
    %139 = vector.broadcast %138 : vector<1x128xf32> to vector<80x128xf32>
    %140 = arith.addf %137, %139 : vector<80x128xf32>
    %cst_105 = arith.constant 0.000000e+00 : f32
    %141 = vector.broadcast %cst_105 : f32 to vector<80x128xf32>
    %142 = arith.maximumf %140, %141 : vector<80x128xf32>
    %143 = vector.extract_strided_slice %142 {offsets = [0, 0], sizes = [8, 128], strides = [1, 1]} : vector<80x128xf32> to vector<8x128xf32>
    %c0_106 = arith.constant 0 : index
    %c0_107 = arith.constant 0 : index
    %c0_108 = arith.constant 0 : index
    %c0_109 = arith.constant 0 : index
    %144 = vector.load %arg7[%c0_106, %c0_107, %c0_108, %c0_109] : memref<1x8x8x128xf32, #tpu.memory_space<vmem>>, vector<1x1x8x128xf32>
    %145 = vector.shape_cast %144 : vector<1x1x8x128xf32> to vector<8x128xf32>
    %146 = vector.shape_cast %143 : vector<8x128xf32> to vector<1x1x8x128xf32>
    tpu.vector_store %arg7[%c0_106, %c0_107, %c0_108, %c0_109], %146 {strides = array<i32>} : memref<1x8x8x128xf32, #tpu.memory_space<vmem>>, vector<1x1x8x128xf32>,
    %147 = vector.extract_strided_slice %142 {offsets = [10, 0], sizes = [8, 128], strides = [1, 1]} : vector<80x128xf32> to vector<8x128xf32>
    %c0_110 = arith.constant 0 : index
    %c1_111 = arith.constant 1 : index
    %c0_112 = arith.constant 0 : index
    %c0_113 = arith.constant 0 : index
    %148 = vector.load %arg7[%c0_110, %c1_111, %c0_112, %c0_113] : memref<1x8x8x128xf32, #tpu.memory_space<vmem>>, vector<1x1x8x128xf32>
    %149 = vector.shape_cast %148 : vector<1x1x8x128xf32> to vector<8x128xf32>
    %150 = vector.shape_cast %147 : vector<8x128xf32> to vector<1x1x8x128xf32>
    tpu.vector_store %arg7[%c0_110, %c1_111, %c0_112, %c0_113], %150 {strides = array<i32>} : memref<1x8x8x128xf32, #tpu.memory_space<vmem>>, vector<1x1x8x128xf32>,
    %151 = vector.extract_strided_slice %142 {offsets = [20, 0], sizes = [8, 128], strides = [1, 1]} : vector<80x128xf32> to vector<8x128xf32>
    %c0_114 = arith.constant 0 : index
    %c2_115 = arith.constant 2 : index
    %c0_116 = arith.constant 0 : index
    %c0_117 = arith.constant 0 : index
    %152 = vector.load %arg7[%c0_114, %c2_115, %c0_116, %c0_117] : memref<1x8x8x128xf32, #tpu.memory_space<vmem>>, vector<1x1x8x128xf32>
    %153 = vector.shape_cast %152 : vector<1x1x8x128xf32> to vector<8x128xf32>
    %154 = vector.shape_cast %151 : vector<8x128xf32> to vector<1x1x8x128xf32>
    tpu.vector_store %arg7[%c0_114, %c2_115, %c0_116, %c0_117], %154 {strides = array<i32>} : memref<1x8x8x128xf32, #tpu.memory_space<vmem>>, vector<1x1x8x128xf32>,
    %155 = vector.extract_strided_slice %142 {offsets = [30, 0], sizes = [8, 128], strides = [1, 1]} : vector<80x128xf32> to vector<8x128xf32>
    %c0_118 = arith.constant 0 : index
    %c3_119 = arith.constant 3 : index
    %c0_120 = arith.constant 0 : index
    %c0_121 = arith.constant 0 : index
    %156 = vector.load %arg7[%c0_118, %c3_119, %c0_120, %c0_121] : memref<1x8x8x128xf32, #tpu.memory_space<vmem>>, vector<1x1x8x128xf32>
    %157 = vector.shape_cast %156 : vector<1x1x8x128xf32> to vector<8x128xf32>
    %158 = vector.shape_cast %155 : vector<8x128xf32> to vector<1x1x8x128xf32>
    tpu.vector_store %arg7[%c0_118, %c3_119, %c0_120, %c0_121], %158 {strides = array<i32>} : memref<1x8x8x128xf32, #tpu.memory_space<vmem>>, vector<1x1x8x128xf32>,
    %159 = vector.extract_strided_slice %142 {offsets = [40, 0], sizes = [8, 128], strides = [1, 1]} : vector<80x128xf32> to vector<8x128xf32>
    %c0_122 = arith.constant 0 : index
    %c4_123 = arith.constant 4 : index
    %c0_124 = arith.constant 0 : index
    %c0_125 = arith.constant 0 : index
    %160 = vector.load %arg7[%c0_122, %c4_123, %c0_124, %c0_125] : memref<1x8x8x128xf32, #tpu.memory_space<vmem>>, vector<1x1x8x128xf32>
    %161 = vector.shape_cast %160 : vector<1x1x8x128xf32> to vector<8x128xf32>
    %162 = vector.shape_cast %159 : vector<8x128xf32> to vector<1x1x8x128xf32>
    tpu.vector_store %arg7[%c0_122, %c4_123, %c0_124, %c0_125], %162 {strides = array<i32>} : memref<1x8x8x128xf32, #tpu.memory_space<vmem>>, vector<1x1x8x128xf32>,
    %163 = vector.extract_strided_slice %142 {offsets = [50, 0], sizes = [8, 128], strides = [1, 1]} : vector<80x128xf32> to vector<8x128xf32>
    %c0_126 = arith.constant 0 : index
    %c5_127 = arith.constant 5 : index
    %c0_128 = arith.constant 0 : index
    %c0_129 = arith.constant 0 : index
    %164 = vector.load %arg7[%c0_126, %c5_127, %c0_128, %c0_129] : memref<1x8x8x128xf32, #tpu.memory_space<vmem>>, vector<1x1x8x128xf32>
    %165 = vector.shape_cast %164 : vector<1x1x8x128xf32> to vector<8x128xf32>
    %166 = vector.shape_cast %163 : vector<8x128xf32> to vector<1x1x8x128xf32>
    tpu.vector_store %arg7[%c0_126, %c5_127, %c0_128, %c0_129], %166 {strides = array<i32>} : memref<1x8x8x128xf32, #tpu.memory_space<vmem>>, vector<1x1x8x128xf32>,
    %167 = vector.extract_strided_slice %142 {offsets = [60, 0], sizes = [8, 128], strides = [1, 1]} : vector<80x128xf32> to vector<8x128xf32>
    %c0_130 = arith.constant 0 : index
    %c6_131 = arith.constant 6 : index
    %c0_132 = arith.constant 0 : index
    %c0_133 = arith.constant 0 : index
    %168 = vector.load %arg7[%c0_130, %c6_131, %c0_132, %c0_133] : memref<1x8x8x128xf32, #tpu.memory_space<vmem>>, vector<1x1x8x128xf32>
    %169 = vector.shape_cast %168 : vector<1x1x8x128xf32> to vector<8x128xf32>
    %170 = vector.shape_cast %167 : vector<8x128xf32> to vector<1x1x8x128xf32>
    tpu.vector_store %arg7[%c0_130, %c6_131, %c0_132, %c0_133], %170 {strides = array<i32>} : memref<1x8x8x128xf32, #tpu.memory_space<vmem>>, vector<1x1x8x128xf32>,
    %171 = vector.extract_strided_slice %142 {offsets = [70, 0], sizes = [8, 128], strides = [1, 1]} : vector<80x128xf32> to vector<8x128xf32>
    %c0_134 = arith.constant 0 : index
    %c7_135 = arith.constant 7 : index
    %c0_136 = arith.constant 0 : index
    %c0_137 = arith.constant 0 : index
    %172 = vector.load %arg7[%c0_134, %c7_135, %c0_136, %c0_137] : memref<1x8x8x128xf32, #tpu.memory_space<vmem>>, vector<1x1x8x128xf32>
    %173 = vector.shape_cast %172 : vector<1x1x8x128xf32> to vector<8x128xf32>
    %174 = vector.shape_cast %171 : vector<8x128xf32> to vector<1x1x8x128xf32>
    tpu.vector_store %arg7[%c0_134, %c7_135, %c0_136, %c0_137], %174 {strides = array<i32>} : memref<1x8x8x128xf32, #tpu.memory_space<vmem>>, vector<1x1x8x128xf32>,
    return
  }
  func.func @transform_0(%arg0: i32) -> (i32, i32, i32, i32, i32) {
    %c0_i32 = arith.constant 0 : i32
    %c0_i32_0 = arith.constant 0 : i32
    %c0_i32_1 = arith.constant 0 : i32
    %c0_i32_2 = arith.constant 0 : i32
    %c0_i32_3 = arith.constant 0 : i32
    return %arg0, %c0_i32, %c0_i32_0, %c0_i32_1, %c0_i32_2 : i32, i32, i32, i32, i32
  }
  func.func @transform_1(%arg0: i32) -> (i32, i32, i32, i32, i32) {
    %c0_i32 = arith.constant 0 : i32
    %c0_i32_0 = arith.constant 0 : i32
    %c0_i32_1 = arith.constant 0 : i32
    %c0_i32_2 = arith.constant 0 : i32
    %c0_i32_3 = arith.constant 0 : i32
    return %arg0, %c0_i32, %c0_i32_0, %c0_i32_1, %c0_i32_2 : i32, i32, i32, i32, i32
  }
  func.func @transform_2(%arg0: i32) -> (i32, i32) {
    %c0_i32 = arith.constant 0 : i32
    %c0_i32_0 = arith.constant 0 : i32
    %c0_i32_1 = arith.constant 0 : i32
    return %c0_i32, %c0_i32_0 : i32, i32
  }
  func.func @transform_3(%arg0: i32) -> (i32, i32) {
    %c0_i32 = arith.constant 0 : i32
    %c0_i32_0 = arith.constant 0 : i32
    %c0_i32_1 = arith.constant 0 : i32
    return %c0_i32, %c0_i32_0 : i32, i32
  }
  func.func @transform_4(%arg0: i32) -> (i32, i32, i32) {
    %c0_i32 = arith.constant 0 : i32
    %c0_i32_0 = arith.constant 0 : i32
    %c0_i32_1 = arith.constant 0 : i32
    %c0_i32_2 = arith.constant 0 : i32
    return %c0_i32, %c0_i32_0, %c0_i32_1 : i32, i32, i32
  }
  func.func @transform_5(%arg0: i32) -> (i32, i32) {
    %c0_i32 = arith.constant 0 : i32
    %c0_i32_0 = arith.constant 0 : i32
    %c0_i32_1 = arith.constant 0 : i32
    return %c0_i32, %c0_i32_0 : i32, i32
  }
  func.func @transform_6(%arg0: i32) -> (i32, i32, i32, i32) {
    %c0_i32 = arith.constant 0 : i32
    %c0_i32_0 = arith.constant 0 : i32
    %c0_i32_1 = arith.constant 0 : i32
    %c0_i32_2 = arith.constant 0 : i32
    return %arg0, %c0_i32, %c0_i32_0, %c0_i32_1 : i32, i32, i32, i32
  }
}

</mosaic_0001>

<bundles_post_ra>
// kernel: down_forward.1
= control target key start
LH: loop header
LB: loop body
LE: loop exit
PB: predicated region body
PF: predicated region fallthrough
CT: control target
= control target key end

     0   :  { %s4958_s21 = smov 0   ;;  %s7376_s0 = inlined_call_operand.vmem [shape: f32[2,8,2,10,8], index: 0, kind: input, shape index: {}]   ;;  %s7377_s1 = inlined_call_operand.vmem [shape: f32[2,8,2,10,8], index: 1, kind: input, shape index: {}]   ;;  %s7378_s2 = inlined_call_operand.vmem [shape: bf16[72,128], index: 2, kind: input, shape index: {}]   ;;  %s7379_s3 = inlined_call_operand.vmem [shape: f32[1,128], index: 3, kind: input, shape index: {}]   ;;  %s7380_s4 = inlined_call_operand.vmem [shape: bf16[9,128,128], index: 4, kind: input, shape index: {}]   ;;  %s7381_s5 = inlined_call_operand.vmem [shape: f32[1,128], index: 5, kind: input, shape index: {}]   ;;  %s7382_s6 = inlined_call_operand.vmem [shape: f32[2,8,8,128], index: 6, kind: output, shape index: {}]  }
   0x1 LB: > { %s4026_s22 = sadd.s32 4294967295, %s4909_s21   ;;  %p4030_p0 = scmp.ge.s32.totalorder %s4909_s21, 1  ;;  %s4909_s21 = sphi %s4958_s21, %s16_s21  }
   0x2   : > { %p222_p1 = scmp.lt.s32.totalorder %s4909_s21, 3 }
   0x4   : > { %p223_p2 = pnand %p4030_p0, %p222_p1 }
   0x6   : > { %226 = sbr.rel (%p223_p2) target bundleno = 1279 (0x4ff), region = 44 }
   0xb   : > { %p257_p3 = scmp.lt.s32.totalorder %s4026_s22, 1  ;;  %s4911_s30 = smov 4  }
   0xc   : > { %s4912_s7 = smov 124   ;;  %s4914_s8 = smov 16  }
   0xd   : > { %s7529_s22 = smov (!%p257_p3, %s4026_s22), 1  ;;  %s4915_s9 = smov 8  }
   0xe   : > { %s4569_s23 = sshll.u32 %s7529_s22, 8  ;;  %s4916_s10 = smov 40  }
   0xf   : > { %s4972_s26 = scalar_lea.vmem %s7376_s0, %s4569_s23  ;;  %s4977_s29 = scalar_lea.vmem %s7377_s1, %s4569_s23 }
  0x10   : > { %v4980_v0 = vld [vmem:[%s4972_s26 + $0x20] sm:$0xff]  ;;  %v4997_v5 = vld [vmem:[%s4972_s26 + $0x8] sm:$0x3]  ;;  %s4917_s11 = smov 32   ;;  %s4918_s12 = smov 24  }
  0x11   : > { %v4983_v1 = vld [vmem:[%s4972_s26] sm:$0xff]  ;;  %453 = vrot.lane.b32.xlu2 %v4980_v0, %s4911_s30  ;;  %v5000_v6 = vld [vmem:[%s4977_s29 + $0x8] sm:$0x3]  ;;  %v306_v7 = vmul.f32 %v4997_v5, %v4997_v5  ;;  %v307_v11 = vmul.f32 %v4980_v0, %v4980_v0  ;;  %s4919_s13 = smov 64   ;;  %s4920_s14 = smov 56  }
  0x12   : > { %v4986_v2 = vld [vmem:[%s4977_s29] sm:$0xff]  ;;  %449 = vrot.lane.b32.xlu1 %v4983_v1, %s4911_s30  ;;  %v305_v3 = vmul.f32 %v4983_v1, %v4983_v1  ;;  %v322_v8 = vmul.f32 %v5000_v6, %v5000_v6  ;;  %v5020_v14 = vld [vmem:[%s4972_s26 + $0x48] sm:$0x3]  ;;  %s4921_s15 = smov 48   ;;  %s4571_s20 = sshll.u32 %s7529_s22, 6 }
  0x13   : > { %v321_v4 = vmul.f32 %v4986_v2, %v4986_v2  ;;  %v5007_v9 = vld [vmem:[%s4977_s29 + $0x20] sm:$0xff]  ;;  %v5023_v15 = vld [vmem:[%s4977_s29 + $0x48] sm:$0x3]  ;;  %v310_v18 = vmul.f32 %v5020_v14, %v5020_v14  ;;  %s7313_s25 = scalar_lea.vmem %s7382_s6, %s4571_s20 }
  0x14   : > { %v5015_v12 = vadd.f32 %v322_v8, %v306_v7  ;;  %v323_v13 = vmul.f32 %v5007_v9, %v5007_v9  ;;  %v5026_v16 = vld [vmem:[%s4972_s26 + $0x28] sm:$0x3]  ;;  %v326_v19 = vmul.f32 %v5023_v15, %v5023_v15  ;;  %v5046_v23 = vld [vmem:[%s4972_s26 + $0x40] sm:$0xff] }
  0x15   : > { %v5009_v10 = vadd.f32 %v321_v4, %v305_v3  ;;  %v5029_v17 = vld [vmem:[%s4977_s29 + $0x28] sm:$0x3]  ;;  %v308_v21 = vmul.f32 %v5026_v16, %v5026_v16  ;;  %v5049_v24 = vld [vmem:[%s4977_s29 + $0x40] sm:$0xff]  ;;  %v309_v27 = vmul.f32 %v5046_v23, %v5046_v23 }
  0x16   : > { %v5039_v20 = vadd.f32 %v323_v13, %v307_v11  ;;  %v324_v22 = vmul.f32 %v5029_v17, %v5029_v17  ;;  %v5053_v25 = vadd.f32 %v326_v19, %v310_v18  ;;  %v325_v28 = vmul.f32 %v5049_v24, %v5049_v24  ;;  %v5068_v30 = vld [vmem:[%s4972_s26 + $0x60] sm:$0xff]  ;;  %v5104_v40 = vld [vmem:[%s4972_s26 + $0x68] sm:$0x3] }
  0x17   : > { %369 = vrot.lane.b32.xlu0 %v5009_v10, %s4911_s30  ;;  %v5071_v31 = vld [vmem:[%s4977_s29 + $0x60] sm:$0xff]  ;;  %v311_v32 = vmul.f32 %v5068_v30, %v5068_v30  ;;  %v5107_v41 = vld [vmem:[%s4977_s29 + $0x68] sm:$0x3]  ;;  %v312_v42 = vmul.f32 %v5104_v40, %v5104_v40 }
  0x18   : > { %v5055_v26 = vadd.f32 %v324_v22, %v308_v21  ;;  %v5065_v29 = vadd.f32 %v325_v28, %v309_v27  ;;  %v327_v33 = vmul.f32 %v5071_v31, %v5071_v31  ;;  %v5080_v34 = vld [vmem:[%s4972_s26 + $0x80] sm:$0xff]  ;;  %v328_v43 = vmul.f32 %v5107_v41, %v5107_v41  ;;  %v5116_v44 = vld [vmem:[%s4972_s26 + $0x88] sm:$0x3] }
  0x19   : > { %451 = vrot.lane.b32.xlu2 %v4997_v5, %s4911_s30  ;;  %v5083_v35 = vld [vmem:[%s4977_s29 + $0x80] sm:$0xff]  ;;  %v313_v37 = vmul.f32 %v5080_v34, %v5080_v34  ;;  %v5119_v45 = vld [vmem:[%s4977_s29 + $0x88] sm:$0x3]  ;;  %v314_v49 = vmul.f32 %v5116_v44, %v5116_v44 }
  0x1a   : > { %371 = vrot.lane.b32.xlu1 %v5015_v12, %s4911_s30  ;;  %v5089_v36 = vadd.f32 %v327_v33, %v311_v32  ;;  %v329_v38 = vmul.f32 %v5083_v35, %v5083_v35  ;;  %v5122_v46 = vld [vmem:[%s4972_s26 + $0xc0] sm:$0xff]  ;;  %v5127_v48 = vadd.f32 %v328_v43, %v312_v42  ;;  %v330_v50 = vmul.f32 %v5119_v45, %v5119_v45  ;;  %v5164_v60 = vld [vmem:[%s4972_s26 + $0xa8] sm:$0x3] }
  0x1b   : > { %v5125_v47 = vld [vmem:[%s4977_s29 + $0xc0] sm:$0xff]  ;;  %v317_v51 = vmul.f32 %v5122_v46, %v5122_v46  ;;  %v5167_v61 = vld [vmem:[%s4977_s29 + $0xa8] sm:$0x3]  ;;  %v316_v62 = vmul.f32 %v5164_v60, %v5164_v60 }
  0x1c   : > { %v5097_v39 = vadd.f32 %v329_v38, %v313_v37  ;;  %v333_v52 = vmul.f32 %v5125_v47, %v5125_v47  ;;  %v5142_v53 = vld [vmem:[%s4972_s26 + $0xa0] sm:$0xff]  ;;  %v5149_v55 = vadd.f32 %v330_v50, %v314_v49  ;;  %v332_v63 = vmul.f32 %v5167_v61, %v5167_v61  ;;  %v5196_v18 = vld [vmem:[%s4972_s26 + $0xe8] sm:$0x3] }
  0x1d   : > { %v5145_v54 = vld [vmem:[%s4977_s29 + $0xa0] sm:$0xff]  ;;  %v315_v57 = vmul.f32 %v5142_v53, %v5142_v53  ;;  %v5199_v19 = vld [vmem:[%s4977_s29 + $0xe8] sm:$0x3]  ;;  %v320_v21 = vmul.f32 %v5196_v18, %v5196_v18 }
  0x1e   : > { %v5151_v56 = vadd.f32 %v333_v52, %v317_v51  ;;  %v331_v58 = vmul.f32 %v5145_v54, %v5145_v54  ;;  %v5176_v3 = vld [vmem:[%s4972_s26 + $0xe0] sm:$0xff]  ;;  %v5185_v7 = vadd.f32 %v332_v63, %v316_v62  ;;  %7425 = vst [vmem:[#allocation4_spill] sm:$0xff] %v5199_v19  ;;  %v336_v22 = vmul.f32 %v5199_v19, %v5199_v19  ;;  %v5210_v27 = vld [vmem:[%s4972_s26 + $0xc8] sm:$0x3] }
  0x1f   : > { %373 = vrot.lane.b32.xlu0 %v5039_v20, %s4911_s30  ;;  %v5179_v4 = vld [vmem:[%s4977_s29 + $0xe0] sm:$0xff]  ;;  %v319_v8 = vmul.f32 %v5176_v3, %v5176_v3  ;;  %v5213_v28 = vld [vmem:[%s4977_s29 + $0xc8] sm:$0x3]  ;;  %v318_v33 = vmul.f32 %v5210_v27, %v5210_v27 }
  0x20   : > { %v5161_v59 = vadd.f32 %v331_v58, %v315_v57  ;;  %v335_v11 = vmul.f32 %v5179_v4, %v5179_v4  ;;  %7426 = vst [vmem:[#allocation5_spill] sm:$0xff] %v5213_v28  ;;  %v5217_v32 = vadd.f32 %v336_v22, %v320_v21  ;;  %v334_v37 = vmul.f32 %v5213_v28, %v5213_v28 }
  0x21   : > { %379 = vrot.lane.b32.xlu2 %v5053_v25, %s4911_s30 }
  0x22   : > { %375 = vrot.lane.b32.xlu1 %v5055_v26, %s4911_s30  ;;  %v5193_v13 = vadd.f32 %v335_v11, %v319_v8  ;;  %7427 = vst [vmem:[#allocation6_spill] sm:$0xff] %v5217_v32  ;;  %v5227_v38 = vadd.f32 %v334_v37, %v318_v33 }
  0x24   : > { %7428 = vst [vmem:[#allocation7_spill] sm:$0xff] %v5227_v38 }
  0x27   : > { %377 = vrot.lane.b32.xlu0 %v5065_v29, %s4911_s30 }
  0x29   : > { %455 = vrot.lane.b32.xlu2 %v5026_v16, %s4911_s30 }
  0x2a   : > { %457 = vrot.lane.b32.xlu1 %v5046_v23, %s4911_s30 }
  0x2f   : > { %381 = vrot.lane.b32.xlu0 %v5089_v36, %s4911_s30 }
  0x31   : > { %385 = vrot.lane.b32.xlu2 %v5097_v39, %s4911_s30 }
  0x32   : > { %461 = vrot.lane.b32.xlu1 %v5068_v30, %s4911_s30 }
  0x37   : > { %459 = vrot.lane.b32.xlu0 %v5020_v14, %s4911_s30 }
  0x39   : > { %463 = vrot.lane.b32.xlu2 %v5104_v40, %s4911_s30 }
  0x3a   : > { %465 = vrot.lane.b32.xlu1 %v5080_v34, %s4911_s30 }
  0x3f   : > { %383 = vrot.lane.b32.xlu0 %v5127_v48, %s4911_s30 }
  0x41   : > { %387 = vrot.lane.b32.xlu2 %v5149_v55, %s4911_s30 }
  0x42   : > { %393 = vrot.lane.b32.xlu1 %v5151_v56, %s4911_s30 }
  0x47   : > { %389 = vrot.lane.b32.xlu0 %v5161_v59, %s4911_s30 }
  0x49   : > { %473 = vrot.lane.b32.xlu2 %v5122_v46, %s4911_s30 }
  0x4a   : > { %469 = vrot.lane.b32.xlu1 %v5142_v53, %s4911_s30 }
  0x4f   : > { %391 = vrot.lane.b32.xlu0 %v5185_v7, %s4911_s30 }
  0x51   : > { %397 = vrot.lane.b32.xlu2 %v5193_v13, %s4911_s30 }
  0x52   : > { %471 = vrot.lane.b32.xlu1 %v5164_v60, %s4911_s30 }
  0x57   : > { %467 = vrot.lane.b32.xlu0 %v5116_v44, %s4911_s30 }
  0x59   : > { %477 = vrot.lane.b32.xlu2 %v5176_v3, %s4911_s30 }
  0x5a   : > { %399 = vrot.lane.b32.xlu1 %v5217_v32, %s4911_s30 }
  0x5f   : > { %395 = vrot.lane.b32.xlu0 %v5227_v38, %s4911_s30 }
  0x61   : > { %535 = vrot.lane.b32.xlu2 %v5029_v17, %s4911_s30 }
  0x62   : > { %479 = vrot.lane.b32.xlu1 %v5196_v18, %s4911_s30 }
  0x67   : > { %475 = vrot.lane.b32.xlu0 %v5210_v27, %s4911_s30 }
  0x69   : > { %541 = vrot.lane.b32.xlu2 %v5071_v31, %s4911_s30 }
  0x6a   : > { %529 = vrot.lane.b32.xlu1 %v4986_v2, %s4911_s30 }
  0x6b   : > { %v454_v42 = vpop.permute.xlu2 %453 }
  0x6f   : > { %533 = vrot.lane.b32.xlu0 %v5007_v9, %s4911_s30 }
  0x72   : > { %539 = vrot.lane.b32.xlu1 %v5023_v15, %s4911_s30 }
  0x73   : > { %v452_v43 = vpop.permute.xlu2 %451 }
  0x77   : > { %531 = vrot.lane.b32.xlu0 %v5000_v6, %s4911_s30 }
  0x7b   : > { %v5249_v49 = vpop.permute.xlu2 %379 }
  0x7c   : > { %vm422_vm3 = vcmp.gt.f32.partialorder %v5053_v25, %v5249_v49 }
  0x7d   : > { %v598_v37 = vsel %vm422_vm3, %v5053_v25, %v5249_v49  ;;  %v5782_v25 = vld [vmem:[%s4977_s29 + $0xb0] sm:$0xff] }
  0x7f   : > { %537 = vrot.lane.b32.xlu0 %v5049_v24, %s4911_s30 }
  0x83   : > { %v456_v58 = vpop.permute.xlu2 %455 }
  0x84   : > { %v450_v50 = vpop.permute.xlu1 %449 }
  0x89   : > { %v5251_v51 = vpop.permute.xlu0 %369 }
  0x8a   : > { %vm417_vm0 = vcmp.gt.f32.partialorder %v5009_v10, %v5251_v51 }
  0x8b   : > { %v593_v52 = vsel %vm417_vm0, %v5009_v10, %v5251_v51  ;;  %v497_v8 = vsel %vm417_vm0, %v4983_v1, %v450_v50  ;;  %v5294_v22 = vpop.permute.xlu2 %385 }
  0x8c   : > { %707 = vrot.lane.b32.xlu2 %v593_v52, %s4912_s7  ;;  %v5261_v57 = vpop.permute.xlu1 %371  ;;  %vm425_vm7 = vcmp.gt.f32.partialorder %v5097_v39, %v5294_v22 }
  0x8d   : > { %vm418_vm1 = vcmp.gt.f32.partialorder %v5015_v12, %v5261_v57 }
  0x8e   : > { %v594_v62 = vsel %vm418_vm1, %v5015_v12, %v5261_v57  ;;  %v498_v1 = vsel %vm418_vm1, %v4997_v5, %v452_v43  ;;  %v5616_v12 = vld [vmem:[%s4977_s29 + $0x38] sm:$0x3] }
  0x8f   : > { %709 = vrot.lane.b32.xlu1 %v594_v62, %s4912_s7  ;;  %7436 = vst [vmem:[#allocation15_spill] sm:$0xff] %v5616_v12 }
  0x91   : > { %v5271_v63 = vpop.permute.xlu0 %373 }
  0x92   : > { %vm419_vm2 = vcmp.gt.f32.partialorder %v5039_v20, %v5271_v63 }
  0x93   : > { %v595_v11 = vsel %vm419_vm2, %v5039_v20, %v5271_v63  ;;  %v499_v5 = vsel %vm419_vm2, %v4980_v0, %v454_v42  ;;  %v464_v42 = vpop.permute.xlu2 %463  ;;  %v5547_v20 = vld [vmem:[%s4977_s29 + $0x30] sm:$0xff] }
  0x94   : > { %787 = vrot.lane.b32.xlu2 %v497_v8, %s4912_s7  ;;  %711 = vrot.lane.b32.xlu0 %v595_v11, %s4912_s7  ;;  %v5286_v21 = vpop.permute.xlu1 %375  ;;  %7431 = vst [vmem:[#allocation10_spill] sm:$0xff] %v5547_v20 }
  0x95   : > { %vm420_vm4 = vcmp.gt.f32.partialorder %v5055_v26, %v5286_v21 }
  0x96   : > { %v596_v43 = vsel %vm420_vm4, %v5055_v26, %v5286_v21  ;;  %v500_v0 = vsel %vm420_vm4, %v5026_v16, %v456_v58 }
  0x97   : > { %789 = vrot.lane.b32.xlu1 %v498_v1, %s4912_s7 }
  0x99   : > { %v5297_v33 = vpop.permute.xlu0 %377 }
  0x9a   : > { %vm421_vm5 = vcmp.gt.f32.partialorder %v5065_v29, %v5297_v33 }
  0x9b   : > { %v597_v62 = vsel %vm421_vm5, %v5065_v29, %v5297_v33 }
  0x9c   : > { %717 = vrot.lane.b32.xlu0 %v598_v37, %s4912_s7  ;;  %791 = vrot.lane.b32.xlu2 %v499_v5, %s4912_s7  ;;  %v458_v50 = vpop.permute.xlu1 %457  ;;  %v5349_v37 = vpop.permute.xlu2 %387 }
  0x9d   : > { %v501_v1 = vsel %vm421_vm5, %v5046_v23, %v458_v50  ;;  %v601_v23 = vsel %vm425_vm7, %v5097_v39, %v5294_v22  ;;  %vm426_vm11 = vcmp.gt.f32.partialorder %v5149_v55, %v5349_v37  ;;  %v669_v39 = vmul.f32 %v5782_v25, %v5782_v25 }
  0x9f   : > { %713 = vrot.lane.b32.xlu1 %v596_v43, %s4912_s7 }
  0xa1   : > { %v5320_v52 = vpop.permute.xlu0 %381 }
  0xa2   : > { %vm423_vm6 = vcmp.gt.f32.partialorder %v5089_v36, %v5320_v52 }
  0xa3   : > { %v599_v16 = vsel %vm423_vm6, %v5089_v36, %v5320_v52  ;;  %v5762_v36 = vld [vmem:[%s4972_s26 + $0x78] sm:$0x3] }
  0xa4   : > { %793 = vrot.lane.b32.xlu0 %v500_v0, %s4912_s7  ;;  %715 = vrot.lane.b32.xlu2 %v597_v62, %s4912_s7  ;;  %v462_v58 = vpop.permute.xlu1 %461  ;;  %v474_v50 = vpop.permute.xlu2 %473  ;;  %v5765_v52 = vld [vmem:[%s4977_s29 + $0x78] sm:$0x3]  ;;  %v650_v49 = vmul.f32 %v5762_v36, %v5762_v36 }
  0xa5   : > { %v503_v5 = vsel %vm423_vm6, %v5068_v30, %v462_v58 }
  0xa7   : > { %719 = vrot.lane.b32.xlu1 %v599_v16, %s4912_s7 }
  0xa9   : > { %v460_v8 = vpop.permute.xlu0 %459 }
  0xaa   : > { %v502_v11 = vsel %vm422_vm3, %v5020_v14, %v460_v8 }
  0xac   : > { %795 = vrot.lane.b32.xlu2 %v501_v1, %s4912_s7  ;;  %797 = vrot.lane.b32.xlu0 %v502_v11, %s4912_s7  ;;  %v466_v43 = vpop.permute.xlu1 %465  ;;  %v5397_v8 = vpop.permute.xlu2 %397 }
  0xad   : > { %v505_v62 = vsel %vm425_vm7, %v5080_v34, %v466_v43  ;;  %vm431_vm13 = vcmp.gt.f32.partialorder %v5193_v13, %v5397_v8 }
  0xaf   : > { %799 = vrot.lane.b32.xlu1 %v503_v5, %s4912_s7 }
  0xb1   : > { %v5360_v14 = vpop.permute.xlu0 %383 }
  0xb2   : > { %vm424_vm8 = vcmp.gt.f32.partialorder %v5127_v48, %v5360_v14 }
  0xb3   : > { %v600_v30 = vsel %vm424_vm8, %v5127_v48, %v5360_v14  ;;  %v504_v58 = vsel %vm424_vm8, %v5104_v40, %v464_v42  ;;  %v602_v42 = vsel %vm426_vm11, %v5149_v55, %v5349_v37  ;;  %v5829_v48 = vld [vmem:[%s4972_s26 + $0xd0] sm:$0xff] }
  0xb4   : > { %723 = vrot.lane.b32.xlu2 %v601_v23, %s4912_s7  ;;  %721 = vrot.lane.b32.xlu0 %v600_v30, %s4912_s7  ;;  %v5387_v16 = vpop.permute.xlu1 %393  ;;  %v478_v5 = vpop.permute.xlu2 %477  ;;  %7443 = vst [vmem:[#allocation22_spill] sm:$0xff] %v5829_v48  ;;  %v5832_v14 = vld [vmem:[%s4977_s29 + $0xd0] sm:$0xff] }
  0xb5   : > { %vm429_vm9 = vcmp.gt.f32.partialorder %v5151_v56, %v5387_v16 }
  0xb6   : > { %v605_v34 = vsel %vm429_vm9, %v5151_v56, %v5387_v16  ;;  %v5883_v16 = vld [vmem:[%s4972_s26 + $0xb8] sm:$0x3] }
  0xb7   : > { %545 = vrot.lane.b32.xlu1 %v5083_v35, %s4911_s30 }
  0xb9   : > { %v5378_v0 = vpop.permute.xlu0 %389 }
  0xba   : > { %vm427_vm10 = vcmp.gt.f32.partialorder %v5161_v59, %v5378_v0 }
  0xbb   : > { %v603_v11 = vsel %vm427_vm10, %v5161_v59, %v5378_v0  ;;  %v5859_v0 = vld [vmem:[%s4972_s26 + $0x98] sm:$0x3] }
  0xbc   : > { %803 = vrot.lane.b32.xlu2 %v505_v62, %s4912_s7  ;;  %543 = vrot.lane.b32.xlu0 %v5107_v41, %s4911_s30  ;;  %v470_v40 = vpop.permute.xlu1 %469  ;;  %v509_v62 = vsel %vm429_vm9, %v5122_v46, %v474_v50 }
  0xbd   : > { %v507_v23 = vsel %vm427_vm10, %v5142_v53, %v470_v40 }
  0xbf   : > { %801 = vrot.lane.b32.xlu1 %v504_v58, %s4912_s7  ;;  %v5442_v58 = vpop.permute.xlu2 %535 }
  0xc1   : > { %v5410_v1 = vpop.permute.xlu0 %391 }
  0xc2   : > { %vm428_vm12 = vcmp.gt.f32.partialorder %v5185_v7, %v5410_v1 }
  0xc3   : > { %v604_v53 = vsel %vm428_vm12, %v5185_v7, %v5410_v1 }
  0xc4   : > { %731 = vrot.lane.b32.xlu0 %v605_v34, %s4912_s7  ;;  %727 = vrot.lane.b32.xlu2 %v603_v11, %s4912_s7  ;;  %v472_v30 = vpop.permute.xlu1 %471 }
  0xc5   : > { %v508_v40 = vsel %vm428_vm12, %v5164_v60, %v472_v30 }
  0xc7   : > { %549 = vrot.lane.b32.xlu1 %v5145_v54, %s4911_s30  ;;  %v5461_v11 = vpop.permute.xlu2 %541 }
  0xc9   : > { %v468_v43 = vpop.permute.xlu0 %467 }
  0xca   : > { %v506_v46 = vsel %vm426_vm11, %v5116_v44, %v468_v43 }
  0xcc   : > { %725 = vrot.lane.b32.xlu2 %v602_v42, %s4912_s7  ;;  %807 = vrot.lane.b32.xlu0 %v507_v23, %s4912_s7  ;;  %v5454_v50 = vpop.permute.xlu1 %399  ;;  %v607_v42 = vsel %vm431_vm13, %v5193_v13, %v5397_v8 }
  0xcd   : > { %7430 = vst [vmem:[#allocation9_spill] sm:$0xff] %v5454_v50  ;;  %vm432_vm15 = vcmp.gt.f32.partialorder %v5217_v32, %v5454_v50 }
  0xce   : > { %v608_v30 = vsel %vm432_vm15, %v5217_v32, %v5454_v50 }
  0xcf   : > { %553 = vrot.lane.b32.xlu1 %v5125_v47, %s4911_s30 }
  0xd1   : > { %v5446_v34 = vpop.permute.xlu0 %395 }
  0xd2   : > { %7429 = vst [vmem:[#allocation8_spill] sm:$0xff] %v5446_v34  ;;  %vm7383_vm14 = vcmp.gt.f32.partialorder %v5227_v38, %v5446_v34 }
  0xd3   : > { %v606_v60 = vsel %vm7383_vm14, %v5227_v38, %v5446_v34 }
  0xd4   : > { %811 = vrot.lane.b32.xlu0 %v509_v62, %s4912_s7  ;;  %729 = vrot.lane.b32.xlu2 %v604_v53, %s4912_s7  ;;  %v480_v23 = vpop.permute.xlu1 %479  ;;  %v511_v62 = vsel %vm431_vm13, %v5176_v3, %v478_v5 }
  0xd5   : > { %v512_v3 = vsel %vm432_vm15, %v5196_v18, %v480_v23 }
  0xd7   : > { %547 = vrot.lane.b32.xlu1 %v5119_v45, %s4911_s30 }
  0xd9   : > { %v476_v44 = vpop.permute.xlu0 %475 }
  0xdc   : > { %551 = vrot.lane.b32.xlu0 %v5167_v61, %s4911_s30  ;;  %805 = vrot.lane.b32.xlu2 %v506_v46, %s4912_s7  ;;  %v510_v46 = vsel %vm7383_vm14, %v5210_v27, %v476_v44  ;;  %v530_v5 = vpop.permute.xlu1 %529 }
  0xdd   : > { %v577_v44 = vsel %vm417_vm0, %v4986_v2, %v530_v5  ;;  %v5556_v5 = vld [vmem:[%s4972_s26 + $0x18] sm:$0x3] }
  0xde   : > { %v644_v34 = vmul.f32 %v5556_v5, %v5556_v5 }
  0xdf   : > { %809 = vrot.lane.b32.xlu1 %v508_v40, %s4912_s7  ;;  %v5503_v40 = vld [vmem:[%s4972_s26 + $0x10] sm:$0xff] }
  0xe1   : > { %v534_v53 = vpop.permute.xlu0 %533 }
  0xe2   : > { %v579_v23 = vsel %vm419_vm2, %v5007_v9, %v534_v53  ;;  %v5544_v9 = vld [vmem:[%s4972_s26 + $0x30] sm:$0xff] }
  0xe3   : > { %v645_v53 = vmul.f32 %v5544_v9, %v5544_v9 }
  0xe4   : > { %735 = vrot.lane.b32.xlu2 %v607_v42, %s4912_s7  ;;  %733 = vrot.lane.b32.xlu0 %v606_v60, %s4912_s7  ;;  %v5506_v42 = vld [vmem:[%s4977_s29 + $0x10] sm:$0xff]  ;;  %v5533_v2 = vpop.permute.xlu1 %539 }
  0xe5   : > { %v659_v27 = vmul.f32 %v5506_v42, %v5506_v42 }
  0xe6   : > { %v5484_v43 = vpop.permute.xlu2 %707 }
  0xe7   : > { %737 = vrot.lane.b32.xlu1 %v608_v30, %s4912_s7  ;;  %v643_v30 = vmul.f32 %v5503_v40, %v5503_v40 }
  0xec   : > { %815 = vrot.lane.b32.xlu2 %v511_v62, %s4912_s7  ;;  %813 = vrot.lane.b32.xlu0 %v510_v46, %s4912_s7  ;;  %v5521_v62 = vadd.f32 %v659_v27, %v643_v30  ;;  %v532_v46 = vpop.permute.xlu0 %531  ;;  %v5559_v30 = vld [vmem:[%s4977_s29 + $0x18] sm:$0x3] }
  0xed   : > { %7432 = vst [vmem:[#allocation11_spill] sm:$0xff] %v5559_v30  ;;  %v660_v38 = vmul.f32 %v5559_v30, %v5559_v30  ;;  %v578_v32 = vsel %vm418_vm1, %v5000_v6, %v532_v46  ;;  %v662_v46 = vmul.f32 %v5616_v12, %v5616_v12 }
  0xee   : > { %v788_v60 = vpop.permute.xlu2 %787  ;;  %vm755_vm14 = vcmp.gt.f32.partialorder %v5521_v62, %v5484_v43 }
  0xef   : > { %817 = vrot.lane.b32.xlu1 %v512_v3, %s4912_s7  ;;  %v931_v10 = vsel %vm755_vm14, %v5521_v62, %v5484_v43  ;;  %v661_v3 = vmul.f32 %v5547_v20, %v5547_v20  ;;  %v5576_v20 = vld [vmem:[%s4977_s29 + $0x50] sm:$0xff]  ;;  %v5595_v30 = vadd.f32 %v660_v38, %v644_v34  ;;  %v5613_v38 = vld [vmem:[%s4972_s26 + $0x38] sm:$0x3] }
  0xf0   : > { %7434 = vst [vmem:[#allocation13_spill] sm:$0xff] %v5576_v20  ;;  %v646_v34 = vmul.f32 %v5613_v38, %v5613_v38 }
  0xf1   : > { %7435 = vst [vmem:[#allocation14_spill] sm:$0xff] %v5613_v38 }
  0xf4   : > { %559 = vrot.lane.b32.xlu2 %v5199_v19, %s4911_s30  ;;  %867 = vrot.lane.b32.xlu0 %v577_v44, %s4912_s7  ;;  %v538_v51 = vpop.permute.xlu0 %537  ;;  %v835_v44 = vsel %vm755_vm14, %v5503_v40, %v788_v60 }
  0xf6   : > { %v792_v18 = vpop.permute.xlu2 %791 }
  0xf7   : > { %871 = vrot.lane.b32.xlu1 %v579_v23, %s4912_s7  ;;  %v5567_v23 = vadd.f32 %v661_v3, %v645_v53  ;;  %v663_v3 = vmul.f32 %v5576_v20, %v5576_v20 }
  0xfc   : > { %963 = vrot.lane.b32.xlu2 %v931_v10, %s4911_s30  ;;  %557 = vrot.lane.b32.xlu0 %v5179_v4, %s4911_s30  ;;  %v5573_v10 = vld [vmem:[%s4972_s26 + $0x50] sm:$0xff] }
  0xfd   : > { %7433 = vst [vmem:[#allocation12_spill] sm:$0xff] %v5573_v10  ;;  %v647_v53 = vmul.f32 %v5573_v10, %v5573_v10 }
  0xfe   : > { %v5549_v63 = vpop.permute.xlu2 %715 }
  0xff   : > { %v5606_v19 = vadd.f32 %v663_v3, %v647_v53  ;;  %v5645_v3 = vadd.f32 %v662_v46, %v646_v34  ;;  %v5669_v34 = vld [vmem:[%s4972_s26 + $0x58] sm:$0x3] }
 0x100   : > { %v5672_v46 = vld [vmem:[%s4977_s29 + $0x58] sm:$0x3] }
 0x101   : > { %v5561_v27 = vpop.permute.xlu1 %709  ;;  %vm759_vm1 = vcmp.gt.f32.partialorder %v5606_v19, %v5549_v63  ;;  %7439 = vst [vmem:[#allocation18_spill] sm:$0xff] %v5672_v46 }
 0x102   : > { %vm7400_vm2 = vcmp.gt.f32.partialorder %v5595_v30, %v5561_v27  ;;  %v935_v53 = vsel %vm759_vm1, %v5606_v19, %v5549_v63 }
 0x104   : > { %1043 = vrot.lane.b32.xlu2 %v835_v44, %s4911_s30  ;;  %555 = vrot.lane.b32.xlu0 %v5213_v28, %s4911_s30 }
 0x106   : > { %v796_v50 = vpop.permute.xlu2 %795  ;;  %v5582_v60 = vpop.permute.xlu0 %711 }
 0x107   : > { %vm757_vm0 = vcmp.gt.f32.partialorder %v5567_v23, %v5582_v60 }
 0x108   : > { %v933_v44 = vsel %vm757_vm0, %v5567_v23, %v5582_v60  ;;  %v837_v20 = vsel %vm757_vm0, %v5544_v9, %v792_v18 }
 0x109   : > { %967 = vrot.lane.b32.xlu1 %v933_v44, %s4911_s30  ;;  %v790_v28 = vpop.permute.xlu1 %789  ;;  %v5650_v44 = vld [vmem:[%s4972_s26 + $0x70] sm:$0xff] }
 0x10a   : > { %v649_v33 = vmul.f32 %v5650_v44, %v5650_v44 }
 0x10c   : > { %869 = vrot.lane.b32.xlu0 %v578_v32, %s4912_s7  ;;  %1047 = vrot.lane.b32.xlu2 %v837_v20, %s4911_s30  ;;  %v932_v32 = vsel %vm7400_vm2, %v5595_v30, %v5561_v27  ;;  %v581_v20 = vsel %vm421_vm5, %v5049_v24, %v538_v51  ;;  %v836_v24 = vsel %vm7400_vm2, %v5556_v5, %v790_v28 }
 0x10d   : > { %v580_v28 = vsel %vm420_vm4, %v5029_v17, %v5442_v58  ;;  %v664_v17 = vmul.f32 %v5672_v46, %v5672_v46  ;;  %v839_v58 = vsel %vm759_vm1, %v5573_v10, %v796_v50  ;;  %v5717_v50 = vld [vmem:[%s4972_s26 + $0x90] sm:$0xff] }
 0x10e   : > { %v5618_v6 = vpop.permute.xlu2 %723  ;;  %v5620_v57 = vpop.permute.xlu0 %717  ;;  %v651_v46 = vmul.f32 %v5717_v50, %v5717_v50 }
 0x111   : > { %965 = vrot.lane.b32.xlu1 %v932_v32, %s4911_s30  ;;  %v5634_v18 = vpop.permute.xlu1 %713  ;;  %v5653_v32 = vld [vmem:[%s4977_s29 + $0x70] sm:$0xff] }
 0x112   : > { %7437 = vst [vmem:[#allocation16_spill] sm:$0xff] %v5634_v18  ;;  %vm7408_vm5 = vcmp.gt.f32.partialorder %v5645_v3, %v5634_v18  ;;  %v665_v51 = vmul.f32 %v5653_v32, %v5653_v32 }
 0x113   : > { %7438 = vst [vmem:[#allocation17_spill] sm:$0xff] %v5653_v32 }
 0x114   : > { %875 = vrot.lane.b32.xlu0 %v581_v20, %s4912_s7  ;;  %971 = vrot.lane.b32.xlu2 %v935_v53, %s4911_s30  ;;  %v934_v53 = vsel %vm7408_vm5, %v5645_v3, %v5634_v18  ;;  %v5686_v32 = vadd.f32 %v665_v51, %v649_v33 }
 0x116   : > { %v5655_v12 = vpop.permute.xlu2 %803  ;;  %v794_v29 = vpop.permute.xlu0 %793 }
 0x119   : > { %1045 = vrot.lane.b32.xlu1 %v836_v24, %s4911_s30  ;;  %v5674_v20 = vpop.permute.xlu1 %719  ;;  %v648_v24 = vmul.f32 %v5669_v34, %v5669_v34 }
 0x11a   : > { %vm761_vm4 = vcmp.gt.f32.partialorder %v5686_v32, %v5674_v20 }
 0x11b   : > { %v5702_v33 = vadd.f32 %v664_v17, %v648_v24  ;;  %v5720_v24 = vld [vmem:[%s4977_s29 + $0x90] sm:$0xff] }
 0x11c   : > { %873 = vrot.lane.b32.xlu0 %v580_v28, %s4912_s7  ;;  %969 = vrot.lane.b32.xlu2 %v934_v53, %s4911_s30  ;;  %v937_v28 = vsel %vm761_vm4, %v5686_v32, %v5674_v20  ;;  %v838_v53 = vsel %vm7408_vm5, %v5613_v38, %v794_v29  ;;  %7441 = vst [vmem:[#allocation20_spill] sm:$0xff] %v5720_v24 }
 0x11d   : > { %7440 = vst [vmem:[#allocation19_spill] sm:$0xff] %v5702_v33  ;;  %vm760_vm2 = vcmp.gt.f32.partialorder %v5702_v33, %v5620_v57  ;;  %v667_v29 = vmul.f32 %v5720_v24, %v5720_v24  ;;  %v583_v38 = vsel %vm423_vm6, %v5071_v31, %v5461_v11  ;;  %v582_v31 = vsel %vm422_vm3, %v5023_v15, %v5533_v2  ;;  %v5779_v15 = vld [vmem:[%s4972_s26 + $0xb0] sm:$0xff] }
 0x11e   : > { %v5694_v26 = vpop.permute.xlu2 %727  ;;  %v798_v21 = vpop.permute.xlu0 %797  ;;  %v666_v2 = vmul.f32 %v5765_v52, %v5765_v52 }
 0x11f   : > { %v840_v24 = vsel %vm760_vm2, %v5669_v34, %v798_v21  ;;  %v5747_v10 = vadd.f32 %v667_v29, %v651_v46 }
 0x120   : > { %v5800_v29 = vadd.f32 %v666_v2, %v650_v49 }
 0x121   : > { %1051 = vrot.lane.b32.xlu1 %v839_v58, %s4911_s30  ;;  %v800_v51 = vpop.permute.xlu1 %799  ;;  %vm763_vm5 = vcmp.gt.f32.partialorder %v5747_v10, %v5618_v6 }
 0x122   : > { %v841_v22 = vsel %vm761_vm4, %v5650_v44, %v800_v51 }
 0x124   : > { %975 = vrot.lane.b32.xlu2 %v937_v28, %s4911_s30  ;;  %1049 = vrot.lane.b32.xlu0 %v838_v53, %s4911_s30  ;;  %v936_v28 = vsel %vm760_vm2, %v5702_v33, %v5620_v57 }
 0x126   : > { %v5724_v17 = vpop.permute.xlu2 %725  ;;  %v5726_v58 = vpop.permute.xlu0 %721 }
 0x127   : > { %vm762_vm3 = vcmp.gt.f32.partialorder %v5800_v29, %v5726_v58 }
 0x129   : > { %973 = vrot.lane.b32.xlu1 %v936_v28, %s4911_s30  ;;  %v546_v53 = vpop.permute.xlu1 %545 }
 0x12a   : > { %v585_v46 = vsel %vm425_vm7, %v5083_v35, %v546_v53  ;;  %v653_v35 = vmul.f32 %v5779_v15, %v5779_v15 }
 0x12c   : > { %879 = vrot.lane.b32.xlu2 %v583_v38, %s4912_s7  ;;  %1053 = vrot.lane.b32.xlu0 %v840_v24, %s4911_s30  ;;  %v939_v38 = vsel %vm763_vm5, %v5747_v10, %v5618_v6 }
 0x12e   : > { %v5751_v28 = vpop.permute.xlu2 %729  ;;  %v544_v18 = vpop.permute.xlu0 %543 }
 0x131   : > { %877 = vrot.lane.b32.xlu1 %v582_v31, %s4912_s7  ;;  %v802_v11 = vpop.permute.xlu1 %801  ;;  %v843_v31 = vsel %vm763_vm5, %v5717_v50, %v5655_v12 }
 0x132   : > { %v842_v59 = vsel %vm762_vm3, %v5762_v36, %v802_v11 }
 0x134   : > { %979 = vrot.lane.b32.xlu2 %v939_v38, %s4911_s30  ;;  %883 = vrot.lane.b32.xlu0 %v585_v46, %s4912_s7  ;;  %v584_v38 = vsel %vm424_vm8, %v5107_v41, %v544_v18  ;;  %v5812_v46 = vadd.f32 %v669_v39, %v653_v35  ;;  %v938_v41 = vsel %vm762_vm3, %v5800_v29, %v5726_v58 }
 0x135   : > { %v655_v35 = vmul.f32 %v5829_v48, %v5829_v48  ;;  %v671_v39 = vmul.f32 %v5832_v14, %v5832_v14 }
 0x136   : > { %v5788_v21 = vpop.permute.xlu2 %805  ;;  %v5790_v24 = vpop.permute.xlu0 %731  ;;  %vm765_vm6 = vcmp.gt.f32.partialorder %v5812_v46, %v5694_v26 }
 0x137   : > { %7442 = vst [vmem:[#allocation21_spill] sm:$0xff] %v5790_v24  ;;  %v941_v18 = vsel %vm765_vm6, %v5812_v46, %v5694_v26 }
 0x139   : > { %1055 = vrot.lane.b32.xlu1 %v841_v22, %s4911_s30  ;;  %v550_v53 = vpop.permute.xlu1 %549 }
 0x13a   : > { %v587_v2 = vsel %vm427_vm10, %v5145_v54, %v550_v53  ;;  %v5855_v54 = vadd.f32 %v671_v39, %v655_v35  ;;  %v5862_v53 = vld [vmem:[%s4977_s29 + $0x98] sm:$0x3]  ;;  %v654_v39 = vmul.f32 %v5883_v16, %v5883_v16 }
 0x13b   : > { %7444 = vst [vmem:[#allocation23_spill] sm:$0xff] %v5862_v53 }
 0x13c   : > { %1059 = vrot.lane.b32.xlu2 %v843_v31, %s4911_s30  ;;  %881 = vrot.lane.b32.xlu0 %v584_v38, %s4912_s7  ;;  %vm767_vm7 = vcmp.gt.f32.partialorder %v5855_v54, %v5790_v24 }
 0x13e   : > { %v5818_v51 = vpop.permute.xlu2 %735  ;;  %v808_v49 = vpop.permute.xlu0 %807 }
 0x13f   : > { %v845_v11 = vsel %vm765_vm6, %v5779_v15, %v808_v49  ;;  %v5886_v49 = vld [vmem:[%s4977_s29 + $0xb8] sm:$0x3] }
 0x140   : > { %7445 = vst [vmem:[#allocation24_spill] sm:$0xff] %v5886_v49 }
 0x141   : > { %977 = vrot.lane.b32.xlu1 %v938_v41, %s4911_s30  ;;  %v554_v12 = vpop.permute.xlu1 %553 }
 0x142   : > { %v589_v41 = vsel %vm429_vm9, %v5125_v47, %v554_v12  ;;  %v943_v12 = vsel %vm767_vm7, %v5855_v54, %v5790_v24  ;;  %v5960_v24 = vld [vmem:[%s4972_s26 + $0xf8] sm:$0x3] }
 0x143   : > { %v658_v7 = vmul.f32 %v5960_v24, %v5960_v24 }
 0x144   : > { %983 = vrot.lane.b32.xlu2 %v941_v18, %s4911_s30  ;;  %887 = vrot.lane.b32.xlu0 %v587_v2, %s4912_s7  ;;  %v652_v18 = vmul.f32 %v5859_v0, %v5859_v0  ;;  %v668_v2 = vmul.f32 %v5862_v53, %v5862_v53 }
 0x146   : > { %v5849_v22 = vpop.permute.xlu2 %815  ;;  %v812_v31 = vpop.permute.xlu0 %811  ;;  %v5893_v35 = vadd.f32 %v668_v2, %v652_v18  ;;  %v5909_v18 = vld [vmem:[%s4972_s26 + $0xf0] sm:$0xff] }
 0x147   : > { %v5912_v2 = vld [vmem:[%s4977_s29 + $0xf0] sm:$0xff] }
 0x148   : > { %7446 = vst [vmem:[#allocation25_spill] sm:$0xff] %v5912_v2  ;;  %vm764_vm8 = vcmp.gt.f32.partialorder %v5893_v35, %v5724_v17 }
 0x149   : > { %1057 = vrot.lane.b32.xlu1 %v842_v59, %s4911_s30  ;;  %v548_v38 = vpop.permute.xlu1 %547  ;;  %v670_v59 = vmul.f32 %v5886_v49, %v5886_v49  ;;  %v5919_v49 = vld [vmem:[%s4972_s26 + $0xd8] sm:$0x3] }
 0x14c   : > { %891 = vrot.lane.b32.xlu0 %v589_v41, %s4912_s7  ;;  %1063 = vrot.lane.b32.xlu2 %v845_v11, %s4911_s30  ;;  %v586_v41 = vsel %vm426_vm11, %v5119_v45, %v548_v38  ;;  %v847_v11 = vsel %vm767_vm7, %v5829_v48, %v812_v31  ;;  %v5922_v45 = vld [vmem:[%s4977_s29 + $0xd8] sm:$0x3]  ;;  %v5928_v31 = vadd.f32 %v670_v59, %v654_v39 }
 0x14d   : > { %7447 = vst [vmem:[#allocation26_spill] sm:$0xff] %v5922_v45  ;;  %v657_v38 = vmul.f32 %v5909_v18, %v5909_v18  ;;  %v672_v53 = vmul.f32 %v5922_v45, %v5922_v45  ;;  %v940_v48 = vsel %vm764_vm8, %v5893_v35, %v5724_v17  ;;  %v844_v59 = vsel %vm764_vm8, %v5859_v0, %v5788_v21 }
 0x14e   : > { %v5880_v47 = vpop.permute.xlu2 %559  ;;  %v552_v56 = vpop.permute.xlu0 %551  ;;  %vm766_vm9 = vcmp.gt.f32.partialorder %v5928_v31, %v5751_v28 }
 0x151   : > { %987 = vrot.lane.b32.xlu1 %v943_v12, %s4911_s30  ;;  %v810_v12 = vpop.permute.xlu1 %809 }
 0x154   : > { %885 = vrot.lane.b32.xlu0 %v586_v41, %s4912_s7  ;;  %1067 = vrot.lane.b32.xlu2 %v847_v11, %s4911_s30  ;;  %v673_v41 = vmul.f32 %v5912_v2, %v5912_v2  ;;  %v656_v11 = vmul.f32 %v5919_v49, %v5919_v49  ;;  %v588_v2 = vsel %vm428_vm12, %v5167_v61, %v552_v56 }
 0x155   : > { %v942_v61 = vsel %vm766_vm9, %v5928_v31, %v5751_v28 }
 0x156   : > { %v5924_v55 = vpop.permute.xlu2 %963  ;;  %v5926_v37 = vpop.permute.xlu0 %733  ;;  %v5946_v39 = vadd.f32 %v673_v41, %v657_v38  ;;  %v5957_v45 = vadd.f32 %v672_v53, %v656_v11 }
 0x157   : > { %vm7419_vm10 = vcmp.gt.f32.partialorder %v5521_v62, %v5924_v55 }
 0x158   : > { %vm769_vm11 = vcmp.gt.f32.partialorder %v5946_v39, %v5818_v51  ;;  %vm768_vm12 = vcmp.gt.f32.partialorder %v5957_v45, %v5926_v37 }
 0x159   : > { %981 = vrot.lane.b32.xlu1 %v940_v48, %s4911_s30  ;;  %v5963_v48 = vld [vmem:[%s4977_s29 + $0xf8] sm:$0x3]  ;;  %v5980_v53 = vpop.permute.xlu1 %737 }
 0x15a   : > { %v674_v1 = vmul.f32 %v5963_v48, %v5963_v48 }
 0x15c   : > { %1061 = vrot.lane.b32.xlu2 %v844_v59, %s4911_s30  ;;  %889 = vrot.lane.b32.xlu0 %v588_v2, %s4912_s7  ;;  %v945_v59 = vsel %vm769_vm11, %v5946_v39, %v5818_v51 }
 0x15e   : > { %v1044_v38 = vpop.permute.xlu2 %1043  ;;  %v814_v21 = vpop.permute.xlu0 %813 }
 0x15f   : > { %v1091_v56 = vsel %vm7419_vm10, %v5503_v40, %v1044_v38  ;;  %v944_v40 = vsel %vm768_vm12, %v5957_v45, %v5926_v37  ;;  %v5999_v38 = vadd.f32 %v674_v1, %v658_v7  ;;  %v848_v1 = vsel %vm768_vm12, %v5919_v49, %v814_v21 }
 0x160   : > { %v1209_v2 = vrot.slane %v1091_v56, 2  ;;  %v1210_v41 = vrot.slane %v1091_v56, 4  ;;  %v1211_v11 = vrot.slane %v1091_v56, 6  ;;  %1233 = vst [vmem:[#allocation1] ss:$4 sm:$0xff] %v1091_v56 }
 0x161   : > { %985 = vrot.lane.b32.xlu1 %v942_v61, %s4911_s30  ;;  %vm770_vm10 = vcmp.gt.f32.partialorder %v5999_v38, %v5980_v53 }
 0x162   : > { %1237 = vst [vmem:[#allocation1 + $0x2] ss:$4 sm:$0xff] %v1210_v41  ;;  %v846_v41 = vsel %vm766_vm9, %v5883_v16, %v810_v12  ;;  %v946_v7 = vsel %vm770_vm10, %v5999_v38, %v5980_v53 }
 0x163   : > { %1239 = vst [vmem:[#allocation1 + $0x3] ss:$4 sm:$0xff] %v1211_v11  ;;  %v818_v11 = vpop.permute.xlu1 %817 }
 0x164   : > { %1235 = vst [vmem:[#allocation1 + $0x1] ss:$4 sm:$0xff] %v1209_v2  ;;  %991 = vrot.lane.b32.xlu2 %v945_v59, %s4911_s30  ;;  %989 = vrot.lane.b32.xlu0 %v944_v40, %s4911_s30  ;;  %v849_v59 = vsel %vm769_vm11, %v5909_v18, %v5849_v22 }
 0x166   : > { %v1048_v61 = vpop.permute.xlu2 %1047  ;;  %v868_v56 = vpop.permute.xlu0 %867 }
 0x167   : > { %v915_v21 = vsel %vm755_vm14, %v5506_v42, %v868_v56  ;;  %v7449_v56 = vld [vmem:[#allocation4_spill] sm:$0xff] }
 0x168   : > { %v592_v8 = vsel %vm432_vm15, %v7449_v56, %v5880_v47  ;;  %vm7459_vm15 = vcmp.gt.f32.partialorder %v5595_v30, %v5561_v27 }
 0x169   : > { %1065 = vrot.lane.b32.xlu1 %v846_v41, %s4911_s30 }
 0x16b   : > { %v872_v40 = vpop.permute.xlu1 %871 }
 0x16c   : > { %993 = vrot.lane.b32.xlu2 %v946_v7, %s4911_s30  ;;  %1069 = vrot.lane.b32.xlu0 %v848_v1, %s4911_s30  ;;  %v850_v1 = vsel %vm770_vm10, %v5960_v24, %v818_v11 }
 0x16e   : > { %v6021_v2 = vpop.permute.xlu2 %971  ;;  %v558_v12 = vpop.permute.xlu0 %557 }
 0x16f   : > { %v591_v41 = vsel %vm431_vm13, %v5179_v4, %v558_v12  ;;  %v7452_v12 = vld [vmem:[#allocation5_spill] sm:$0xff] }
 0x171   : > { %1071 = vrot.lane.b32.xlu1 %v849_v59, %s4911_s30  ;;  %v7453_v59 = vld [vmem:[#allocation7_spill] sm:$0xff] }
 0x174   : > { %1123 = vrot.lane.b32.xlu2 %v915_v21, %s4911_s30  ;;  %895 = vrot.lane.b32.xlu0 %v591_v41, %s4912_s7  ;;  %v7454_v21 = vld [vmem:[#allocation8_spill] sm:$0xff] }
 0x175   : > { %vm7455_vm13 = vcmp.gt.f32.partialorder %v7453_v59, %v7454_v21  ;;  %v7457_v21 = vld [vmem:[#allocation13_spill] sm:$0xff] }
 0x176   : > { %v6039_v7 = vpop.permute.xlu2 %969  ;;  %v556_v22 = vpop.permute.xlu0 %555 }
 0x177   : > { %7448 = vst [vmem:[#allocation27_spill] sm:$0xff] %v6039_v7  ;;  %v590_v41 = vsel %vm7455_vm13, %v7452_v12, %v556_v22  ;;  %v6067_v22 = vld.sshfl [vmem:[#allocation1] sm:$0xff pattern:$0x73625140]  ;;  %v7456_v12 = vld [vmem:[#allocation10_spill] sm:$0xff]  ;;  %vm1015_vm13 = vcmp.gt.f32.partialorder %v5606_v19, %v6021_v2 }
 0x179   : > { %1073 = vrot.lane.b32.xlu1 %v850_v1, %s4911_s30 }
 0x17b   : > { %v6046_v43 = vpop.permute.xlu1 %967 }
 0x17c   : > { %vm1013_vm14 = vcmp.gt.f32.partialorder %v5567_v23, %v6046_v43  ;;  %897 = vrot.lane.b32.xlu0 %v592_v8, %s4912_s7  ;;  %893 = vrot.lane.b32.xlu2 %v590_v41, %s4912_s7  ;;  %v917_v8 = vsel %vm757_vm0, %v7456_v12, %v872_v40 }
 0x17d   : > { %v1093_v11 = vsel %vm1013_vm14, %v5544_v9, %v1048_v61 }
 0x17e   : > { %v1213_v1 = vrot.slane %v1093_v11, 4  ;;  %v1214_v13 = vrot.slane %v1093_v11, 6  ;;  %1243 = vst [vmem:[#allocation1 + $0x21] ss:$4 sm:$0xff] %v1093_v11  ;;  %v6065_v47 = vpop.permute.xlu2 %975  ;;  %v870_v56 = vpop.permute.xlu0 %869  ;;  %v1212_v4 = vrot.slane %v1093_v11, 2  ;;  %v7458_v11 = vld [vmem:[#allocation11_spill] sm:$0xff] }
 0x17f   : > { %v916_v60 = vsel %vm7459_vm15, %v7458_v11, %v870_v56  ;;  %v7461_v56 = vld [vmem:[#allocation15_spill] sm:$0xff] }
 0x180   : > { %1247 = vst [vmem:[#allocation1 + $0x23] ss:$4 sm:$0xff] %v1213_v1 }
 0x181   : > { %1250 = vst [vmem:[#allocation1] ss:$4 sm:$0xff] %v1214_v13  ;;  %1127 = vrot.lane.b32.xlu1 %v917_v8, %s4911_s30  ;;  %v7462_v8 = vld [vmem:[#allocation16_spill] sm:$0xff] }
 0x182   : > { %1245 = vst [vmem:[#allocation1 + $0x22] ss:$4 sm:$0xff] %v1212_v4  ;;  %v7460_v4 = vld [vmem:[#allocation17_spill] sm:$0xff] }
 0x183   : > { %v6074_v9 = vpop.permute.xlu1 %965 }
 0x184   : > { %vm1012_vm0 = vcmp.gt.f32.partialorder %v5595_v30, %v6074_v9 }
 0x186   : > { %v880_v61 = vpop.permute.xlu2 %879  ;;  %v876_v59 = vpop.permute.xlu0 %875 }
 0x187   : > { %v919_v41 = vsel %vm759_vm1, %v7457_v21, %v876_v59  ;;  %v921_v27 = vsel %vm761_vm4, %v7460_v4, %v880_v61  ;;  %vm7463_vm1 = vcmp.gt.f32.partialorder %v5645_v3, %v7462_v8  ;;  %vm1014_vm4 = vcmp.gt.f32.partialorder %v5645_v3, %v6039_v7  ;;  %v7465_v8 = vld [vmem:[#allocation14_spill] sm:$0xff] }
 0x188   : > { %1131 = vrot.lane.b32.xlu2 %v919_v41, %s4911_s30  ;;  %v7464_v41 = vld [vmem:[#allocation12_spill] sm:$0xff]  ;;  %v7467_v7 = vld [vmem:[#allocation18_spill] sm:$0xff] }
 0x189   : > { %1125 = vrot.lane.b32.xlu1 %v916_v60, %s4911_s30 }
 0x18b   : > { %v1046_v40 = vpop.permute.xlu1 %1045 }
 0x18c   : > { %v1092_v1 = vsel %vm1012_vm0, %v5556_v5, %v1046_v40 }
 0x18d   : > { %1241 = vst [vmem:[#allocation1 + $0x20] ss:$4 sm:$0xff] %v1092_v1 }
 0x18e   : > { %v6092_v63 = vpop.permute.xlu2 %979  ;;  %v874_v13 = vpop.permute.xlu0 %873 }
 0x18f   : > { %v918_v59 = vsel %vm7463_vm1, %v7461_v56, %v874_v13  ;;  %vm1017_vm1 = vcmp.gt.f32.partialorder %v5686_v32, %v6065_v47 }
 0x190   : > { %1135 = vrot.lane.b32.xlu2 %v921_v27, %s4911_s30  ;;  %1129 = vrot.lane.b32.xlu0 %v918_v59, %s4911_s30 }
 0x193   : > { %v1052_v5 = vpop.permute.xlu1 %1051 }
 0x194   : > { %v1095_v60 = vsel %vm1015_vm13, %v7464_v41, %v1052_v5  ;;  %v1249_v1 = vld.sshfl [vmem:[#allocation1 + $0x20] sm:$0xff pattern:$0x73625140] }
 0x195   : > { %v1215_v20 = vrot.slane %v1095_v60, 2  ;;  %v1216_v61 = vrot.slane %v1095_v60, 4  ;;  %v1217_v40 = vrot.slane %v1095_v60, 6  ;;  %1252 = vst [vmem:[#allocation1 + $0x2] ss:$4 sm:$0xff] %v1095_v60 }
 0x196   : > { %v1060_v13 = vpop.permute.xlu2 %1059  ;;  %v1050_v27 = vpop.permute.xlu0 %1049 }
 0x197   : > { %1255 = vst [vmem:[#allocation1 + $0x21] ss:$4 sm:$0xff] %v1217_v40  ;;  %v1094_v59 = vsel %vm1014_vm4, %v7465_v8, %v1050_v27  ;;  %v7468_v8 = vld [vmem:[#allocation20_spill] sm:$0xff] }
 0x198   : > { %1253 = vst [vmem:[#allocation1 + $0x3] ss:$4 sm:$0xff] %v1215_v20 }
 0x199   : > { %1254 = vst [vmem:[#allocation1 + $0x20] ss:$4 sm:$0xff] %v1216_v61 }
 0x19a   : > { %1251 = vst [vmem:[#allocation1 + $0x1] ss:$4 sm:$0xff] %v1094_v59 }
 0x19b   : > { %v6116_v5 = vpop.permute.xlu1 %973 }
 0x19c   : > { %7466 = vst [vmem:[#allocation4_spill] sm:$0xff] %v6116_v5  ;;  %vm1016_vm15 = vcmp.gt.f32.partialorder %v5702_v33, %v6116_v5 }
 0x19e   : > { %v6120_v41 = vpop.permute.xlu2 %983  ;;  %v1054_v60 = vpop.permute.xlu0 %1053 }
 0x19f   : > { %v1096_v40 = vsel %vm1016_vm15, %v5669_v34, %v1054_v60 }
 0x1a0   : > { %1256 = vst [vmem:[#allocation1 + $0x22] ss:$4 sm:$0xff] %v1096_v40 }
 0x1a3   : > { %v878_v4 = vpop.permute.xlu1 %877 }
 0x1a4   : > { %v920_v20 = vsel %vm760_vm2, %v7467_v7, %v878_v4  ;;  %vm1019_vm2 = vcmp.gt.f32.partialorder %v5747_v10, %v6092_v63 }
 0x1a5   : > { %1133 = vrot.lane.b32.xlu1 %v920_v20, %s4911_s30  ;;  %v1258_v20 = vld.sshfl [vmem:[#allocation1] sm:$0xff pattern:$0x73625140] }
 0x1a6   : > { %v1064_v61 = vpop.permute.xlu2 %1063  ;;  %v884_v27 = vpop.permute.xlu0 %883 }
 0x1a7   : > { %v923_v59 = vsel %vm763_vm5, %v7468_v8, %v884_v27  ;;  %vm1021_vm5 = vcmp.gt.f32.partialorder %v5812_v46, %v6120_v41 }
 0x1a8   : > { %1139 = vrot.lane.b32.xlu0 %v923_v59, %s4911_s30 }
 0x1ab   : > { %v1056_v34 = vpop.permute.xlu1 %1055 }
 0x1ac   : > { %v1097_v57 = vsel %vm1017_vm1, %v5650_v44, %v1056_v34  ;;  %v1099_v44 = vsel %vm1019_vm2, %v5717_v50, %v1060_v13  ;;  %v1101_v50 = vsel %vm1021_vm5, %v5779_v15, %v1064_v61 }
 0x1ad   : > { %v1218_v4 = vrot.slane %v1097_v57, 2  ;;  %v1219_v60 = vrot.slane %v1097_v57, 4  ;;  %v1220_v40 = vrot.slane %v1097_v57, 6  ;;  %1257 = vst [vmem:[#allocation1 + $0x23] ss:$4 sm:$0xff] %v1097_v57  ;;  %v1221_v59 = vrot.slane %v1099_v44, 2 }
 0x1ae   : > { %v1068_v5 = vpop.permute.xlu2 %1067  ;;  %v882_v33 = vpop.permute.xlu0 %881  ;;  %v1223_v34 = vrot.slane %v1099_v44, 6  ;;  %v1225_v61 = vrot.slane %v1101_v50, 4 }
 0x1af   : > { %1260 = vst [vmem:[#allocation1] ss:$4 sm:$0xff] %v1218_v4  ;;  %v922_v6 = vsel %vm762_vm3, %v5765_v52, %v882_v33  ;;  %v1222_v33 = vrot.slane %v1099_v44, 4 }
 0x1b0   : > { %1261 = vst [vmem:[#allocation1 + $0x1] ss:$4 sm:$0xff] %v1219_v60  ;;  %1290 = vrot.lane.b32.xlu0 %v6067_v22, %s4912_s7  ;;  %1137 = vrot.lane.b32.xlu1 %v922_v6, %s4911_s30 }
 0x1b1   : > { %1262 = vst [vmem:[#allocation1 + $0x2] ss:$4 sm:$0xff] %v1220_v40 }
 0x1b3   : > { %v6155_v27 = vpop.permute.xlu1 %977 }
 0x1b4   : > { %v1259_v58 = vld.sshfl [vmem:[#allocation1 + $0x20] sm:$0xff pattern:$0x73625140]  ;;  %vm1018_vm3 = vcmp.gt.f32.partialorder %v5800_v29, %v6155_v27 }
 0x1b5   : > { %1264 = vst [vmem:[#allocation1 + $0x20] ss:$4 sm:$0xff] %v1099_v44  ;;  %v7472_v44 = vld [vmem:[#allocation24_spill] sm:$0xff] }
 0x1b6   : > { %1265 = vst [vmem:[#allocation1 + $0x21] ss:$4 sm:$0xff] %v1221_v59  ;;  %v1062_v57 = vpop.permute.xlu2 %1061  ;;  %v888_v4 = vpop.permute.xlu0 %887 }
 0x1b7   : > { %1266 = vst [vmem:[#allocation1 + $0x22] ss:$4 sm:$0xff] %v1222_v33  ;;  %v925_v22 = vsel %vm765_vm6, %v5782_v25, %v888_v4  ;;  %v1224_v33 = vrot.slane %v1101_v50, 2 }
 0x1b8   : > { %1267 = vst [vmem:[#allocation1 + $0x23] ss:$4 sm:$0xff] %v1223_v34  ;;  %1292 = vrot.lane.b32.xlu0 %v1249_v1, %s4912_s7  ;;  %1143 = vrot.lane.b32.xlu2 %v925_v22, %s4911_s30  ;;  %v1226_v1 = vrot.slane %v1101_v50, 6  ;;  %v7470_v34 = vld [vmem:[#allocation22_spill] sm:$0xff] }
 0x1bb   : > { %v1058_v13 = vpop.permute.xlu1 %1057 }
 0x1bc   : > { %v1098_v26 = vsel %vm1018_vm3, %v5762_v36, %v1058_v13 }
 0x1bd   : > { %1263 = vst [vmem:[#allocation1 + $0x3] ss:$4 sm:$0xff] %v1098_v26  ;;  %v7471_v26 = vld [vmem:[#allocation23_spill] sm:$0xff] }
 0x1be   : > { %v6175_v60 = vpop.permute.xlu2 %991  ;;  %v892_v40 = vpop.permute.xlu0 %891 }
 0x1bf   : > { %v1269_v6 = vld.sshfl [vmem:[#allocation1 + $0x20] sm:$0xff pattern:$0x73625140]  ;;  %v927_v15 = vsel %vm767_vm7, %v5832_v14, %v892_v40 }
 0x1c0   : > { %1274 = vst [vmem:[#allocation1 + $0x20] ss:$4 sm:$0xff] %v1226_v1  ;;  %1296 = vrot.lane.b32.xlu0 %v1259_v58, %s4912_s7  ;;  %1147 = vrot.lane.b32.xlu1 %v927_v15, %s4911_s30 }
 0x1c3   : > { %v6183_v59 = vpop.permute.xlu1 %987 }
 0x1c4   : > { %v1268_v36 = vld.sshfl [vmem:[#allocation1] sm:$0xff pattern:$0x73625140]  ;;  %vm1023_vm6 = vcmp.gt.f32.partialorder %v5855_v54, %v6183_v59 }
 0x1c5   : > { %1273 = vst [vmem:[#allocation1 + $0x3] ss:$4 sm:$0xff] %v1225_v61  ;;  %v1103_v4 = vsel %vm1023_vm6, %v7470_v34, %v1068_v5 }
 0x1c6   : > { %1271 = vst [vmem:[#allocation1 + $0x1] ss:$4 sm:$0xff] %v1101_v50  ;;  %v1227_v22 = vrot.slane %v1103_v4, 2  ;;  %v6191_v13 = vpop.permute.xlu2 %993  ;;  %v886_v58 = vpop.permute.xlu0 %885  ;;  %v1229_v34 = vrot.slane %v1103_v4, 6 }
 0x1c7   : > { %1272 = vst [vmem:[#allocation1 + $0x2] ss:$4 sm:$0xff] %v1224_v33  ;;  %v924_v1 = vsel %vm764_vm8, %v7471_v26, %v886_v58  ;;  %v1228_v33 = vrot.slane %v1103_v4, 4 }
 0x1c8   : > { %1276 = vst [vmem:[#allocation1 + $0x22] ss:$4 sm:$0xff] %v1103_v4  ;;  %1141 = vrot.lane.b32.xlu2 %v924_v1, %s4911_s30  ;;  %v7473_v4 = vld [vmem:[#allocation26_spill] sm:$0xff] }
 0x1c9   : > { %1277 = vst [vmem:[#allocation1 + $0x23] ss:$4 sm:$0xff] %v1227_v22 }
 0x1cb   : > { %v6198_v40 = vpop.permute.xlu1 %981 }
 0x1cc   : > { %vm1020_vm7 = vcmp.gt.f32.partialorder %v5893_v35, %v6198_v40 }
 0x1cd   : > { %v1100_v5 = vsel %vm1020_vm7, %v5859_v0, %v1062_v57 }
 0x1ce   : > { %1270 = vst [vmem:[#allocation1] ss:$4 sm:$0xff] %v1100_v5  ;;  %v890_v50 = vpop.permute.xlu0 %889  ;;  %v1124_v15 = vpop.permute.xlu2 %1123 }
 0x1cf   : > { %v926_v17 = vsel %vm766_vm9, %v7472_v44, %v890_v50 }
 0x1d0   : > { %1294 = vrot.lane.b32.xlu2 %v1258_v20, %s4912_s7  ;;  %1145 = vrot.lane.b32.xlu1 %v926_v17, %s4911_s30 }
 0x1d3   : > { %v6212_v61 = vpop.permute.xlu1 %985 }
 0x1d4   : > { %vm7423_vm8 = vcmp.gt.f32.partialorder %v5928_v31, %v6212_v61 }
 0x1d5   : > { %v1278_v22 = vld.sshfl [vmem:[#allocation1] sm:$0xff pattern:$0x73625140] }
 0x1d6   : > { %1280 = vst [vmem:[#allocation1] ss:$4 sm:$0xff] %v1228_v33  ;;  %1302 = vrot.lane.b32.xlu0 %v1278_v22, %s4912_s7  ;;  %v6215_v0 = vpop.permute.xlu0 %989  ;;  %v894_v28 = vpop.permute.xlu2 %893 }
 0x1d7   : > { %1281 = vst [vmem:[#allocation1 + $0x1] ss:$4 sm:$0xff] %v1229_v34  ;;  %v928_v58 = vsel %vm768_vm12, %v7473_v4, %v894_v28  ;;  %vm7424_vm9 = vcmp.gt.f32.partialorder %v5957_v45, %v6215_v0  ;;  %vm7475_vm12 = vcmp.gt.f32.partialorder %v5521_v62, %v5924_v55 }
 0x1d8   : > { %1300 = vrot.lane.b32.xlu2 %v1269_v6, %s4912_s7  ;;  %1298 = vrot.lane.b32.xlu1 %v1268_v36, %s4912_s7 }
 0x1db   : > { %v1066_v20 = vpop.permute.xlu1 %1065 }
 0x1dc   : > { %v1102_v57 = vsel %vm7423_vm8, %v5883_v16, %v1066_v20  ;;  %vm1025_vm8 = vcmp.gt.f32.partialorder %v5946_v39, %v6175_v60 }
 0x1dd   : > { %1275 = vst [vmem:[#allocation1 + $0x21] ss:$4 sm:$0xff] %v1102_v57 }
 0x1de   : > { %1149 = vrot.lane.b32.xlu0 %v928_v58, %s4911_s30  ;;  %v1070_v6 = vpop.permute.xlu0 %1069 }
 0x1df   : > { %v1104_v36 = vsel %vm7424_vm9, %v5919_v49, %v1070_v6  ;;  %v7474_v49 = vld [vmem:[#allocation25_spill] sm:$0xff]  ;;  %vm1026_vm9 = vcmp.gt.f32.partialorder %v5999_v38, %v6191_v13 }
 0x1e0   : > { %1282 = vst [vmem:[#allocation1 + $0x2] ss:$4 sm:$0xff] %v1104_v36 }
 0x1e2   : > { %v1132_v62 = vpop.permute.xlu2 %1131 }
 0x1e3   : > { %v1072_v16 = vpop.permute.xlu1 %1071  ;;  %v1175_v55 = vsel %vm1015_vm13, %v7457_v21, %v1132_v62  ;;  %vm7480_vm13 = vcmp.gt.f32.partialorder %v5928_v31, %v6212_v61 }
 0x1e4   : > { %v1105_v37 = vsel %vm1025_vm8, %v5909_v18, %v1072_v16  ;;  %v1279_v1 = vld.sshfl [vmem:[#allocation1 + $0x20] sm:$0xff pattern:$0x73625140]  ;;  %v1171_v18 = vsel %vm7475_vm12, %v5506_v42, %v1124_v15  ;;  %v1353_v53 = vrot.slane %v1175_v55, 2  ;;  %v1354_v21 = vrot.slane %v1175_v55, 4 }
 0x1e5   : > { %v1230_v5 = vrot.slane %v1105_v37, 2  ;;  %v1231_v50 = vrot.slane %v1105_v37, 4  ;;  %v1232_v17 = vrot.slane %v1105_v37, 6  ;;  %1283 = vst [vmem:[#allocation1 + $0x3] ss:$4 sm:$0xff] %v1105_v37  ;;  %1304 = vrot.lane.b32.xlu1 %v1279_v1, %s4912_s7  ;;  %v1347_v28 = vrot.slane %v1171_v18, 2 }
 0x1e6   : > { %v896_v33 = vpop.permute.xlu0 %895  ;;  %v1348_v57 = vrot.slane %v1171_v18, 4  ;;  %v1349_v58 = vrot.slane %v1171_v18, 6 }
 0x1e7   : > { %1284 = vst [vmem:[#allocation1 + $0x20] ss:$4 sm:$0xff] %v1230_v5  ;;  %v929_v34 = vsel %vm769_vm11, %v7474_v49, %v896_v33  ;;  %vm1189_vm11 = vcmask 59392  }
 0x1e8   : > { %1285 = vst [vmem:[#allocation1 + $0x21] ss:$4 sm:$0xff] %v1231_v50  ;;  %1151 = vrot.lane.b32.xlu2 %v929_v34, %s4911_s30  ;;  %v7477_v34 = vld [vmem:[#allocation17_spill] sm:$0xff] }
 0x1e9   : > { %1286 = vst [vmem:[#allocation1 + $0x22] ss:$4 sm:$0xff] %v1232_v17  ;;  %v1355_v17 = vrot.slane %v1175_v55, 6 }
 0x1ea   : > { %v1136_v50 = vpop.permute.xlu2 %1135 }
 0x1eb   : > { %v1074_v22 = vpop.permute.xlu1 %1073  ;;  %v1177_v30 = vsel %vm1017_vm1, %v7477_v34, %v1136_v50  ;;  %vm1833_vm1 = vcmask 130048  }
 0x1ec   : > { %v1288_v20 = vld.sshfl [vmem:[#allocation1] sm:$0xff pattern:$0x73625140]  ;;  %v1106_v51 = vsel %vm1026_vm9, %v5960_v24, %v1074_v22  ;;  %v1357_v9 = vrot.slane %v1177_v30, 4  ;;  %v1356_v3 = vrot.slane %v1177_v30, 2 }
 0x1ed   : > { %1371 = vst [vmem:[#allocation1] ss:$4 sm:$0xff] %v1171_v18  ;;  %v1358_v18 = vrot.slane %v1177_v30, 6 }
 0x1ee   : > { %1373 = vst [vmem:[#allocation1 + $0x1] ss:$4 sm:$0xff] %v1347_v28  ;;  %v898_v6 = vpop.permute.xlu0 %897 }
 0x1ef   : > { %1375 = vst [vmem:[#allocation1 + $0x2] ss:$4 sm:$0xff] %v1348_v57  ;;  %v930_v42 = vsel %vm770_vm10, %v5963_v48, %v898_v6  ;;  %vm1187_vm10 = vcmask 64512  }
 0x1f0   : > { %1377 = vst [vmem:[#allocation1 + $0x3] ss:$4 sm:$0xff] %v1349_v58  ;;  %1306 = vrot.lane.b32.xlu2 %v1288_v20, %s4912_s7  ;;  %1153 = vrot.lane.b32.xlu1 %v930_v42, %s4911_s30 }
 0x1f1   : > { %1287 = vst [vmem:[#allocation1 + $0x23] ss:$4 sm:$0xff] %v1106_v51 }
 0x1f3   : > { %v1128_v24 = vpop.permute.xlu1 %1127 }
 0x1f4   : > { %v1173_v15 = vsel %vm1013_vm14, %v7456_v12, %v1128_v24  ;;  %vm1320_vm14 = vcmask 31744  }
 0x1f5   : > { %v1350_v16 = vrot.slane %v1173_v15, 2  ;;  %v1351_v1 = vrot.slane %v1173_v15, 4  ;;  %v1352_v5 = vrot.slane %v1173_v15, 6 }
 0x1f7   : > { %v1386_v36 = vld.sshfl [vmem:[#allocation1] sm:$0xff pattern:$0x73625140] }
 0x1f8   : > { %1391 = vst [vmem:[#allocation1 + $0x3] ss:$4 sm:$0xff] %v1353_v53  ;;  %v1289_v37 = vld.sshfl [vmem:[#allocation1 + $0x20] sm:$0xff pattern:$0x73625140] }
 0x1f9   : > { %1390 = vst [vmem:[#allocation1 + $0x2] ss:$4 sm:$0xff] %v1175_v55  ;;  %1308 = vrot.lane.b32.xlu0 %v1289_v37, %s4912_s7 }
 0x1fa   : > { %1381 = vst [vmem:[#allocation1 + $0x21] ss:$4 sm:$0xff] %v1173_v15 }
 0x1fb   : > { %1383 = vst [vmem:[#allocation1 + $0x22] ss:$4 sm:$0xff] %v1350_v16  ;;  %v1126_v19 = vpop.permute.xlu1 %1125 }
 0x1fc   : > { %1385 = vst [vmem:[#allocation1 + $0x23] ss:$4 sm:$0xff] %v1351_v1  ;;  %v1172_v23 = vsel %vm1012_vm0, %v7458_v11, %v1126_v19  ;;  %v4913_v11 = vmov 0.0   ;;  %vm1438_vm0 = vcmask 64544  }
 0x1fd   : > { %1388 = vst [vmem:[#allocation1] ss:$4 sm:$0xff] %v1352_v5 }
 0x1fe   : > { %1379 = vst [vmem:[#allocation1 + $0x20] ss:$4 sm:$0xff] %v1172_v23 }
 0x1ff   : > { %1188 = vst.msk [vmem:[#allocation2] sm:$0xff] %vm1187_vm10, %v4913_v11 }
 0x200   : > { %1190 = vst.msk [vmem:[#allocation2 + $0x8] sm:$0x7] %vm1189_vm11, %v4913_v11 }
 0x201   : > { %1191 = vst.msk [vmem:[#allocation2 + $0x5b] sm:$0xff] %vm1187_vm10, %v4913_v11 }
 0x202   : > { %v1130_v2 = vpop.permute.xlu0 %1129  ;;  %1192 = vst.msk [vmem:[#allocation2 + $0x63] sm:$0x7] %vm1189_vm11, %v4913_v11 }
 0x203   : > { %v1174_v12 = vsel %vm1014_vm4, %v7461_v56, %v1130_v2  ;;  %vm7481_vm4 = vcmp.gt.f32.partialorder %v5957_v45, %v6215_v0 }
 0x204   : > { %1389 = vst [vmem:[#allocation1 + $0x1] ss:$4 sm:$0xff] %v1174_v12 }
 0x205   : > { %v6281_v33 = vld.sshfl [vmem:[#allocation1 + $0x20] sm:$0xff pattern:$0x73625140] }
 0x206   : > { %1392 = vst [vmem:[#allocation1 + $0x20] ss:$4 sm:$0xff] %v1354_v21 }
 0x207   : > { %1393 = vst [vmem:[#allocation1 + $0x21] ss:$4 sm:$0xff] %v1355_v17  ;;  %v1469_v27 = vld [vmem:[#allocation2 + $0x2] sm:$0xff] }
 0x208   : > { %1395 = vst [vmem:[#allocation1 + $0x23] ss:$4 sm:$0xff] %v1177_v30  ;;  %v1459_v53 = vld [vmem:[#allocation2 + $0x1] sm:$0xff] }
 0x20b   : > { %v1396_v56 = vld.sshfl [vmem:[#allocation1] sm:$0xff pattern:$0x73625140] }
 0x20c   : > { %1399 = vst [vmem:[#allocation1 + $0x1] ss:$4 sm:$0xff] %v1357_v9 }
 0x20d   : > { %1398 = vst [vmem:[#allocation1] ss:$4 sm:$0xff] %v1356_v3 }
 0x20e   : > { %1400 = vst [vmem:[#allocation1 + $0x2] ss:$4 sm:$0xff] %v1358_v18 }
 0x212   : > { %v1144_v20 = vpop.permute.xlu2 %1143 }
 0x213   : > { %v1181_v10 = vsel %vm1021_vm5, %v5782_v25, %v1144_v20  ;;  %vm1855_vm5 = vcmask 261120  }
 0x214   : > { %v1363_v16 = vrot.slane %v1181_v10, 4  ;;  %v1364_v1 = vrot.slane %v1181_v10, 6 }
 0x217   : > { %v1134_v32 = vpop.permute.xlu1 %1133 }
 0x218   : > { %v1176_v28 = vsel %vm1016_vm15, %v7467_v7, %v1134_v32  ;;  %vm1971_vm15 = vcmask 1043456  }
 0x219   : > { %1394 = vst [vmem:[#allocation1 + $0x22] ss:$4 sm:$0xff] %v1176_v28 }
 0x21a   : > { %v1140_v57 = vpop.permute.xlu0 %1139 }
 0x21b   : > { %v1179_v58 = vsel %vm1019_vm2, %v7468_v8, %v1140_v57  ;;  %vm1844_vm2 = vcmask 195584  }
 0x21c   : > { %v1359_v6 = vrot.slane %v1179_v58, 2  ;;  %v1360_v42 = vrot.slane %v1179_v58, 4  ;;  %v1361_v62 = vrot.slane %v1179_v58, 6 }
 0x220   : > { %v1397_v51 = vld.sshfl [vmem:[#allocation1 + $0x20] sm:$0xff pattern:$0x73625140] }
 0x221   : > { %1402 = vst [vmem:[#allocation1 + $0x20] ss:$4 sm:$0xff] %v1179_v58 }
 0x222   : > { %1403 = vst [vmem:[#allocation1 + $0x21] ss:$4 sm:$0xff] %v1359_v6  ;;  %v1138_v55 = vpop.permute.xlu1 %1137  ;;  %v1142_v24 = vpop.permute.xlu2 %1141 }
 0x223   : > { %1404 = vst [vmem:[#allocation1 + $0x22] ss:$4 sm:$0xff] %v1360_v42  ;;  %v1178_v7 = vsel %vm1018_vm3, %v5765_v52, %v1138_v55  ;;  %v1291_v15 = vpop.permute.xlu0 %1290  ;;  %v1180_v52 = vsel %vm1020_vm7, %v7471_v26, %v1142_v24  ;;  %vm1866_vm3 = vcmask 326656   ;;  %vm1888_vm7 = vcmask 457728  }
 0x224   : > { %1405 = vst [vmem:[#allocation1 + $0x23] ss:$4 sm:$0xff] %v1361_v62 }
 0x225   : > { %1401 = vst [vmem:[#allocation1 + $0x3] ss:$4 sm:$0xff] %v1178_v7 }
 0x226   : > { %1321 = vst.msk [vmem:[#allocation2 + $0xb] sm:$0xff] %vm1320_vm14, %v1291_v15 }
 0x227   : > { %1439 = vst.msk [vmem:[#allocation2 + $0xb] sm:$0xff] %vm1438_vm0, %v1386_v36  ;;  %v1362_v36 = vrot.slane %v1181_v10, 2 }
 0x22a   : > { %v1295_v63 = vpop.permute.xlu2 %1294 }
 0x22b   : > { %1323 = vst.msk [vmem:[#allocation2 + $0x1b] sm:$0xff] %vm1320_vm14, %v1295_v63  ;;  %v1293_v8 = vpop.permute.xlu0 %1292  ;;  %v1407_v40 = vld.sshfl [vmem:[#allocation1 + $0x20] sm:$0xff pattern:$0x73625140] }
 0x22c   : > { %v6312_v29 = vld.sshfl [vmem:[#allocation1] sm:$0xff pattern:$0x73625140]  ;;  %1441 = vst.msk [vmem:[#allocation2 + $0x1b] sm:$0xff] %vm1438_vm0, %v1396_v56 }
 0x22d   : > { %1408 = vst [vmem:[#allocation1] ss:$4 sm:$0xff] %v1180_v52 }
 0x22e   : > { %1409 = vst [vmem:[#allocation1 + $0x1] ss:$4 sm:$0xff] %v1181_v10  ;;  %v1470_v25 = vld [vmem:[#allocation2 + $0xa] sm:$0xff] }
 0x22f   : > { %v1460_v46 = vld [vmem:[#allocation2 + $0x9] sm:$0xff]  ;;  %1410 = vst [vmem:[#allocation1 + $0x2] ss:$4 sm:$0xff] %v1362_v36  ;;  %v4705_v41 = vpack.i.bf16 %v1470_v25, %v1469_v27 }
 0x230   : > { %v4700_v37 = vpack.i.bf16 %v1460_v46, %v1459_v53  ;;  %1411 = vst [vmem:[#allocation1 + $0x3] ss:$4 sm:$0xff] %v1363_v16  ;;  %v1480_v12 = vld [vmem:[#allocation2 + $0xb] sm:$0xff] }
 0x231   : > { %1322 = vst.msk [vmem:[#allocation2 + $0x13] sm:$0xff] %vm1320_vm14, %v1293_v8  ;;  %4706 = vrot.lane.b32.xlu2 %v4705_v41, %s4914_s8 }
 0x232   : > { %4701 = vrot.lane.b32.xlu1 %v4700_v37, %s4915_s9  ;;  %1440 = vst.msk [vmem:[#allocation2 + $0x13] sm:$0xff] %vm1438_vm0, %v6281_v33  ;;  %v1148_v35 = vpop.permute.xlu1 %1147  ;;  %v1301_v26 = vpop.permute.xlu2 %1300 }
 0x233   : > { %v1183_v5 = vsel %vm1023_vm6, %v5832_v14, %v1148_v35  ;;  %1326 = vst.msk [vmem:[#allocation2 + $0x33] sm:$0xff] %vm1320_vm14, %v1301_v26  ;;  %v1297_v23 = vpop.permute.xlu0 %1296  ;;  %v1482_v63 = vld [vmem:[#allocation2 + $0x1b] sm:$0xff]  ;;  %vm1877_vm6 = vcmask 392192  }
 0x234   : > { %v1365_v19 = vrot.slane %v1183_v5, 2  ;;  %1444 = vst.msk [vmem:[#allocation2 + $0x33] sm:$0xff] %vm1438_vm0, %v1407_v40  ;;  %v1366_v2 = vrot.slane %v1183_v5, 4  ;;  %v1367_v43 = vrot.slane %v1183_v5, 6 }
 0x235   : > { %1412 = vst [vmem:[#allocation1 + $0x20] ss:$4 sm:$0xff] %v1364_v1 }
 0x236   : > { %1414 = vst [vmem:[#allocation1 + $0x22] ss:$4 sm:$0xff] %v1183_v5 }
 0x237   : > { %1415 = vst [vmem:[#allocation1 + $0x23] ss:$4 sm:$0xff] %v1365_v19  ;;  %v1416_v21 = vld.sshfl [vmem:[#allocation1] sm:$0xff pattern:$0x73625140] }
 0x238   : > { %1324 = vst.msk [vmem:[#allocation2 + $0x23] sm:$0xff] %vm1320_vm14, %v1297_v23 }
 0x239   : > { %1442 = vst.msk [vmem:[#allocation2 + $0x23] sm:$0xff] %vm1438_vm0, %v1397_v51  ;;  %v1490_v50 = vld [vmem:[#allocation2 + $0xc] sm:$0xff]  ;;  %v1491_v54 = vld [vmem:[#allocation2 + $0x14] sm:$0xff] }
 0x23a   : > { %v1481_v14 = vld [vmem:[#allocation2 + $0x13] sm:$0xff]  ;;  %v4720_v59 = vpack.i.bf16 %v1491_v54, %v1490_v50  ;;  %1418 = vst [vmem:[#allocation1] ss:$4 sm:$0xff] %v1366_v2 }
 0x23b   : > { %v4715_v17 = vpack.i.bf16 %v1481_v14, %v1480_v12  ;;  %v1471_v33 = vld [vmem:[#allocation2 + $0x12] sm:$0xff]  ;;  %1419 = vst [vmem:[#allocation1 + $0x1] ss:$4 sm:$0xff] %v1367_v43 }
 0x23c   : > { %v4710_v34 = vpack.i.bf16 %v1471_v33, %v1470_v25  ;;  %4721 = vrot.lane.b32.xlu2 %v4720_v59, %s4916_s10  ;;  %v1511_v30 = vld [vmem:[#allocation2 + $0x16] sm:$0xff] }
 0x23d   : > { %4716 = vrot.lane.b32.xlu1 %v4715_v17, %s4917_s11  ;;  %v1501_v9 = vld [vmem:[#allocation2 + $0x15] sm:$0xff] }
 0x23e   : > { %4711 = vrot.lane.b32.xlu0 %v4710_v34, %s4918_s12  ;;  %v1461_v58 = vld [vmem:[#allocation2 + $0x11] sm:$0xff]  ;;  %v1462_v51 = vld [vmem:[#allocation2 + $0x19] sm:$0xff] }
 0x23f   : > { %v4740_v39 = vpack.i.bf16 %v1462_v51, %v1461_v58  ;;  %v1485_v35 = vld [vmem:[#allocation2 + $0x33] sm:$0xff] }
 0x240   : > { %v1512_v11 = vld [vmem:[#allocation2 + $0x1e] sm:$0xff] }
 0x241   : > { %v1502_v3 = vld [vmem:[#allocation2 + $0x1d] sm:$0xff]  ;;  %v4735_v18 = vpack.i.bf16 %v1512_v11, %v1511_v30 }
 0x242   : > { %v6331_v56 = vld [vmem:[#allocation2 + $0x1c] sm:$0xff]  ;;  %v4730_v32 = vpack.i.bf16 %v1502_v3, %v1501_v9  ;;  %v1146_v22 = vpop.permute.xlu1 %1145  ;;  %v1152_v28 = vpop.permute.xlu2 %1151 }
 0x243   : > { %v4725_v47 = vpack.i.bf16 %v6331_v56, %v1491_v54  ;;  %v1182_v20 = vsel %vm7480_vm13, %v7472_v44, %v1146_v22  ;;  %v1185_v57 = vsel %vm1025_vm8, %v7474_v49, %v1152_v28  ;;  %v1473_v31 = vld [vmem:[#allocation2 + $0x22] sm:$0xff]  ;;  %v1472_v44 = vld [vmem:[#allocation2 + $0x1a] sm:$0xff]  ;;  %vm1899_vm8 = vcmask 523264  }
 0x244   : > { %4731 = vrot.lane.b32.xlu2 %v4730_v32, %s4920_s14  ;;  %1413 = vst [vmem:[#allocation1 + $0x21] ss:$4 sm:$0xff] %v1182_v20  ;;  %v4750_v60 = vpack.i.bf16 %v1473_v31, %v1472_v44  ;;  %v4745_v42 = vpack.i.bf16 %v1472_v44, %v1471_v33  ;;  %v1368_v55 = vrot.slane %v1185_v57, 2  ;;  %v1369_v24 = vrot.slane %v1185_v57, 4  ;;  %v1483_v15 = vld [vmem:[#allocation2 + $0x23] sm:$0xff] }
 0x245   : > { %4736 = vrot.lane.b32.xlu1 %v4735_v18, %s4919_s13  ;;  %1421 = vst [vmem:[#allocation1 + $0x3] ss:$4 sm:$0xff] %v1185_v57  ;;  %v1370_v7 = vrot.slane %v1185_v57, 6  ;;  %v4755_v52 = vpack.i.bf16 %v1483_v15, %v1482_v63  ;;  %v1463_v27 = vld [vmem:[#allocation2 + $0x21] sm:$0xff]  ;;  %vm2412_vm13 = vsmask.f32 1280 }
 0x246   : > { %4726 = vrot.lane.b32.xlu0 %v4725_v47, %s4921_s15 }
 0x248   : > { %v1303_v61 = vpop.permute.xlu0 %1302 }
 0x249   : > { %1327 = vst.msk [vmem:[#allocation2 + $0x3b] sm:$0xff] %vm1320_vm14, %v1303_v61 }
 0x24a   : > { %1445 = vst.msk [vmem:[#allocation2 + $0x3b] sm:$0xff] %vm1438_vm0, %v1416_v21  ;;  %v1299_v49 = vpop.permute.xlu1 %1298  ;;  %v1307_v6 = vpop.permute.xlu2 %1306 }
 0x24b   : > { %1325 = vst.msk [vmem:[#allocation2 + $0x2b] sm:$0xff] %vm1320_vm14, %v1299_v49  ;;  %v1417_v62 = vld.sshfl [vmem:[#allocation1 + $0x20] sm:$0xff pattern:$0x73625140] }
 0x24c   : > { %4741 = vrot.lane.b32.xlu2 %v4740_v39, %s4915_s9  ;;  %1443 = vst.msk [vmem:[#allocation2 + $0x2b] sm:$0xff] %vm1438_vm0, %v6312_v29 }
 0x24d   : > { %4751 = vrot.lane.b32.xlu1 %v4750_v60, %s4918_s12  ;;  %1329 = vst.msk [vmem:[#allocation2 + $0x4b] sm:$0xff] %vm1320_vm14, %v1307_v6 }
 0x24e   : > { %4746 = vrot.lane.b32.xlu0 %v4745_v42, %s4914_s8  ;;  %1422 = vst [vmem:[#allocation1 + $0x20] ss:$4 sm:$0xff] %v1368_v55 }
 0x24f   : > { %1423 = vst [vmem:[#allocation1 + $0x21] ss:$4 sm:$0xff] %v1369_v24 }
 0x250   : > { %v1150_v10 = vpop.permute.xlu0 %1149  ;;  %1424 = vst [vmem:[#allocation1 + $0x22] ss:$4 sm:$0xff] %v1370_v7 }
 0x251   : > { %v1184_v8 = vsel %vm7481_vm4, %v7473_v4, %v1150_v10  ;;  %v1495_v43 = vld [vmem:[#allocation2 + $0x34] sm:$0xff]  ;;  %vm2417_vm4 = vcmask 1043457  }
 0x252   : > { %1420 = vst [vmem:[#allocation1 + $0x2] ss:$4 sm:$0xff] %v1184_v8  ;;  %v1515_v38 = vld [vmem:[#allocation2 + $0x36] sm:$0xff] }
 0x253   : > { %v1474_v29 = vld [vmem:[#allocation2 + $0x2a] sm:$0xff]  ;;  %v1475_v25 = vld [vmem:[#allocation2 + $0x32] sm:$0xff]  ;;  %v1476_v18 = vld [vmem:[#allocation2 + $0x3a] sm:$0xff] }
 0x254   : > { %v1464_v53 = vld [vmem:[#allocation2 + $0x29] sm:$0xff]  ;;  %4756 = vrot.lane.b32.xlu2 %v4755_v52, %s4917_s11  ;;  %v4765_v36 = vpack.i.bf16 %v1474_v29, %v1473_v31  ;;  %v4770_v41 = vpack.i.bf16 %v1475_v25, %v1474_v29  ;;  %v1465_v30 = vld [vmem:[#allocation2 + $0x31] sm:$0xff]  ;;  %v1466_v9 = vld [vmem:[#allocation2 + $0x39] sm:$0xff]  ;;  %v4825_v47 = vpack.i.bf16 %v1476_v18, %v1475_v25 }
 0x255   : > { %v4760_v16 = vpack.i.bf16 %v1464_v53, %v1463_v27  ;;  %v1484_v45 = vld [vmem:[#allocation2 + $0x2b] sm:$0xff]  ;;  %v4820_v3 = vpack.i.bf16 %v1466_v9, %v1465_v30  ;;  %v1486_v58 = vld [vmem:[#allocation2 + $0x3b] sm:$0xff] }
 0x256   : > { %4766 = vrot.lane.b32.xlu0 %v4765_v36, %s4914_s8  ;;  %v1493_v0 = vld [vmem:[#allocation2 + $0x24] sm:$0xff]  ;;  %v1494_v4 = vld [vmem:[#allocation2 + $0x2c] sm:$0xff]  ;;  %v4775_v26 = vpack.i.bf16 %v1485_v35, %v1484_v45  ;;  %v1923_v10 = vld [vmem:[%s7378_s2 + $0x20] sm:$0xf] }
 0x257   : > { %4761 = vrot.lane.b32.xlu1 %v4760_v16, %s4915_s9  ;;  %v1305_v46 = vpop.permute.xlu1 %1304  ;;  %v4785_v40 = vpack.i.bf16 %v1494_v4, %v1493_v0  ;;  %v1513_v1 = vld [vmem:[#allocation2 + $0x26] sm:$0xff]  ;;  %v1514_v5 = vld [vmem:[#allocation2 + $0x2e] sm:$0xff]  ;;  %v4780_v12 = vpack.i.bf16 %v1493_v0, %v6331_v56  ;;  %v4800_v21 = vpack.i.bf16 %v1495_v43, %v1494_v4  ;;  %v1945_v8 = vunpack.c.l.b16 %v1923_v10  ;;  %v1500_v16 = vld [vmem:[#allocation2 + $0x5c] sm:$0xff] }
 0x258   : > { %1328 = vst.msk [vmem:[#allocation2 + $0x43] sm:$0xff] %vm1320_vm14, %v1305_v46  ;;  %v4795_v19 = vpack.i.bf16 %v1514_v5, %v1513_v1  ;;  %v1503_v54 = vld [vmem:[#allocation2 + $0x25] sm:$0xff]  ;;  %v1504_v14 = vld [vmem:[#allocation2 + $0x2d] sm:$0xff]  ;;  %v1505_v56 = vld [vmem:[#allocation2 + $0x35] sm:$0xff] }
 0x259   : > { %1446 = vst.msk [vmem:[#allocation2 + $0x43] sm:$0xff] %vm1438_vm0, %v1417_v62  ;;  %v1426_v37 = vld.sshfl [vmem:[#allocation1] sm:$0xff pattern:$0x73625140]  ;;  %v1950_v27 = vpack.c.b16 %v1945_v8, %v1945_v8  ;;  %v4575_v0 = vld [vmem:[%s7378_s2 + $0x18] sm:$0xff]  ;;  %v4574_v35 = vld [vmem:[%s7378_s2 + $0x10] sm:$0xff] }
 0x25a   : > { %1447 = vst.msk [vmem:[#allocation2 + $0x4b] sm:$0xff] %vm1438_vm0, %v1426_v37  ;;  %v1510_v5 = vld [vmem:[#allocation2 + $0x5d] sm:$0xff] }
 0x25b   : > { %v1973_v53 = vsel %vm1971_vm15, %v1950_v27, 0 }
 0x25c   : > { %4771 = vrot.lane.b32.xlu2 %v4770_v41, %s4918_s12  ;;  %1978 = vmatpush.bf16.msra.mxu0 %v1973_v53 }
 0x25d   : > { %4667 = vmatpush.bf16.msra.mxu3 %v1973_v53 }
 0x25e   : > { %4776 = vrot.lane.b32.xlu0 %v4775_v26, %s4917_s11  ;;  %v1520_v26 = vld [vmem:[#allocation2 + $0x5e] sm:$0xff] }
 0x25f   : > { %4786 = vrot.lane.b32.xlu1 %v4785_v40, %s4921_s15 }
 0x260   : > { %v1496_v50 = vld [vmem:[#allocation2 + $0x3c] sm:$0xff]  ;;  %1979 = vmatpush.bf16.msra.mxu0 %v4575_v0 }
 0x261   : > { %v1516_v59 = vld [vmem:[#allocation2 + $0x3e] sm:$0xff]  ;;  %v4805_v17 = vpack.i.bf16 %v1496_v50, %v1495_v43  ;;  %v1517_v61 = vld [vmem:[#allocation2 + $0x46] sm:$0xff]  ;;  %4668 = vmatpush.bf16.msra.mxu3 %v4575_v0 }
 0x262   : > { %v1154_v23 = vpop.permute.xlu1 %1153  ;;  %v4815_v13 = vpack.i.bf16 %v1516_v59, %v1515_v38  ;;  %v1506_v11 = vld [vmem:[#allocation2 + $0x3d] sm:$0xff]  ;;  %v1507_v6 = vld [vmem:[#allocation2 + $0x45] sm:$0xff] }
 0x263   : > { %v1186_v2 = vsel %vm1026_vm9, %v5963_v48, %v1154_v23  ;;  %v4790_v48 = vpack.i.bf16 %v1504_v14, %v1503_v54  ;;  %v4810_v32 = vpack.i.bf16 %v1506_v11, %v1505_v56  ;;  %v1497_v22 = vld [vmem:[#allocation2 + $0x44] sm:$0xff]  ;;  %vm1955_vm9 = vcmask 588800  }
 0x264   : > { %4796 = vrot.lane.b32.xlu2 %v4795_v19, %s4919_s13  ;;  %1425 = vst [vmem:[#allocation1 + $0x23] ss:$4 sm:$0xff] %v1186_v2  ;;  %v1477_v28 = vld [vmem:[#allocation2 + $0x42] sm:$0xff]  ;;  %v4840_v57 = vpack.i.bf16 %v1497_v22, %v1496_v50  ;;  %v1478_v24 = vld [vmem:[#allocation2 + $0x4a] sm:$0xff]  ;;  %1980 = vmatpush.bf16.msra.mxu0 %v4574_v35 }
 0x265   : > { %v1487_v20 = vld [vmem:[#allocation2 + $0x43] sm:$0xff]  ;;  %v4830_v51 = vpack.i.bf16 %v1477_v28, %v1476_v18  ;;  %v4865_v52 = vpack.i.bf16 %v1478_v24, %v1477_v28  ;;  %v1488_v45 = vld [vmem:[#allocation2 + $0x4b] sm:$0xff]  ;;  %4669 = vmatpush.bf16.msra.mxu3 %v4574_v35 }
 0x266   : > { %4781 = vrot.lane.b32.xlu0 %v4780_v12, %s4916_s10  ;;  %v4835_v31 = vpack.i.bf16 %v1487_v20, %v1486_v58  ;;  %v1467_v7 = vld [vmem:[#allocation2 + $0x41] sm:$0xff]  ;;  %v1468_v15 = vld [vmem:[#allocation2 + $0x49] sm:$0xff]  ;;  %v4572_v12 = vld [vmem:[%s7378_s2] sm:$0xff] }
 0x267   : > { %4801 = vrot.lane.b32.xlu1 %v4800_v21, %s4916_s10  ;;  %v4860_v29 = vpack.i.bf16 %v1468_v15, %v1467_v7  ;;  %v4573_v19 = vld [vmem:[%s7378_s2 + $0x8] sm:$0xff] }
 0x268   : > { %1981 = vmatpush.bf16.msra.mxu0 %v4573_v19  ;;  %v1449_v59 = vld [vmem:[#allocation2] sm:$0xff] }
 0x269   : > { %4670 = vmatpush.bf16.msra.mxu3 %v4573_v19 }
 0x26b   : > { %v1427_v33 = vld.sshfl [vmem:[#allocation1 + $0x20] sm:$0xff pattern:$0x73625140]  ;;  %v1309_v34 = vpop.permute.xlu0 %1308 }
 0x26c   : > { %4806 = vrot.lane.b32.xlu2 %v4805_v17, %s4921_s15  ;;  %1330 = vst.msk [vmem:[#allocation2 + $0x53] sm:$0xff] %vm1320_vm14, %v1309_v34  ;;  %1982 = vmatpush.bf16.msra.mxu0 %v4572_v12  ;;  %v1450_v17 = vld [vmem:[#allocation2 + $0x8] sm:$0xff] }
 0x26d   : > { %1448 = vst.msk [vmem:[#allocation2 + $0x53] sm:$0xff] %vm1438_vm0, %v1427_v33  ;;  %4671 = vmatpush.bf16.msra.mxu3 %v4572_v12  ;;  %vm2411_vm0 = vcmask 1041408  }
 0x26e   : > { %4791 = vrot.lane.b32.xlu0 %v4790_v48, %s4920_s14  ;;  %vm6517_vm15 = vmand %vm2411_vm0, %vm2412_vm13  ;;  %vm2434_vm0 = vsmask.f32 5392 }
 0x26f   : > { %4816 = vrot.lane.b32.xlu1 %v4815_v13, %s4919_s13 }
 0x274   : > { %4821 = vrot.lane.b32.xlu2 %v4820_v3, %s4915_s9  ;;  %v1518_v44 = vld [vmem:[#allocation2 + $0x4e] sm:$0xff]  ;;  %v1519_v40 = vld [vmem:[#allocation2 + $0x56] sm:$0xff] }
 0x275   : > { %v1508_v39 = vld [vmem:[#allocation2 + $0x4d] sm:$0xff]  ;;  %v4855_v49 = vpack.i.bf16 %v1518_v44, %v1517_v61  ;;  %v1509_v1 = vld [vmem:[#allocation2 + $0x55] sm:$0xff]  ;;  %v4895_v23 = vpack.i.bf16 %v1520_v26, %v1519_v40 }
 0x276   : > { %4811 = vrot.lane.b32.xlu0 %v4810_v32, %s4920_s14  ;;  %v1498_v60 = vld [vmem:[#allocation2 + $0x4c] sm:$0xff]  ;;  %v4850_v42 = vpack.i.bf16 %v1508_v39, %v1507_v6  ;;  %v1499_v36 = vld [vmem:[#allocation2 + $0x54] sm:$0xff]  ;;  %v4890_v2 = vpack.i.bf16 %v1510_v5, %v1509_v1 }
 0x277   : > { %4826 = vrot.lane.b32.xlu1 %v4825_v47, %s4914_s8  ;;  %v4845_v62 = vpack.i.bf16 %v1498_v60, %v1497_v22  ;;  %v1479_v55 = vld [vmem:[#allocation2 + $0x52] sm:$0xff]  ;;  %v4885_v46 = vpack.i.bf16 %v1500_v16, %v1499_v36  ;;  %v4880_v4 = vpack.i.bf16 %v1499_v36, %v1498_v60 }
 0x278   : > { %v4870_v63 = vpack.i.bf16 %v1479_v55, %v1478_v24  ;;  %v1489_v25 = vld [vmem:[#allocation2 + $0x53] sm:$0xff] }
 0x279   : > { %v4875_v37 = vpack.i.bf16 %v1489_v25, %v1488_v45  ;;  %v1451_v26 = vld [vmem:[#allocation2 + $0x10] sm:$0xff]  ;;  %v1452_v40 = vld [vmem:[#allocation2 + $0x18] sm:$0xff] }
 0x27c   : > { %4841 = vrot.lane.b32.xlu2 %v4840_v57, %s4916_s10 }
 0x27e   : > { %4831 = vrot.lane.b32.xlu0 %v4830_v51, %s4918_s12 }
 0x27f   : > { %4836 = vrot.lane.b32.xlu1 %v4835_v31, %s4917_s11 }
 0x284   : > { %4856 = vrot.lane.b32.xlu2 %v4855_v49, %s4919_s13 }
 0x286   : > { %4846 = vrot.lane.b32.xlu0 %v4845_v62, %s4921_s15 }
 0x287   : > { %4851 = vrot.lane.b32.xlu1 %v4850_v42, %s4920_s14 }
 0x28b   : > { %v4707_v41 = vpop.permute.xlu2 %4706 }
 0x28c   : > { %4871 = vrot.lane.b32.xlu2 %v4870_v63, %s4918_s12  ;;  %v4709_v34 = vunpack.i.h.bf16 %v4707_v41  ;;  %v4708_v30 = vunpack.i.l.bf16 %v4707_v41 }
 0x28e   : > { %4861 = vrot.lane.b32.xlu0 %v4860_v29, %s4915_s9 }
 0x28f   : > { %4866 = vrot.lane.b32.xlu1 %v4865_v52, %s4914_s8 }
 0x294   : > { %4886 = vrot.lane.b32.xlu2 %v4885_v46, %s4921_s15 }
 0x296   : > { %4876 = vrot.lane.b32.xlu0 %v4875_v37, %s4917_s11  ;;  %v4722_v43 = vpop.permute.xlu2 %4721 }
 0x297   : > { %4881 = vrot.lane.b32.xlu1 %v4880_v4, %s4916_s10  ;;  %v4724_v51 = vunpack.i.h.bf16 %v4722_v43  ;;  %v4723_v31 = vunpack.i.l.bf16 %v4722_v43 }
 0x29e   : > { %4891 = vrot.lane.b32.xlu0 %v4890_v2, %s4920_s14  ;;  %v4732_v50 = vpop.permute.xlu2 %4731 }
 0x29f   : > { %4896 = vrot.lane.b32.xlu1 %v4895_v23, %s4919_s13  ;;  %v4734_v61 = vunpack.i.h.bf16 %v4732_v50  ;;  %v4733_v49 = vunpack.i.l.bf16 %v4732_v50 }
 0x2a4   : > { %v4702_v21 = vpop.permute.xlu1 %4701 }
 0x2a5   : > { %v4704_v54 = vunpack.i.h.bf16 %v4702_v21  ;;  %v4703_v14 = vunpack.i.l.bf16 %v4702_v21 }
 0x2a6   : > { %v4742_v3 = vpop.permute.xlu2 %4741 }
 0x2a7   : > { %v1823_v38 = vsel %vm1187_vm10, %v1449_v59, %v4703_v14  ;;  %v1824_v48 = vsel %vm1187_vm10, %v1450_v17, %v4704_v54  ;;  %v4744_v0 = vunpack.i.h.bf16 %v4742_v3  ;;  %v4743_v4 = vunpack.i.l.bf16 %v4742_v3 }
 0x2a8   : > { %v1834_v32 = vsel %vm1833_vm1, %v1823_v38, %v4708_v30  ;;  %v1835_v47 = vsel %vm1833_vm1, %v1824_v48, %v4709_v34  ;;  %v1454_v30 = vld [vmem:[#allocation2 + $0x28] sm:$0xff] }
 0x2a9   : > { %v1826_v1 = vsel %vm1187_vm10, %v1452_v40, %v4744_v0  ;;  %v1825_v5 = vsel %vm1187_vm10, %v1451_v26, %v4743_v4 }
 0x2ae   : > { %v4757_v15 = vpop.permute.xlu2 %4756 }
 0x2af   : > { %v4717_v33 = vpop.permute.xlu1 %4716  ;;  %v4759_v38 = vunpack.i.h.bf16 %v4757_v15  ;;  %v4758_v48 = vunpack.i.l.bf16 %v4757_v15 }
 0x2b0   : > { %v4712_v13 = vpop.permute.xlu0 %4711  ;;  %v4719_v56 = vunpack.i.h.bf16 %v4717_v33  ;;  %v4718_v18 = vunpack.i.l.bf16 %v4717_v33 }
 0x2b1   : > { %v4714_v9 = vunpack.i.h.bf16 %v4712_v13  ;;  %v4713_v11 = vunpack.i.l.bf16 %v4712_v13  ;;  %v1453_v13 = vld [vmem:[#allocation2 + $0x20] sm:$0xff] }
 0x2b3   : > { %v1846_v22 = vsel %vm1844_vm2, %v1835_v47, %v4714_v9  ;;  %v1845_v28 = vsel %vm1844_vm2, %v1834_v32, %v4713_v11 }
 0x2b4   : > { %v1857_v20 = vsel %vm1855_vm5, %v1846_v22, %v4719_v56  ;;  %v1856_v57 = vsel %vm1855_vm5, %v1845_v28, %v4718_v18 }
 0x2b5   : > { %v1867_v6 = vsel %vm1866_vm3, %v1856_v57, %v4723_v31  ;;  %v1868_v42 = vsel %vm1866_vm3, %v1857_v20, %v4724_v51 }
 0x2b6   : > { %v6429_v36 = vpop.permute.xlu2 %4771 }
 0x2b7   : > { %v4737_v58 = vpop.permute.xlu1 %4736  ;;  %v4774_v47 = vunpack.i.h.bf16 %v6429_v36  ;;  %v4773_v22 = vunpack.i.l.bf16 %v6429_v36 }
 0x2b8   : > { %v4727_v44 = vpop.permute.xlu0 %4726  ;;  %v4739_v62 = vunpack.i.h.bf16 %v4737_v58  ;;  %v4738_v55 = vunpack.i.l.bf16 %v4737_v58 }
 0x2b9   : > { %v4729_v39 = vunpack.i.h.bf16 %v4727_v44  ;;  %v4728_v60 = vunpack.i.l.bf16 %v4727_v44 }
 0x2bb   : > { %v1878_v24 = vsel %vm1877_vm6, %v1867_v6, %v4728_v60  ;;  %v1879_v7 = vsel %vm1877_vm6, %v1868_v42, %v4729_v39 }
 0x2bc   : > { %v1889_v10 = vsel %vm1888_vm7, %v1878_v24, %v4733_v49  ;;  %v1890_v63 = vsel %vm1888_vm7, %v1879_v7, %v4734_v61 }
 0x2bd   : > { %v1900_v8 = vsel %vm1899_vm8, %v1889_v10, %v4738_v55  ;;  %v1901_v52 = vsel %vm1899_vm8, %v1890_v63, %v4739_v62 }
 0x2be   : > { %v1910_v29 = vpack.c.bf16 %v1901_v52, %v1900_v8  ;;  %v4797_v46 = vpop.permute.xlu2 %4796 }
 0x2bf   : > { %v4752_v27 = vpop.permute.xlu1 %4751  ;;  %v4799_v57 = vunpack.i.h.bf16 %v4797_v46  ;;  %v4798_v58 = vunpack.i.l.bf16 %v4797_v46 }
 0x2c0   : > { %4085 = vmatmul.msk.bf16.vlgmr.msra.gmra.mxu0 %vm1955_vm9, %v1910_v29  ;;  %v4747_v53 = vpop.permute.xlu0 %4746  ;;  %v4754_v19 = vunpack.i.h.bf16 %v4752_v27  ;;  %v4753_v23 = vunpack.i.l.bf16 %v4752_v27 }
 0x2c1   : > { %v4749_v37 = vunpack.i.h.bf16 %v4747_v53  ;;  %v4748_v35 = vunpack.i.l.bf16 %v4747_v53 }
 0x2c3   : > { %v1837_v2 = vsel %vm1833_vm1, %v1826_v1, %v4749_v37  ;;  %v1836_v43 = vsel %vm1833_vm1, %v1825_v5, %v4748_v35 }
 0x2c4   : > { %v1848_v59 = vsel %vm1844_vm2, %v1837_v2, %v4754_v19  ;;  %v1847_v17 = vsel %vm1844_vm2, %v1836_v43, %v4753_v23 }
 0x2c5   : > { %v1858_v18 = vsel %vm1855_vm5, %v1847_v17, %v4758_v48  ;;  %v1859_v32 = vsel %vm1855_vm5, %v1848_v59, %v4759_v38  ;;  %v1455_v38 = vld [vmem:[#allocation2 + $0x30] sm:$0xff]  ;;  %v1456_v48 = vld [vmem:[#allocation2 + $0x38] sm:$0xff] }
 0x2c6   : > { %v4807_v50 = vpop.permute.xlu2 %4806 }
 0x2c7   : > { %v4808_v0 = vunpack.i.l.bf16 %v4807_v50 }
 0x2c8   : > { %v4767_v25 = vpop.permute.xlu0 %4766 }
 0x2c9   : > { %v4762_v16 = vpop.permute.xlu1 %4761  ;;  %v4769_v9 = vunpack.i.h.bf16 %v4767_v25  ;;  %v4768_v11 = vunpack.i.l.bf16 %v4767_v25 }
 0x2ca   : > { %v4764_v54 = vunpack.i.h.bf16 %v4762_v16  ;;  %v4763_v14 = vunpack.i.l.bf16 %v4762_v16 }
 0x2cc   : > { %v1827_v3 = vsel %vm1187_vm10, %v1453_v13, %v4763_v14  ;;  %v1828_v56 = vsel %vm1187_vm10, %v1454_v30, %v4764_v54 }
 0x2cd   : > { %v1839_v39 = vsel %vm1833_vm1, %v1828_v56, %v4769_v9  ;;  %v1838_v60 = vsel %vm1833_vm1, %v1827_v3, %v4768_v11 }
 0x2ce   : > { %v4822_v7 = vpop.permute.xlu2 %4821  ;;  %v1849_v27 = vsel %vm1844_vm2, %v1838_v60, %v4773_v22  ;;  %v1850_v53 = vsel %vm1844_vm2, %v1839_v39, %v4774_v47 }
 0x2cf   : > { %v4824_v54 = vunpack.i.h.bf16 %v4822_v7  ;;  %v4823_v14 = vunpack.i.l.bf16 %v4822_v7 }
 0x2d0   : > { %v6431_v45 = vpop.permute.xlu0 %4776 }
 0x2d1   : > { %v4787_v41 = vpop.permute.xlu1 %4786  ;;  %v4779_v42 = vunpack.i.h.bf16 %v6431_v45  ;;  %v4778_v62 = vunpack.i.l.bf16 %v6431_v45  ;;  %v4809_v45 = vunpack.i.h.bf16 %v4807_v50  ;;  %v1829_v9 = vsel %vm1187_vm10, %v1455_v38, %v4823_v14 }
 0x2d2   : > { %v4789_v51 = vunpack.i.h.bf16 %v4787_v41  ;;  %v4788_v31 = vunpack.i.l.bf16 %v4787_v41  ;;  %v1830_v11 = vsel %vm1187_vm10, %v1456_v48, %v4824_v54 }
 0x2d3   : > { %v1860_v16 = vsel %vm1855_vm5, %v1849_v27, %v4778_v62  ;;  %v1861_v25 = vsel %vm1855_vm5, %v1850_v53, %v4779_v42 }
 0x2d8   : > { %v4782_v21 = vpop.permute.xlu0 %4781 }
 0x2d9   : > { %v4802_v12 = vpop.permute.xlu1 %4801  ;;  %v4784_v33 = vunpack.i.h.bf16 %v4782_v21  ;;  %v4783_v34 = vunpack.i.l.bf16 %v4782_v21  ;;  %v4842_v21 = vpop.permute.xlu2 %4841 }
 0x2da   : > { %v4804_v15 = vunpack.i.h.bf16 %v4802_v12  ;;  %v4803_v10 = vunpack.i.l.bf16 %v4802_v12 }
 0x2db   : > { %v1869_v28 = vsel %vm1866_vm3, %v1858_v18, %v4783_v34  ;;  %v1870_v20 = vsel %vm1866_vm3, %v1859_v32, %v4784_v33 }
 0x2dc   : > { %v1880_v55 = vsel %vm1877_vm6, %v1869_v28, %v4788_v31  ;;  %v1881_v24 = vsel %vm1877_vm6, %v1870_v20, %v4789_v51  ;;  %v1871_v46 = vsel %vm1866_vm3, %v1860_v16, %v4803_v10  ;;  %v1872_v41 = vsel %vm1866_vm3, %v1861_v25, %v4804_v15 }
 0x2dd   : > { %v1882_v5 = vsel %vm1877_vm6, %v1871_v46, %v4808_v0  ;;  %v1883_v19 = vsel %vm1877_vm6, %v1872_v41, %v4809_v45  ;;  %v4843_v51 = vunpack.i.l.bf16 %v4842_v21  ;;  %v1457_v41 = vld [vmem:[#allocation2 + $0x40] sm:$0xff]  ;;  %v1458_v45 = vld [vmem:[#allocation2 + $0x48] sm:$0xff] }
 0x2e0   : > { %v4792_v61 = vpop.permute.xlu0 %4791 }
 0x2e1   : > { %v4817_v44 = vpop.permute.xlu1 %4816  ;;  %v4794_v49 = vunpack.i.h.bf16 %v4792_v61  ;;  %v4793_v6 = vunpack.i.l.bf16 %v4792_v61  ;;  %v4857_v28 = vpop.permute.xlu2 %4856 }
 0x2e2   : > { %v4819_v40 = vunpack.i.h.bf16 %v4817_v44  ;;  %v4818_v1 = vunpack.i.l.bf16 %v4817_v44  ;;  %v4859_v62 = vunpack.i.h.bf16 %v4857_v28 }
 0x2e3   : > { %v1891_v63 = vsel %vm1888_vm7, %v1880_v55, %v4793_v6  ;;  %v1892_v8 = vsel %vm1888_vm7, %v1881_v24, %v4794_v49  ;;  %v4858_v55 = vunpack.i.l.bf16 %v4857_v28 }
 0x2e4   : > { %v1902_v52 = vsel %vm1899_vm8, %v1891_v63, %v4798_v58  ;;  %v1903_v29 = vsel %vm1899_vm8, %v1892_v8, %v4799_v57  ;;  %v4844_v58 = vunpack.i.h.bf16 %v4842_v21 }
 0x2e5   : > { %v1911_v36 = vpack.c.bf16 %v1903_v29, %v1902_v52 }
 0x2e7   : > { %4086 = vmatmul.msk.bf16.gmra.mxu0 %vm1955_vm9, %v1911_v36 }
 0x2e8   : > { %v4812_v37 = vpop.permute.xlu0 %4811 }
 0x2e9   : > { %v4827_v4 = vpop.permute.xlu1 %4826  ;;  %v4814_v35 = vunpack.i.h.bf16 %v4812_v37  ;;  %v4813_v26 = vunpack.i.l.bf16 %v4812_v37  ;;  %v4872_v16 = vpop.permute.xlu2 %4871 }
 0x2ea   : > { %v4829_v59 = vunpack.i.h.bf16 %v4827_v4  ;;  %v4828_v17 = vunpack.i.l.bf16 %v4827_v4 }
 0x2eb   : > { %v1893_v23 = vsel %vm1888_vm7, %v1882_v5, %v4813_v26  ;;  %v1894_v2 = vsel %vm1888_vm7, %v1883_v19, %v4814_v35  ;;  %v4874_v5 = vunpack.i.h.bf16 %v4872_v16  ;;  %v4873_v19 = vunpack.i.l.bf16 %v4872_v16 }
 0x2ec   : > { %v1904_v43 = vsel %vm1899_vm8, %v1893_v23, %v4818_v1  ;;  %v1905_v12 = vsel %vm1899_vm8, %v1894_v2, %v4819_v40  ;;  %v1840_v3 = vsel %vm1833_vm1, %v1829_v9, %v4828_v17  ;;  %v1841_v56 = vsel %vm1833_vm1, %v1830_v11, %v4829_v59 }
 0x2ed   : > { %v1912_v50 = vpack.c.bf16 %v1905_v12, %v1904_v43  ;;  %v2019_v1 = vlaneseq }
 0x2ef   : > { %4087 = vmatmul.msk.bf16.vlgmr.msra.gmra.mxu3 %vm1955_vm9, %v1912_v50  ;;  %v6492_v43 = vshrl.u32 %v2019_v1, 7 }
 0x2f0   : > { %v4832_v34 = vpop.permute.xlu0 %4831 }
 0x2f1   : > { %v4837_v33 = vpop.permute.xlu1 %4836  ;;  %v4834_v13 = vunpack.i.h.bf16 %v4832_v34  ;;  %v4833_v30 = vunpack.i.l.bf16 %v4832_v34  ;;  %v4887_v14 = vpop.permute.xlu2 %4886  ;;  %v2034_v34 = vshrl.u32 %v6492_v43, 16 }
 0x2f2   : > { %v4839_v18 = vunpack.i.h.bf16 %v4837_v33  ;;  %v4838_v32 = vunpack.i.l.bf16 %v4837_v33  ;;  %v2033_v33 = vand.u32 65535, %v6492_v43  ;;  %v4889_v48 = vunpack.i.h.bf16 %v4887_v14 }
 0x2f3   : > { %v1852_v47 = vsel %vm1844_vm2, %v1841_v56, %v4834_v13  ;;  %v1851_v22 = vsel %vm1844_vm2, %v1840_v3, %v4833_v30  ;;  %v4888_v9 = vunpack.i.l.bf16 %v4887_v14 }
 0x2f4   : > { %v1863_v20 = vsel %vm1855_vm5, %v1852_v47, %v4839_v18  ;;  %v1862_v57 = vsel %vm1855_vm5, %v1851_v22, %v4838_v32  ;;  %v2037_v38 = vmul.u32 52428, %v2033_v33  ;;  %v2036_v56 = vmul.u32 52429, %v2033_v33 }
 0x2f5   : > { %v1873_v6 = vsel %vm1866_vm3, %v1862_v57, %v4843_v51  ;;  %v1874_v42 = vsel %vm1866_vm3, %v1863_v20, %v4844_v58  ;;  %v2038_v18 = vmul.u32 52429, %v2034_v34 }
 0x2f6   : > { %v2040_v32 = vshll.u32 %v2037_v38, 16  ;;  %v2041_v16 = vshrl.u32 %v2037_v38, 16  ;;  %v4595_v38 = vld [vmem:[%s7380_s4 + $0x78] sm:$0xff] }
 0x2f7   : > { %v2042_v51 = vshll.u32 %v2038_v18, 16  ;;  %2731 = vmatpush.bf16.msra.mxu1 %v4595_v38  ;;  %4672 = vmatpush.bf16.msra.mxu2 %v4595_v38 }
 0x2f8   : > { %v4847_v44 = vpop.permute.xlu0 %4846  ;;  %vm2044_vm12 = vc.u32 %v2036_v56, %v2040_v32 }
 0x2f9   : > { %v4852_v31 = vpop.permute.xlu1 %4851  ;;  %v4849_v60 = vunpack.i.h.bf16 %v4847_v44  ;;  %v4848_v49 = vunpack.i.l.bf16 %v4847_v44 }
 0x2fa   : > { %v4854_v61 = vunpack.i.h.bf16 %v4852_v31  ;;  %v4853_v39 = vunpack.i.l.bf16 %v4852_v31 }
 0x2fb   : > { %v1884_v24 = vsel %vm1877_vm6, %v1873_v6, %v4848_v49  ;;  %v1885_v7 = vsel %vm1877_vm6, %v1874_v42, %v4849_v60  ;;  %v2021_v6 = vadd.s32 8, %v6492_v43 }
 0x2fc   : > { %v1895_v15 = vsel %vm1888_vm7, %v1884_v24, %v4853_v39  ;;  %v1896_v10 = vsel %vm1888_vm7, %v1885_v7, %v4854_v61  ;;  %v2046_v61 = vadd.s32 %v2040_v32, %v2036_v56  ;;  %v4922_v39 = vmov 0  }
 0x2fd   : > { %v1906_v63 = vsel %vm1899_vm8, %v1895_v15, %v4858_v55  ;;  %v1907_v8 = vsel %vm1899_vm8, %v1896_v10, %v4859_v62  ;;  %2410 = vst [vmem:[#allocation3] sm:$0xf] %v4922_v39  ;;  %v2039_v62 = vmul.u32 52428, %v2034_v34  ;;  %v2045_v55 = vsel %vm2044_vm12, 1, %v4922_v39  ;;  %v4603_v34 = vld [vmem:[%s7380_s4 + $0xb8] sm:$0xff] }
 0x2fe   : > { %v1913_v52 = vpack.c.bf16 %v1907_v8, %v1906_v63  ;;  %2423 = vst [vmem:[#allocation3 + $0x30] sm:$0x7] %v4922_v39  ;;  %v2062_v24 = vand.u32 65535, %v2021_v6  ;;  %v2063_v7 = vshrl.u32 %v2021_v6, 16  ;;  %2938 = vmatpush.bf16.msrb.mxu3 %v4603_v34 }
 0x2ff   : > { %v2047_v8 = vadd.s32 %v2045_v55, %v2039_v62  ;;  %v6555_v62 = vadd.s32 24, %v6492_v43  ;;  %v4601_v55 = vld [vmem:[%s7380_s4 + $0xa8] sm:$0xff] }
 0x300   : > { %v4862_v27 = vpop.permute.xlu0 %4861  ;;  %4088 = vmatmul.msk.bf16.gmra.mxu3 %vm1955_vm9, %v1913_v52  ;;  %v2065_v15 = vmul.u32 52429, %v2062_v24  ;;  %v2066_v10 = vmul.u32 52428, %v2062_v24  ;;  %v2067_v63 = vmul.u32 52429, %v2063_v7 }
 0x301   : > { %v4867_v29 = vpop.permute.xlu1 %4866  ;;  %v4864_v53 = vunpack.i.h.bf16 %v4862_v27  ;;  %v4863_v36 = vunpack.i.l.bf16 %v4862_v27 }
 0x302   : > { %v4869_v25 = vunpack.i.h.bf16 %v4867_v29  ;;  %v4868_v46 = vunpack.i.l.bf16 %v4867_v29  ;;  %v2068_v29 = vmul.u32 52428, %v2063_v7  ;;  %v2069_v27 = vshll.u32 %v2066_v10, 16 }
 0x303   : > { %v1832_v0 = vsel %vm1187_vm10, %v1458_v45, %v4864_v53  ;;  %v1831_v4 = vsel %vm1187_vm10, %v1457_v41, %v4863_v36  ;;  %vm2048_vm10 = vc.u32 %v2046_v61, %v2042_v51  ;;  %v2071_v53 = vshll.u32 %v2067_v63, 16 }
 0x304   : > { %v1843_v37 = vsel %vm1833_vm1, %v1832_v0, %v4869_v25  ;;  %v1842_v35 = vsel %vm1833_vm1, %v1831_v4, %v4868_v46  ;;  %v2049_v52 = vsel %vm2048_vm10, 1, %v4922_v39  ;;  %vm2073_vm11 = vc.u32 %v2065_v15, %v2069_v27 }
 0x305   : > { %v1853_v50 = vsel %vm1844_vm2, %v1842_v35, %v4873_v19  ;;  %v1854_v54 = vsel %vm1844_vm2, %v1843_v37, %v4874_v5  ;;  %v2075_v36 = vadd.s32 %v2069_v27, %v2065_v15  ;;  %v2051_v25 = vadd.s32 %v2049_v52, %v2047_v8  ;;  %v2414_v37 = vld [vmem:[#allocation3 + $0x4] sm:$0x3] }
 0x306   : > { %v2074_v46 = vsel %vm2073_vm11, 1, %v4922_v39  ;;  %v2043_v0 = vshrl.u32 %v2038_v18, 16  ;;  %vm2418_vm1 = vsmask.f32 7942  ;;  %v2415_v5 = vsel %vm6517_vm15, 0, %v2414_v37 }
 0x307   : > { %v2076_v41 = vadd.s32 %v2074_v46, %v2068_v29  ;;  %vm2077_vm14 = vc.u32 %v2075_v36, %v2071_v53  ;;  %v2052_v4 = vadd.s32 %v2051_v25, %v2041_v16  ;;  %vm6523_vm2 = vmand %vm2417_vm4, %vm2418_vm1  ;;  %2416 = vst [vmem:[#allocation3 + $0x4] sm:$0x3] %v2415_v5  ;;  %v2121_v27 = vshrl.u32 %v6555_v62, 16 }
 0x308   : > { %v4877_v40 = vpop.permute.xlu0 %4876  ;;  %v2078_v45 = vsel %vm2077_vm14, 1, %v4922_v39 }
 0x309   : > { %v4882_v26 = vpop.permute.xlu1 %4881  ;;  %v4879_v23 = vunpack.i.h.bf16 %v4877_v40  ;;  %v4878_v2 = vunpack.i.l.bf16 %v4877_v40  ;;  %v2070_v40 = vshrl.u32 %v2066_v10, 16  ;;  %v2080_v1 = vadd.s32 %v2078_v45, %v2076_v41 }
 0x30a   : > { %v4884_v12 = vunpack.i.h.bf16 %v4882_v26  ;;  %v4883_v21 = vunpack.i.l.bf16 %v4882_v26  ;;  %v2420_v26 = vld [vmem:[#allocation3 + $0x2c] sm:$0xe] }
 0x30b   : > { %v1864_v59 = vsel %vm1855_vm5, %v1853_v50, %v4878_v2  ;;  %v1865_v17 = vsel %vm1855_vm5, %v1854_v54, %v4879_v23  ;;  %v2421_v23 = vsel %vm6523_vm2, 0, %v2420_v26  ;;  %v2053_v2 = vadd.s32 %v2052_v4, %v2043_v0 }
 0x30c   : > { %v1875_v13 = vsel %vm1866_vm3, %v1864_v59, %v4883_v21  ;;  %v1876_v30 = vsel %vm1866_vm3, %v1865_v17, %v4884_v12  ;;  %2422 = vst [vmem:[#allocation3 + $0x2c] sm:$0xe] %v2421_v23  ;;  %v2072_v12 = vshrl.u32 %v2067_v63, 16  ;;  %v2081_v21 = vadd.s32 %v2080_v1, %v2070_v40 }
 0x30d   : > { %v1886_v57 = vsel %vm1877_vm6, %v1875_v13, %v4888_v9  ;;  %v1887_v58 = vsel %vm1877_vm6, %v1876_v30, %v4889_v48  ;;  %v2054_v50 = vshrl.u32 %v2053_v2, 3  ;;  %v6539_v30 = vld [vmem:[%s7379_s3] ss:$0 sm:$0xff]  ;;  %v6542_v9 = vadd.s32 16, %v6492_v43 }
 0x30e   : > { %v2082_v54 = vadd.s32 %v2081_v21, %v2072_v12  ;;  %v2120_v63 = vand.u32 65535, %v6555_v62  ;;  %v2546_v46 = vld [vmem:[#allocation3 + $0x4] sm:$0xe]  ;;  %v2125_v4 = vmul.u32 52429, %v2121_v27  ;;  %v6566_v1 = vadd.s32 32, %v6492_v43 }
 0x30f   : > { %v2055_v14 = vmul.u32 10, %v2054_v50  ;;  %v2126_v23 = vmul.u32 52428, %v2121_v27 }
 0x310   : > { %v4892_v3 = vpop.permute.xlu0 %4891  ;;  %v2083_v59 = vshrl.u32 %v2082_v54, 3  ;;  %v2124_v25 = vmul.u32 52428, %v2120_v63  ;;  %v2123_v0 = vmul.u32 52429, %v2120_v63  ;;  %v2129_v2 = vshll.u32 %v2125_v4, 16 }
 0x311   : > { %v4897_v11 = vpop.permute.xlu1 %4896  ;;  %v4894_v28 = vunpack.i.h.bf16 %v4892_v3  ;;  %v4893_v20 = vunpack.i.l.bf16 %v4892_v3  ;;  %v2056_v17 = vsub.s32 %v6492_v43, %v2055_v14  ;;  %v2091_v3 = vand.u32 65535, %v6542_v9 }
 0x312   : > { %v4899_v47 = vunpack.i.h.bf16 %v4897_v11  ;;  %v4898_v22 = vunpack.i.l.bf16 %v4897_v11  ;;  %v2084_v33 = vmul.u32 10, %v2083_v59  ;;  %v2127_v40 = vshll.u32 %v2124_v25, 16 }
 0x313   : > { %v1897_v31 = vsel %vm1888_vm7, %v1886_v57, %v4893_v20  ;;  %v1898_v44 = vsel %vm1888_vm7, %v1887_v58, %v4894_v28  ;;  %vm2320_vm5 = vcmp.ne.s32.totalorder %v2056_v17, 0  ;;  %vm2330_vm3 = vcmp.lt.s32.totalorder %v2056_v17, 0 }
 0x314   : > { %v1908_v60 = vsel %vm1899_vm8, %v1897_v31, %v4898_v22  ;;  %v1909_v49 = vsel %vm1899_vm8, %v1898_v44, %v4899_v47  ;;  %v2085_v48 = vsub.s32 %v2021_v6, %v2084_v33  ;;  %v2350_v13 = vadd.s32 10, %v2056_v17  ;;  %vm2340_vm6 = vmand %vm2330_vm3, %vm2320_vm5  ;;  %v4646_v47 = vld [vmem:[%s7380_s4 + $0x1d0] sm:$0xff] }
 0x315   : > { %v1914_v42 = vpack.c.bf16 %v1909_v49, %v1908_v60  ;;  %v2092_v22 = vshrl.u32 %v6542_v9, 16  ;;  %v2095_v28 = vmul.u32 52428, %v2091_v3  ;;  %v2094_v57 = vmul.u32 52429, %v2091_v3 }
 0x316   : > { %vm2321_vm7 = vcmp.ne.s32.totalorder %v2085_v48, 0  ;;  %vm2331_vm8 = vcmp.lt.s32.totalorder %v2085_v48, 0  ;;  %v2360_v11 = vsel %vm2340_vm6, %v2350_v13, %v2056_v17  ;;  %v2351_v18 = vadd.s32 10, %v2085_v48 }
 0x317   : > { %4089 = vmatmul.msk.bf16.gmra.mxu3 %vm1955_vm9, %v1914_v42  ;;  %vm6546_vm9 = vmand %vm2331_vm8, %vm2321_vm7  ;;  %vm2370_vm12 = vcmp.lt.s32.totalorder %v2360_v11, 8  ;;  %v2096_v58 = vmul.u32 52429, %v2092_v22  ;;  %v2098_v51 = vshll.u32 %v2095_v28, 16  ;;  %v2097_v61 = vmul.u32 52428, %v2092_v22 }
 0x318   : > { %v2361_v31 = vsel %vm6546_vm9, %v2351_v18, %v2085_v48  ;;  %v2099_v52 = vshrl.u32 %v2095_v28, 16  ;;  %vm2131_vm4 = vc.u32 %v2123_v0, %v2127_v40  ;;  %v2133_v54 = vadd.s32 %v2127_v40, %v2123_v0  ;;  %v4602_v18 = vld [vmem:[%s7380_s4 + $0xb0] sm:$0xff] }
 0x319   : > { %v2100_v60 = vshll.u32 %v2096_v58, 16  ;;  %vm2102_vm10 = vc.u32 %v2094_v57, %v2098_v51  ;;  %v2104_v42 = vadd.s32 %v2098_v51, %v2094_v57  ;;  %vm6557_vm11 = vcmp.lt.s32.totalorder %v2361_v31, 8  ;;  %2939 = vmatpush.bf16.msrb.mxu3 %v4602_v18  ;;  %v4594_v31 = vld [vmem:[%s7380_s4 + $0x70] sm:$0xff] }
 0x31a   : > { %v2103_v6 = vsel %vm2102_vm10, 1, %v4922_v39  ;;  %v2101_v45 = vshrl.u32 %v2096_v58, 16  ;;  %v2149_v14 = vand.u32 65535, %v6566_v1  ;;  %v2150_v59 = vshrl.u32 %v6566_v1, 16  ;;  %2732 = vmatpush.bf16.msra.mxu1 %v4594_v31  ;;  %4673 = vmatpush.bf16.msra.mxu2 %v4594_v31 }
 0x31b   : > { %v2105_v24 = vadd.s32 %v2103_v6, %v2097_v61  ;;  %vm2106_vm14 = vc.u32 %v2104_v42, %v2100_v60  ;;  %v2132_v38 = vsel %vm2131_vm4, 1, %v4922_v39  ;;  %v2128_v48 = vshrl.u32 %v2124_v25, 16 }
 0x31c   : > { %v2107_v29 = vsel %vm2106_vm14, 1, %v4922_v39  ;;  %v2134_v13 = vadd.s32 %v2132_v38, %v2126_v23  ;;  %vm2135_vm1 = vc.u32 %v2133_v54, %v2129_v2  ;;  %v2152_v11 = vmul.u32 52429, %v2149_v14  ;;  %v4613_v54 = vld [vmem:[%s7380_s4 + $0xe8] sm:$0xff] }
 0x31d   : > { %v2109_v16 = vadd.s32 %v2107_v29, %v2105_v24  ;;  %v2130_v22 = vshrl.u32 %v2125_v4, 16  ;;  %v6585_v57 = vmul.u32 52429, %v2150_v59  ;;  %v4615_v24 = vld [vmem:[%s7380_s4 + $0xf8] sm:$0xff]  ;;  %2940 = vmatpush.bf16.msrb.mxu3 %v4601_v55 }
 0x31e   : > { %3102 = vmatpush.bf16.msrb.mxu0 %v4615_v24 }
 0x31f   : > { %v2110_v26 = vadd.s32 %v2109_v16, %v2099_v52  ;;  %v2159_v40 = vshrl.u32 %v6585_v57, 16 }
 0x321   : > { %v2111_v50 = vadd.s32 %v2110_v26, %v2101_v45  ;;  %v4592_v26 = vld [vmem:[%s7380_s4 + $0x60] sm:$0xff] }
 0x323   : > { %v2112_v34 = vshrl.u32 %v2111_v50, 3  ;;  %v4599_v50 = vld [vmem:[%s7380_s4 + $0x98] sm:$0xff] }
 0x33d   : > { %v1984_v56 = vpop.f32.mrf.mxu0 }
 0x33e   : > { %v1985_v32 = vadd.f32 %v6539_v30, %v1984_v56  ;;  %v2113_v56 = vmul.u32 10, %v2112_v34  ;;  %v4591_v34 = vld [vmem:[%s7380_s4 + $0x58] sm:$0xff] }
 0x340   : > { %v2009_v20 = vmax.f32 %v1985_v32, 0.0  ;;  %v2136_v32 = vsel %vm2135_vm1, 1, %v4922_v39  ;;  %v6596_v61 = vsub.s32 %v6542_v9, %v2113_v56  ;;  %v4593_v9 = vld [vmem:[%s7380_s4 + $0x68] sm:$0xff] }
 0x341   : > { %v2138_v28 = vadd.s32 %v2136_v32, %v2134_v13  ;;  %2733 = vmatpush.bf16.msra.mxu1 %v4593_v9  ;;  %4674 = vmatpush.bf16.msra.mxu2 %v4593_v9  ;;  %v4598_v32 = vld [vmem:[%s7380_s4 + $0x90] sm:$0xff]  ;;  %v4611_v9 = vld [vmem:[%s7380_s4 + $0xd8] sm:$0xff] }
 0x342   : > { %v2400_v44 = vsel %vm2370_vm12, %v2009_v20, 0.0  ;;  %v2153_v20 = vmul.u32 52428, %v2149_v14  ;;  %vm2322_vm5 = vcmp.ne.s32.totalorder %v6596_v61, 0  ;;  %vm2332_vm3 = vcmp.lt.s32.totalorder %v6596_v61, 0 }
 0x343   : > { %v2424_v49 = vpack.c.bf16 %v2400_v44, %v2400_v44  ;;  %v6593_v44 = vadd.s32 40, %v6492_v43  ;;  %v2139_v60 = vadd.s32 %v2138_v28, %v2128_v48  ;;  %vm6630_vm7 = vmand %vm2332_vm3, %vm2322_vm5  ;;  %v4665_v48 = vld [vmem:[#allocation3] sm:$0xe]  ;;  %v6668_v28 = vadd.s32 48, %v6492_v43 }
 0x344   : > { %v2156_v6 = vshll.u32 %v2153_v20, 16  ;;  %v2157_v16 = vshrl.u32 %v2153_v20, 16 }
 0x345   : > { %v2437_v7 = vshrl.u32 %v2424_v49, 16  ;;  %v2440_v15 = vshll.u32 %v2424_v49, 16  ;;  %v1986_v10 = vpop.f32.mrf.mxu0  ;;  %v2155_v49 = vmul.u32 52428, %v2150_v59  ;;  %v2179_v52 = vshrl.u32 %v6593_v44, 16  ;;  %2734 = vmatpush.bf16.msra.mxu1 %v4592_v26  ;;  %4675 = vmatpush.bf16.msra.mxu2 %v4592_v26 }
 0x346   : > { %v1987_v8 = vadd.f32 %v6539_v30, %v1986_v10  ;;  %v2162_v63 = vadd.s32 %v2156_v6, %v2152_v11  ;;  %v2207_v55 = vand.u32 65535, %v6668_v28  ;;  %v2208_v24 = vshrl.u32 %v6668_v28, 16 }
 0x347   : > { %v2439_v53 = vrot.slane %v2437_v7, 6  ;;  %v2442_v36 = vrot.slane %v2440_v15, 7  ;;  %v2158_v7 = vshll.u32 %v6585_v57, 16  ;;  %v2140_v15 = vadd.s32 %v2139_v60, %v2130_v22  ;;  %v4612_v22 = vld [vmem:[%s7380_s4 + $0xe0] sm:$0xff] }
 0x348   : > { %v2010_v41 = vmax.f32 %v1987_v8, 0.0  ;;  %v2178_v8 = vand.u32 65535, %v6593_v44  ;;  %v6624_v4 = vmul.u32 52429, %v2179_v52 }
 0x349   : > { %v2443_v37 = vor.u32 %v2442_v36, %v2439_v53  ;;  %v2141_v29 = vshrl.u32 %v2140_v15, 3  ;;  %v4600_v53 = vld [vmem:[%s7380_s4 + $0xa0] sm:$0xff]  ;;  %v4614_v36 = vld [vmem:[%s7380_s4 + $0xf0] sm:$0xff]  ;;  %vm2164_vm6 = vc.u32 %v2162_v63, %v2158_v7  ;;  %2735 = vmatpush.bf16.msra.mxu1 %v4591_v34  ;;  %4676 = vmatpush.bf16.msra.mxu2 %v4591_v34  ;;  %v4597_v7 = vld [vmem:[%s7380_s4 + $0x88] sm:$0xff] }
 0x34a   : > { %v2401_v5 = vsel %vm6557_vm11, %v2010_v41, 0.0  ;;  %v2181_v25 = vmul.u32 52429, %v2178_v8  ;;  %v2352_v41 = vadd.s32 10, %v6596_v61  ;;  %v2165_v0 = vsel %vm2164_vm6, 1, %v4922_v39  ;;  %2941 = vmatpush.bf16.msrb.mxu3 %v4600_v53  ;;  %3103 = vmatpush.bf16.msrb.mxu0 %v4614_v36 }
 0x34b   : > { %v2547_v12 = vsel %vm6523_vm2, %v2443_v37, %v2546_v46  ;;  %v2425_v21 = vpack.c.bf16 %v2401_v5, %v2401_v5  ;;  %vm6581_vm2 = vmor %vm2412_vm13, %vm2434_vm0  ;;  %v2444_v58 = vrot.slane %v2443_v37, 4  ;;  %vm2160_vm13 = vc.u32 %v2152_v11, %v2156_v6 }
 0x34c   : > { %2548 = vst [vmem:[#allocation3 + $0x4] sm:$0xe] %v2547_v12  ;;  %v2161_v10 = vsel %vm2160_vm13, 1, %v4922_v39  ;;  %v2182_v46 = vmul.u32 52428, %v2178_v8  ;;  %v2142_v45 = vmul.u32 10, %v2141_v29  ;;  %v2184_v12 = vmul.u32 52428, %v2179_v52 }
 0x34d   : > { %v2446_v17 = vshrl.u32 %v2425_v21, 16  ;;  %v2449_v33 = vshll.u32 %v2425_v21, 16  ;;  %v2163_v27 = vadd.s32 %v2161_v10, %v2155_v49  ;;  %v2187_v21 = vshll.u32 %v6624_v4, 16 }
 0x34e   : > { %v2185_v23 = vshll.u32 %v2182_v46, 16  ;;  %v6639_v2 = vsub.s32 %v6555_v62, %v2142_v45  ;;  %v2362_v62 = vsel %vm6630_vm7, %v2352_v41, %v6596_v61  ;;  %2942 = vmatpush.bf16.msrb.mxu3 %v4599_v50  ;;  %3104 = vmatpush.bf16.msrb.mxu0 %v4613_v54  ;;  %v2186_v11 = vshrl.u32 %v2182_v46, 16 }
 0x34f   : > { %v2448_v19 = vrot.slane %v2446_v17, 6  ;;  %v2451_v3 = vrot.slane %v2449_v33, 7  ;;  %v2167_v5 = vadd.s32 %v2165_v0, %v2163_v27  ;;  %vm6675_vm11 = vcmp.lt.s32.totalorder %v2362_v62, 8 }
 0x350   : > { %vm2189_vm8 = vc.u32 %v2181_v25, %v2185_v23  ;;  %v2191_v59 = vadd.s32 %v2185_v23, %v2181_v25  ;;  %vm2323_vm9 = vcmp.ne.s32.totalorder %v6639_v2, 0  ;;  %vm2333_vm10 = vcmp.lt.s32.totalorder %v6639_v2, 0 }
 0x351   : > { %v6587_v51 = vor.u32 %v2451_v3, %v2448_v19  ;;  %v2168_v14 = vadd.s32 %v2167_v5, %v2157_v16  ;;  %v2190_v38 = vsel %vm2189_vm8, 1, %v4922_v39  ;;  %v2353_v57 = vadd.s32 10, %v6639_v2  ;;  %vm6683_vm14 = vmand %vm2333_vm10, %vm2323_vm9 }
 0x352   : > { %vm2193_vm12 = vc.u32 %v2191_v59, %v2187_v21  ;;  %v2192_v19 = vadd.s32 %v2190_v38, %v2184_v12  ;;  %2943 = vmatpush.bf16.msrb.mxu3 %v4598_v32  ;;  %3105 = vmatpush.bf16.msrb.mxu0 %v4612_v22  ;;  %v2210_v29 = vmul.u32 52429, %v2207_v55  ;;  %v6701_v27 = vmul.u32 52428, %v2207_v55  ;;  %v4610_v12 = vld [vmem:[%s7380_s4 + $0xd0] sm:$0xff]  ;;  %v4588_v38 = vld [vmem:[%s7380_s4 + $0x40] sm:$0xff] }
 0x353   : > { %v2453_v42 = vsel %vm6581_vm2, %v2444_v58, %v6587_v51  ;;  %v2454_v17 = vrot.slane %v6587_v51, 4  ;;  %v2169_v33 = vadd.s32 %v2168_v14, %v2159_v40  ;;  %v6657_v13 = vld [vmem:[#allocation3] sm:$0xff]   ;;  %v2194_v3 = vsel %vm2193_vm12, 1, %v4922_v39 }
 0x354   : > { %2549 = vst [vmem:[#allocation3 + $0x8] sm:$0xf] %v2453_v42  ;;  %v4664_v56 = vld [vmem:[#allocation3] sm:$0xf0]  ;;  %v2188_v58 = vshrl.u32 %v6624_v4, 16  ;;  %v2196_v31 = vadd.s32 %v2194_v3, %v2192_v19  ;;  %v2637_v61 = vshll.u32 %v6657_v13, 16  ;;  %v2363_v36 = vsel %vm6683_vm14, %v2353_v57, %v6639_v2 }
 0x355   : > { %v2170_v18 = vshrl.u32 %v2169_v33, 3  ;;  %v6670_v20 = vld [vmem:[#allocation3 + $0x4] sm:$0xe]  ;;  %v4666_v10 = vor.u32 %v4665_v48, %v4664_v56  ;;  %v2635_v63 = vshrl.u32 %v6657_v13, 16  ;;  %v6703_v53 = vmul.u32 52429, %v2208_v24  ;;  %v4596_v2 = vld [vmem:[%s7380_s4 + $0x80] sm:$0xff] }
 0x356   : > { %v4590_v42 = vld [vmem:[%s7380_s4 + $0x50] sm:$0xff]  ;;  %v2197_v15 = vadd.s32 %v2196_v31, %v2186_v11  ;;  %v3021_v8 = vunpack.c.l.b16 %v6670_v20  ;;  %v2639_v25 = vrot.slane %v2637_v61, 1  ;;  %v6711_v41 = vadd.s32 56, %v6492_v43  ;;  %2944 = vmatpush.bf16.msrb.mxu3 %v4597_v7  ;;  %3106 = vmatpush.bf16.msrb.mxu0 %v4611_v9  ;;  %v4609_v3 = vld [vmem:[%s7380_s4 + $0xc8] sm:$0xff] }
 0x357   : > { %v2171_v6 = vmul.u32 10, %v2170_v18  ;;  %2736 = vmatpush.bf16.msra.mxu1 %v4590_v42  ;;  %4677 = vmatpush.bf16.msra.mxu2 %v4590_v42  ;;  %v2213_v0 = vmul.u32 52428, %v2208_v24  ;;  %v2214_v4 = vshll.u32 %v6701_v27, 16  ;;  %v2216_v5 = vshll.u32 %v6703_v53, 16 }
 0x358   : > { %v2198_v16 = vadd.s32 %v2197_v15, %v2188_v58  ;;  %v6729_v21 = vrot.slane %v4666_v10, 1  ;;  %v2236_v54 = vand.u32 65535, %v6711_v41  ;;  %vm6734_vm5 = vcmp.lt.s32.totalorder %v2363_v36, 8 }
 0x359   : > { %v2172_v52 = vsub.s32 %v6566_v1, %v2171_v6  ;;  %v4589_v1 = vld [vmem:[%s7380_s4 + $0x48] sm:$0xff]  ;;  %vm2218_vm13 = vc.u32 %v2210_v29, %v2214_v4  ;;  %v2220_v50 = vadd.s32 %v2214_v4, %v2210_v29  ;;  %v2237_v13 = vshrl.u32 %v6711_v41, 16 }
 0x35a   : > { %v2199_v40 = vshrl.u32 %v2198_v16, 3  ;;  %v2219_v62 = vsel %vm2218_vm13, 1, %v4922_v39  ;;  %2945 = vmatpush.bf16.msrb.mxu3 %v4596_v2  ;;  %3107 = vmatpush.bf16.msrb.mxu0 %v4610_v12  ;;  %v6749_v56 = vor.u32 %v2639_v25, %v2635_v63  ;;  %v2215_v18 = vshrl.u32 %v6701_v27, 16  ;;  %v4608_v16 = vld [vmem:[%s7380_s4 + $0xc0] sm:$0xff]  ;;  %v4622_v2 = vld [vmem:[%s7380_s4 + $0x130] sm:$0xff] }
 0x35b   : > { %v6708_v46 = vld [vmem:[#allocation3 + $0x8] sm:$0xf]  ;;  %vm2324_vm0 = vcmp.ne.s32.totalorder %v2172_v52, 0  ;;  %vm2334_vm4 = vcmp.lt.s32.totalorder %v2172_v52, 0  ;;  %v2354_v26 = vadd.s32 10, %v2172_v52  ;;  %2737 = vmatpush.bf16.msra.mxu1 %v4589_v1  ;;  %4678 = vmatpush.bf16.msra.mxu2 %v4589_v1  ;;  %v2221_v48 = vadd.s32 %v2219_v62, %v2213_v0 }
 0x35c   : > { %vm6719_vm1 = vmand %vm2334_vm4, %vm2324_vm0  ;;  %v2200_v59 = vmul.u32 10, %v2199_v40  ;;  %v3022_v33 = vunpack.c.l.b16 %v6708_v46  ;;  %vm2222_vm3 = vc.u32 %v2220_v50, %v2216_v5  ;;  %v2240_v57 = vmul.u32 52428, %v2236_v54 }
 0x35d   : > { %v2364_v19 = vsel %vm6719_vm1, %v2354_v26, %v2172_v52  ;;  %v2223_v20 = vsel %vm2222_vm3, 1, %v4922_v39  ;;  %v2217_v58 = vshrl.u32 %v6703_v53, 16  ;;  %v2239_v60 = vmul.u32 52429, %v2236_v54 }
 0x35e   : > { %v6753_v22 = vsub.s32 %v6593_v44, %v2200_v59  ;;  %v2225_v31 = vadd.s32 %v2223_v20, %v2221_v48  ;;  %v6759_v61 = vpack.c.b16 %v3022_v33, %v3021_v8  ;;  %vm6761_vm6 = vcmp.lt.s32.totalorder %v2364_v19, 8  ;;  %3108 = vmatpush.bf16.msrb.mxu0 %v4609_v3  ;;  %v4623_v8 = vld [vmem:[%s7380_s4 + $0x138] sm:$0xff] }
 0x35f   : > { %2738 = vmatpush.bf16.msra.mxu1 %v4588_v38  ;;  %4679 = vmatpush.bf16.msra.mxu2 %v4588_v38  ;;  %v2241_v44 = vmul.u32 52429, %v2237_v13  ;;  %v2242_v9 = vmul.u32 52428, %v2237_v13  ;;  %v2243_v15 = vshll.u32 %v2240_v57, 16  ;;  %v2244_v12 = vshrl.u32 %v2240_v57, 16 }
 0x360   : > { %v2226_v7 = vadd.s32 %v2225_v31, %v2215_v18  ;;  %vm2325_vm7 = vcmp.ne.s32.totalorder %v6753_v22, 0  ;;  %vm2335_vm8 = vcmp.lt.s32.totalorder %v6753_v22, 0  ;;  %v2355_v36 = vadd.s32 10, %v6753_v22 }
 0x361   : > { %v2245_v27 = vshll.u32 %v2241_v44, 16  ;;  %vm2247_vm9 = vc.u32 %v2239_v60, %v2243_v15  ;;  %vm6789_vm12 = vmand %vm2335_vm8, %vm2325_vm7  ;;  %v2246_v62 = vshrl.u32 %v2241_v44, 16  ;;  %vm2873_vm1 = vcmask 1046528  }
 0x362   : > { %v2227_v29 = vadd.s32 %v2226_v7, %v2217_v58  ;;  %v2248_v25 = vsel %vm2247_vm9, 1, %v4922_v39  ;;  %3109 = vmatpush.bf16.msrb.mxu0 %v4608_v16  ;;  %v2365_v48 = vsel %vm6789_vm12, %v2355_v36, %v6753_v22  ;;  %vm2633_vm13 = vsmask.f32 7424 }
 0x363   : > { %3274 = vmatpush.bf16.msrb.mxu1 %v4623_v8  ;;  %v2250_v4 = vadd.s32 %v2248_v25, %v2242_v9  ;;  %vm6815_vm4 = vcmp.lt.s32.totalorder %v2365_v48, 8  ;;  %v4619_v25 = vld [vmem:[%s7380_s4 + $0x118] sm:$0xff] }
 0x364   : > { %v1989_v45 = vpop.f32.mrf.mxu0  ;;  %v2228_v0 = vshrl.u32 %v2227_v29, 3 }
 0x365   : > { %v1990_v37 = vadd.f32 %v6539_v30, %v1989_v45  ;;  %v2249_v45 = vadd.s32 %v2243_v15, %v2239_v60  ;;  %v4620_v15 = vld [vmem:[%s7380_s4 + $0x120] sm:$0xff] }
 0x367   : > { %v2011_v14 = vmax.f32 %v1990_v37, 0.0  ;;  %v6779_v37 = vadd.s32 64, %v6492_v43  ;;  %vm2251_vm10 = vc.u32 %v2249_v45, %v2245_v27  ;;  %3275 = vmatpush.bf16.msrb.mxu1 %v4622_v2 }
 0x368   : > { %v2252_v50 = vsel %vm2251_vm10, 1, %v4922_v39 }
 0x369   : > { %v2402_v11 = vsel %vm6675_vm11, %v2011_v14, 0.0  ;;  %v2265_v54 = vand.u32 65535, %v6779_v37  ;;  %v2254_v34 = vadd.s32 %v2252_v50, %v2250_v4 }
 0x36a   : > { %v2426_v32 = vpack.c.bf16 %v2402_v11, %v2402_v11  ;;  %v2266_v11 = vshrl.u32 %v6779_v37, 16 }
 0x36b   : > { %v2255_v18 = vadd.s32 %v2254_v34, %v2244_v12  ;;  %v6807_v20 = vmul.u32 52428, %v2265_v54 }
 0x36c   : > { %v2456_v49 = vshrl.u32 %v2426_v32, 16  ;;  %v2459_v6 = vshll.u32 %v2426_v32, 16  ;;  %v1991_v42 = vpop.f32.mrf.mxu0  ;;  %v4621_v32 = vld [vmem:[%s7380_s4 + $0x128] sm:$0xff]  ;;  %v2271_v4 = vmul.u32 52428, %v2266_v11 }
 0x36d   : > { %v1992_v24 = vadd.f32 %v6539_v30, %v1991_v42  ;;  %3276 = vmatpush.bf16.msrb.mxu1 %v4621_v32  ;;  %v2268_v42 = vmul.u32 52429, %v2265_v54  ;;  %v2272_v29 = vshll.u32 %v6807_v20, 16 }
 0x36e   : > { %v2458_v10 = vrot.slane %v2456_v49, 6  ;;  %v2461_v63 = vrot.slane %v2459_v6, 7  ;;  %v2256_v49 = vadd.s32 %v2255_v18, %v2246_v62  ;;  %v2273_v62 = vshrl.u32 %v6807_v20, 16 }
 0x36f   : > { %v2012_v52 = vmax.f32 %v1992_v24, 0.0  ;;  %v6872_v18 = vadd.s32 72, %v6492_v43 }
 0x370   : > { %v2462_v53 = vor.u32 %v2461_v63, %v2458_v10  ;;  %v6826_v10 = vmul.u32 52429, %v2266_v11 }
 0x371   : > { %v2403_v1 = vsel %vm6734_vm5, %v2012_v52, 0.0  ;;  %v2257_v52 = vshrl.u32 %v2256_v49, 3  ;;  %3277 = vmatpush.bf16.msrb.mxu1 %v4620_v15  ;;  %vm6847_vm5 = vc.u32 %v2268_v42, %v2272_v29  ;;  %v2294_v60 = vand.u32 65535, %v6872_v18 }
 0x372   : > { %v2463_v26 = vsel %vm6581_vm2, %v2454_v17, %v2462_v53  ;;  %v2427_v40 = vpack.c.bf16 %v2403_v1, %v2403_v1  ;;  %v1994_v5 = vpop.f32.mrf.mxu3  ;;  %v2229_v17 = vmul.u32 10, %v2228_v0  ;;  %v2464_v22 = vrot.slane %v2462_v53, 4 }
 0x373   : > { %2550 = vst [vmem:[#allocation3 + $0xc] sm:$0xf] %v2463_v26  ;;  %v1995_v51 = vadd.f32 %v6539_v30, %v1994_v5  ;;  %v2258_v0 = vmul.u32 10, %v2257_v52  ;;  %v2274_v23 = vshll.u32 %v6826_v10, 16  ;;  %v2277_v48 = vsel %vm6847_vm5, 1, %v4922_v39 }
 0x374   : > { %v2466_v14 = vshrl.u32 %v2427_v40, 16  ;;  %v2469_v59 = vshll.u32 %v2427_v40, 16  ;;  %v2230_v13 = vsub.s32 %v6668_v28, %v2229_v17  ;;  %v2278_v17 = vadd.s32 %v2272_v29, %v2268_v42 }
 0x375   : > { %v2013_v38 = vmax.f32 %v1995_v51, 0.0  ;;  %v2259_v12 = vsub.s32 %v6711_v41, %v2258_v0  ;;  %3278 = vmatpush.bf16.msrb.mxu1 %v4619_v25  ;;  %v4618_v41 = vld [vmem:[%s7380_s4 + $0x110] sm:$0xff]  ;;  %v2295_v43 = vshrl.u32 %v6872_v18, 16  ;;  %v6893_v15 = vmul.u32 52428, %v2294_v60 }
 0x376   : > { %v2468_v19 = vrot.slane %v2466_v14, 6  ;;  %v2471_v3 = vrot.slane %v2469_v59, 7  ;;  %vm2326_vm11 = vcmp.ne.s32.totalorder %v2230_v13, 0  ;;  %vm2336_vm14 = vcmp.lt.s32.totalorder %v2230_v13, 0 }
 0x377   : > { %v2404_v57 = vsel %vm6761_vm6, %v2013_v38, 0.0  ;;  %v2356_v58 = vadd.s32 10, %v2230_v13  ;;  %vm6811_vm0 = vmand %vm2336_vm14, %vm2326_vm11  ;;  %v3038_v14 = vrot.slane %v6759_v61, 1  ;;  %vm2327_vm6 = vcmp.ne.s32.totalorder %v2259_v12, 0 }
 0x378   : > { %v2472_v31 = vor.u32 %v2471_v3, %v2468_v19  ;;  %v2428_v28 = vpack.c.bf16 %v2404_v57, %v2404_v57  ;;  %vm2337_vm7 = vcmp.lt.s32.totalorder %v2259_v12, 0  ;;  %vm2280_vm8 = vc.u32 %v2278_v17, %v2274_v23 }
 0x379   : > { %v2366_v8 = vsel %vm6811_vm0, %v2356_v58, %v2230_v13  ;;  %v2357_v11 = vadd.s32 10, %v2259_v12  ;;  %v2279_v19 = vadd.s32 %v2277_v48, %v2271_v4  ;;  %v2281_v3 = vsel %vm2280_vm8, 1, %v4922_v39  ;;  %vm6878_vm9 = vmand %vm2337_vm7, %vm2327_vm6  ;;  %3279 = vmatpush.bf16.msrb.mxu1 %v4618_v41 }
 0x37a   : > { %v2473_v55 = vsel %vm6581_vm2, %v2464_v22, %v2472_v31  ;;  %v2476_v44 = vshrl.u32 %v2428_v28, 16  ;;  %v2479_v24 = vshll.u32 %v2428_v28, 16  ;;  %v1996_v7 = vpop.f32.mrf.mxu3  ;;  %v6821_v9 = vld [vmem:[#allocation3 + $0x8] sm:$0xff]  ;;  %v2474_v45 = vrot.slane %v2472_v31, 4 }
 0x37b   : > { %2551 = vst [vmem:[#allocation3 + $0x10] sm:$0xf] %v2473_v55  ;;  %v1997_v63 = vadd.f32 %v6539_v30, %v1996_v7  ;;  %v2875_v36 = vrot.slane %v6821_v9, 1  ;;  %v2642_v16 = vshll.u32 %v6821_v9, 16  ;;  %vm6860_vm3 = vcmp.lt.s32.totalorder %v2366_v8, 8 }
 0x37c   : > { %v2478_v27 = vrot.slane %v2476_v44, 6  ;;  %v2481_v53 = vrot.slane %v2479_v24, 7  ;;  %v2275_v31 = vshrl.u32 %v6826_v10, 16  ;;  %v2283_v28 = vadd.s32 %v2281_v3, %v2279_v19  ;;  %v4617_v44 = vld [vmem:[%s7380_s4 + $0x108] sm:$0xff] }
 0x37d   : > { %v2014_v1 = vmax.f32 %v1997_v63, 0.0  ;;  %v2876_v40 = vsel %vm2873_vm1, %v6729_v21, %v2875_v36  ;;  %v6841_v5 = vrot.slane %v2642_v16, 1  ;;  %v2367_v24 = vsel %vm6878_vm9, %v2357_v11, %v2259_v12  ;;  %3280 = vmatpush.bf16.msrb.mxu1 %v4617_v44  ;;  %v4616_v16 = vld [vmem:[%s7380_s4 + $0x100] sm:$0xff] }
 0x37e   : > { %v2482_v26 = vor.u32 %v2481_v53, %v2478_v27  ;;  %2946 = vmatmul.bf16.vlgmr.msrb.gmra.mxu3 %v2876_v40  ;;  %v2284_v7 = vadd.s32 %v2283_v28, %v2273_v62  ;;  %v2297_v52 = vmul.u32 52429, %v2294_v60  ;;  %v6901_v29 = vmul.u32 52429, %v2295_v43 }
 0x37f   : > { %v2405_v2 = vsel %vm6815_vm4, %v2014_v1, 0.0  ;;  %v2645_v21 = vsel %vm2633_vm13, %v6749_v56, %v6841_v5  ;;  %v2301_v25 = vshll.u32 %v6893_v15, 16  ;;  %vm6907_vm12 = vcmp.lt.s32.totalorder %v2367_v24, 8 }
 0x380   : > { %v2483_v50 = vsel %vm6581_vm2, %v2474_v45, %v2482_v26  ;;  %v2429_v54 = vpack.c.bf16 %v2405_v2, %v2405_v2  ;;  %2739 = vmatmul.bf16.vlgmr.msra.gmra.mxu1 %v2645_v21  ;;  %v2484_v49 = vrot.slane %v2482_v26, 4  ;;  %v2285_v53 = vadd.s32 %v2284_v7, %v2275_v31 }
 0x381   : > { %2552 = vst [vmem:[#allocation3 + $0x14] sm:$0xf] %v2483_v50  ;;  %v2646_v0 = vshrl.u32 %v6821_v9, 16  ;;  %v2300_v12 = vmul.u32 52428, %v2295_v43  ;;  %3281 = vmatpush.bf16.msrb.mxu1 %v4616_v16  ;;  %v2303_v50 = vshll.u32 %v6901_v29, 16  ;;  %vm2305_vm10 = vc.u32 %v2297_v52, %v2301_v25 }
 0x382   : > { %v2486_v34 = vshrl.u32 %v2429_v54, 16  ;;  %v2489_v38 = vshll.u32 %v2429_v54, 16  ;;  %v6865_v56 = vld [vmem:[#allocation3 + $0xc] sm:$0xff]  ;;  %v2286_v2 = vshrl.u32 %v2285_v53, 3  ;;  %v2306_v41 = vsel %vm2305_vm10, 1, %v4922_v39 }
 0x383   : > { %v1999_v13 = vpop.f32.mrf.mxu3  ;;  %v3039_v58 = vrot.slane %v6865_v56, 1  ;;  %v2308_v19 = vadd.s32 %v2306_v41, %v2300_v12  ;;  %v2304_v22 = vshrl.u32 %v6901_v29, 16  ;;  %v3172_v29 = vshll.u32 %v6759_v61, 16 }
 0x384   : > { %v2488_v32 = vrot.slane %v2486_v34, 6  ;;  %v2491_v57 = vrot.slane %v2489_v38, 7  ;;  %v2000_v20 = vadd.f32 %v6539_v30, %v1999_v13  ;;  %v2648_v34 = vor.u32 %v2646_v0, %v6841_v5 }
 0x385   : > { %v3040_v55 = vsel %vm2873_vm1, %v3038_v14, %v3039_v58  ;;  %v2287_v14 = vmul.u32 10, %v2286_v2  ;;  %v2307_v38 = vadd.s32 %v2301_v25, %v2297_v52  ;;  %v3169_v52 = vshrl.u32 %v6759_v61, 16  ;;  %v4642_v25 = vld [vmem:[%s7380_s4 + $0x1b0] sm:$0xff] }
 0x386   : > { %v2492_v6 = vor.u32 %v2491_v57, %v2488_v32  ;;  %v2015_v42 = vmax.f32 %v2000_v20, 0.0  ;;  %3110 = vmatmul.bf16.vlgmr.msrb.gmra.mxu0 %v3040_v55  ;;  %v2302_v20 = vshrl.u32 %v6893_v15, 16  ;;  %v4643_v15 = vld [vmem:[%s7380_s4 + $0x1b8] sm:$0xff]  ;;  %v3341_v46 = vrot.slane %v6865_v56, 2 }
 0x387   : > { %v2288_v11 = vsub.s32 %v6779_v37, %v2287_v14  ;;  %vm2309_vm11 = vc.u32 %v2307_v38, %v2303_v50  ;;  %3568 = vmatpush.bf16.msra.mxu3 %v4643_v15  ;;  %v3171_v12 = vrot.slane %v3169_v52, 1  ;;  %v4649_v52 = vld [vmem:[%s7380_s4 + $0x1e8] sm:$0xff] }
 0x388   : > { %v2493_v10 = vsel %vm6581_vm2, %v2484_v49, %v2492_v6  ;;  %v2406_v63 = vsel %vm6860_vm3, %v2015_v42, 0.0  ;;  %v6899_v8 = vld [vmem:[#allocation3 + $0x10] sm:$0xff]  ;;  %v2494_v48 = vrot.slane %v2492_v6, 4  ;;  %v2310_v31 = vsel %vm2309_vm11, 1, %v4922_v39  ;;  %v4587_v49 = vld [vmem:[%s7380_s4 + $0x38] sm:$0xff]  ;;  %v4586_v39 = vld [vmem:[%s7380_s4 + $0x30] sm:$0xff] }
 0x389   : > { %2553 = vst [vmem:[#allocation3 + $0x18] sm:$0xf] %v2493_v10  ;;  %v2430_v27 = vpack.c.bf16 %v2406_v63, %v2406_v63  ;;  %v2877_v1 = vrot.slane %v6899_v8, 1  ;;  %v2650_v4 = vshll.u32 %v6899_v8, 16  ;;  %vm2328_vm14 = vcmp.ne.s32.totalorder %v2288_v11, 0  ;;  %2818 = vmatpush.bf16.msrb.mxu2 %v4587_v49  ;;  %v4639_v63 = vld [vmem:[%s7380_s4 + $0x198] sm:$0xff] }
 0x38a   : > { %vm2338_vm0 = vcmp.lt.s32.totalorder %v2288_v11, 0  ;;  %v2312_v43 = vadd.s32 %v2310_v31, %v2308_v19  ;;  %v3177_v6 = vshrl.u32 %v6865_v56, 16  ;;  %v3180_v42 = vshll.u32 %v6865_v56, 16  ;;  %v4640_v31 = vld [vmem:[%s7380_s4 + $0x1a0] sm:$0xff] }
 0x38b   : > { %v2496_v26 = vshrl.u32 %v2430_v27, 16  ;;  %v2499_v40 = vshll.u32 %v2430_v27, 16  ;;  %v2001_v23 = vpop.f32.mrf.mxu3  ;;  %v6915_v17 = vrot.slane %v2650_v4, 1  ;;  %v2878_v62 = vsel %vm2873_vm1, %v2875_v36, %v2877_v1  ;;  %vm6955_vm4 = vmand %vm2338_vm0, %vm2328_vm14  ;;  %3569 = vmatpush.bf16.msra.mxu3 %v4642_v25 }
 0x38c   : > { %v2002_v51 = vadd.f32 %v6539_v30, %v2001_v23  ;;  %v2358_v24 = vadd.s32 10, %v2288_v11  ;;  %v2313_v7 = vadd.s32 %v2312_v43, %v2302_v20  ;;  %v3182_v45 = vrot.slane %v3180_v42, 2  ;;  %v4583_v20 = vld [vmem:[%s7380_s4 + $0x18] sm:$0xff] }
 0x38d   : > { %v2498_v54 = vrot.slane %v2496_v26, 6  ;;  %v2501_v21 = vrot.slane %v2499_v40, 7  ;;  %v2653_v32 = vsel %vm2633_vm13, %v2648_v34, %v6915_v17  ;;  %2819 = vmatpush.bf16.msrb.mxu2 %v4586_v39  ;;  %v4585_v40 = vld [vmem:[%s7380_s4 + $0x28] sm:$0xff]  ;;  %v2654_v2 = vshrl.u32 %v6899_v8, 16 }
 0x38e   : > { %v2016_v59 = vmax.f32 %v2002_v51, 0.0  ;;  %2951 = vmatmul.bf16.gmra.mxu3 %v2878_v62  ;;  %v2314_v16 = vadd.s32 %v2313_v7, %v2304_v22  ;;  %v2368_v4 = vsel %vm6955_vm4, %v2358_v24, %v2288_v11  ;;  %v3174_v51 = vrot.slane %v3172_v29, 2  ;;  %v4651_v11 = vld [vmem:[%s7380_s4 + $0x1f8] sm:$0xff] }
 0x38f   : > { %v2502_v13 = vor.u32 %v2501_v21, %v2498_v54  ;;  %vm2378_vm5 = vcmp.lt.s32.totalorder %v2368_v4, 8  ;;  %v2656_v41 = vor.u32 %v2654_v2, %v6915_v17  ;;  %vm3167_vm3 = vsmask.f32 6400  ;;  %v4641_v17 = vld [vmem:[%s7380_s4 + $0x1a8] sm:$0xff]  ;;  %3740 = vmatpush.bf16.msra.mxu0 %v4651_v11  ;;  %v4648_v4 = vld [vmem:[%s7380_s4 + $0x1e0] sm:$0xff] }
 0x390   : > { %v2407_v3 = vsel %vm6907_vm12, %v2016_v59, 0.0  ;;  %v6930_v57 = vld [vmem:[#allocation3 + $0x14] sm:$0xff]  ;;  %2744 = vmatmul.bf16.gmra.mxu1 %v2653_v32  ;;  %v2315_v26 = vshrl.u32 %v2314_v16, 3  ;;  %v3175_v19 = vor.u32 %v3174_v51, %v3171_v12  ;;  %3570 = vmatpush.bf16.msra.mxu3 %v4641_v17  ;;  %vm3339_vm12 = vcmask 1045504  }
 0x391   : > { %v2503_v36 = vsel %vm6581_vm2, %v2494_v48, %v2502_v13  ;;  %v2431_v5 = vpack.c.bf16 %v2407_v3, %v2407_v3  ;;  %v3041_v37 = vrot.slane %v6930_v57, 1  ;;  %v2504_v27 = vrot.slane %v2502_v13, 4  ;;  %2820 = vmatpush.bf16.msrb.mxu2 %v4585_v40  ;;  %v4584_v13 = vld [vmem:[%s7380_s4 + $0x20] sm:$0xff] }
 0x392   : > { %2554 = vst [vmem:[#allocation3 + $0x1c] sm:$0xf] %v2503_v36  ;;  %v2316_v14 = vmul.u32 10, %v2315_v26  ;;  %v3189_v24 = vshll.u32 %v6930_v57, 16  ;;  %v4581_v26 = vld [vmem:[%s7380_s4 + $0x8] sm:$0xff] }
 0x393   : > { %v2506_v28 = vshrl.u32 %v2431_v5, 16  ;;  %v2509_v60 = vshll.u32 %v2431_v5, 16  ;;  %v3042_v10 = vsel %vm2873_vm1, %v3039_v58, %v3041_v37  ;;  %v3179_v58 = vrot.slane %v3177_v6, 1 }
 0x394   : > { %v2317_v48 = vsub.s32 %v6872_v18, %v2316_v14  ;;  %3571 = vmatpush.bf16.msra.mxu3 %v4640_v31  ;;  %v4647_v14 = vld [vmem:[%s7380_s4 + $0x1d8] sm:$0xff] }
 0x395   : > { %v2508_v55 = vrot.slane %v2506_v28, 6  ;;  %v2511_v44 = vrot.slane %v2509_v60, 7  ;;  %v6981_v59 = vor.u32 %v3182_v45, %v3179_v58  ;;  %2821 = vmatpush.bf16.msrb.mxu2 %v4584_v13  ;;  %v4650_v28 = vld [vmem:[%s7380_s4 + $0x1f0] sm:$0xff]  ;;  %v2558_v13 = vld [vmem:[#allocation3 + $0x2c] sm:$0x3] }
 0x396   : > { %3115 = vmatmul.bf16.gmra.mxu0 %v3042_v10  ;;  %vm2329_vm6 = vcmp.ne.s32.totalorder %v2317_v48, 0  ;;  %vm2339_vm7 = vcmp.lt.s32.totalorder %v2317_v48, 0  ;;  %v2359_v36 = vadd.s32 10, %v2317_v48 }
 0x397   : > { %v6961_v53 = vor.u32 %v2511_v44, %v2508_v55  ;;  %vm7002_vm8 = vmand %vm2339_vm7, %vm2329_vm6  ;;  %v3184_v5 = vsel %vm3167_vm3, %v3175_v19, %v6981_v59  ;;  %v3186_v44 = vshrl.u32 %v6930_v57, 16  ;;  %3741 = vmatpush.bf16.msra.mxu0 %v4650_v28 }
 0x398   : > { %v2369_v6 = vsel %vm7002_vm8, %v2359_v36, %v2317_v48  ;;  %3572 = vmatpush.bf16.msra.mxu3 %v4639_v63 }
 0x399   : > { %v2513_v0 = vsel %vm6581_vm2, %v2504_v27, %v6961_v53  ;;  %v6971_v61 = vld [vmem:[#allocation3 + $0x18] sm:$0xff]  ;;  %vm2379_vm9 = vcmp.lt.s32.totalorder %v2369_v6, 8  ;;  %2822 = vmatpush.bf16.msrb.mxu2 %v4583_v20  ;;  %v2514_v29 = vrot.slane %v6961_v53, 4  ;;  %v3188_v25 = vrot.slane %v3186_v44, 1  ;;  %v3318_v53 = vld [vmem:[#allocation3 + $0x4] sm:$0xc] }
 0x39a   : > { %2555 = vst [vmem:[#allocation3 + $0x20] sm:$0xf] %v2513_v0  ;;  %v2004_v23 = vpop.f32.mrf.mxu3  ;;  %v2879_v54 = vrot.slane %v6971_v61, 1  ;;  %v2658_v21 = vshll.u32 %v6971_v61, 16  ;;  %v4638_v0 = vld [vmem:[%s7380_s4 + $0x190] sm:$0xff]  ;;  %v3337_v12 = vunpack.c.l.b16 %v3318_v53  ;;  %v2662_v11 = vshrl.u32 %v6971_v61, 16 }
 0x39b   : > { %v2005_v50 = vadd.f32 %v6539_v30, %v2004_v23  ;;  %3742 = vmatpush.bf16.msra.mxu0 %v4649_v52  ;;  %v4657_v6 = vld [vmem:[%s7380_s4 + $0x228] sm:$0xff] }
 0x39c   : > { %v2880_v34 = vsel %vm2873_vm1, %v2877_v1, %v2879_v54  ;;  %v6988_v38 = vrot.slane %v2658_v21, 1  ;;  %3573 = vmatpush.bf16.msra.mxu3 %v4638_v0  ;;  %v4637_v21 = vld [vmem:[%s7380_s4 + $0x188] sm:$0xff] }
 0x39d   : > { %v2017_v62 = vmax.f32 %v2005_v50, 0.0 }
 0x39e   : > { %2956 = vmatmul.bf16.gmra.mxu3 %v2880_v34  ;;  %v2661_v1 = vsel %vm2633_vm13, %v2656_v41, %v6988_v38  ;;  %v4580_v41 = vld [vmem:[%s7380_s4] sm:$0xff] }
 0x39f   : > { %v2408_v3 = vsel %vm2378_vm5, %v2017_v62, 0.0  ;;  %2749 = vmatmul.bf16.vlgmr.msra.gmra.mxu2 %v2661_v1  ;;  %3743 = vmatpush.bf16.msra.mxu0 %v4648_v4  ;;  %v3338_v62 = vpack.c.b16 %v3022_v33, %v3337_v12  ;;  %v4636_v33 = vld [vmem:[%s7380_s4 + $0x180] sm:$0xff]  ;;  %v4630_v4 = vld [vmem:[%s7380_s4 + $0x170] sm:$0xff] }
 0x3a0   : > { %v2432_v18 = vpack.c.bf16 %v2408_v3, %v2408_v3  ;;  %3282 = vmatmul.bf16.vlgmr.msrb.gmra.mxu1 %v3184_v5  ;;  %3574 = vmatpush.bf16.msra.mxu3 %v4637_v21  ;;  %v2664_v5 = vor.u32 %v2662_v11, %v6988_v38  ;;  %v4645_v38 = vld [vmem:[%s7380_s4 + $0x1c8] sm:$0xff]  ;;  %v7140_v21 = vld [vmem:[#allocation3 + $0xc] sm:$0xf] }
 0x3a1   : > { %v7011_v22 = vld [vmem:[#allocation3 + $0x1c] sm:$0xff] }
 0x3a2   : > { %v2516_v60 = vshrl.u32 %v2432_v18, 16  ;;  %v2519_v43 = vshll.u32 %v2432_v18, 16  ;;  %v2006_v49 = vpop.f32.mrf.mxu3  ;;  %v3043_v55 = vrot.slane %v7011_v22, 1  ;;  %v3340_v18 = vrot.slane %v3338_v62, 2 }
 0x3a3   : > { %v2007_v42 = vadd.f32 %v6539_v30, %v2006_v49  ;;  %v4582_v30 = vld [vmem:[%s7380_s4 + $0x10] sm:$0xff]  ;;  %3744 = vmatpush.bf16.msra.mxu0 %v4647_v14  ;;  %v3198_v35 = vshll.u32 %v7011_v22, 16  ;;  %v4653_v14 = vld [vmem:[%s7380_s4 + $0x208] sm:$0xff] }
 0x3a4   : > { %v2518_v7 = vrot.slane %v2516_v60, 6  ;;  %v2521_v39 = vrot.slane %v2519_v43, 7  ;;  %v3044_v10 = vsel %vm2873_vm1, %v3041_v37, %v3043_v55  ;;  %v3191_v37 = vrot.slane %v3189_v24, 2  ;;  %2823 = vmatpush.bf16.msrb.mxu2 %v4582_v30  ;;  %3575 = vmatpush.bf16.msra.mxu3 %v4636_v33  ;;  %v4658_v43 = vld [vmem:[%s7380_s4 + $0x230] sm:$0xff] }
 0x3a5   : > { %v2018_v15 = vmax.f32 %v2007_v42, 0.0  ;;  %v7088_v20 = vsel %vm3339_vm12, %v3340_v18, %v3341_v46  ;;  %v3195_v60 = vshrl.u32 %v7011_v22, 16  ;;  %v3200_v24 = vrot.slane %v3198_v35, 2  ;;  %v4652_v18 = vld [vmem:[%s7380_s4 + $0x200] sm:$0xff] }
 0x3a6   : > { %v2522_v27 = vor.u32 %v2521_v39, %v2518_v7  ;;  %3120 = vmatmul.bf16.gmra.mxu0 %v3044_v10  ;;  %v7051_v2 = vor.u32 %v3191_v37, %v3188_v25  ;;  %v4644_v39 = vld [vmem:[%s7380_s4 + $0x1c0] sm:$0xff]  ;;  %v3343_v25 = vrot.slane %v6930_v57, 2  ;;  %v4655_v57 = vld [vmem:[%s7380_s4 + $0x218] sm:$0xff] }
 0x3a7   : > { %v2409_v16 = vsel %vm2379_vm9, %v2018_v15, 0.0  ;;  %3745 = vmatpush.bf16.msra.mxu0 %v4646_v47  ;;  %v3197_v44 = vrot.slane %v3195_v60, 1  ;;  %v4628_v35 = vld [vmem:[%s7380_s4 + $0x160] sm:$0xff] }
 0x3a8   : > { %v2523_v58 = vsel %vm6581_vm2, %v2514_v29, %v2522_v27  ;;  %v2433_v45 = vpack.c.bf16 %v2409_v16, %v2409_v16  ;;  %2824 = vmatpush.bf16.msrb.mxu2 %v4581_v26  ;;  %v2524_v34 = vrot.slane %v2522_v27, 4  ;;  %v3193_v17 = vsel %vm3167_vm3, %v6981_v59, %v7051_v2  ;;  %v4659_v59 = vld [vmem:[%s7380_s4 + $0x238] sm:$0xff]  ;;  %v4656_v27 = vld [vmem:[%s7380_s4 + $0x220] sm:$0xff] }
 0x3a9   : > { %2556 = vst [vmem:[#allocation3 + $0x24] sm:$0xf] %v2523_v58  ;;  %3870 = vmatpush.bf16.msra.mxu1 %v4659_v59  ;;  %v3201_v52 = vor.u32 %v3200_v24, %v3197_v44  ;;  %v7124_v0 = vsel %vm3339_vm12, %v3341_v46, %v3343_v25 }
 0x3aa   : > { %v2526_v40 = vshrl.u32 %v2433_v45, 16  ;;  %v2529_v23 = vshll.u32 %v2433_v45, 16 }
 0x3ab   : > { %3746 = vmatpush.bf16.msra.mxu0 %v4645_v38  ;;  %v3202_v37 = vsel %vm3167_vm3, %v7051_v2, %v3201_v52 }
 0x3ac   : > { %v2528_v51 = vrot.slane %v2526_v40, 6  ;;  %v2531_v50 = vrot.slane %v2529_v23, 7  ;;  %2825 = vmatpush.bf16.msrb.mxu2 %v4580_v41  ;;  %v4629_v41 = vld [vmem:[%s7380_s4 + $0x168] sm:$0xff] }
 0x3ad   : > { %3871 = vmatpush.bf16.msra.mxu1 %v4658_v43 }
 0x3ae   : > { %v2532_v48 = vor.u32 %v2531_v50, %v2528_v51  ;;  %v4654_v51 = vld [vmem:[%s7380_s4 + $0x210] sm:$0xff] }
 0x3af   : > { %3747 = vmatpush.bf16.msra.mxu0 %v4644_v39 }
 0x3b0   : > { %v2533_v19 = vsel %vm6581_vm2, %v2524_v34, %v2532_v48  ;;  %v2534_v3 = vrot.slane %v2532_v48, 4  ;;  %v7070_v1 = vld [vmem:[#allocation3 + $0x20] sm:$0xff]  ;;  %3287 = vmatmul.bf16.gmra.mxu1 %v3193_v17  ;;  %v3488_v17 = vunpack.c.l.b16 %v7140_v21  ;;  %vm3805_vm2 = vcmask 1044480   ;;  %v4625_v21 = vld [vmem:[%s7380_s4 + $0x148] sm:$0xff] }
 0x3b1   : > { %2557 = vst [vmem:[#allocation3 + $0x28] sm:$0xf] %v2533_v19  ;;  %v2881_v56 = vrot.slane %v7070_v1, 1  ;;  %v2666_v36 = vshll.u32 %v7070_v1, 16  ;;  %3872 = vmatpush.bf16.msra.mxu1 %v4657_v6  ;;  %v7149_v19 = vld [vmem:[#allocation3 + $0x10] sm:$0xff] }
 0x3b2   : > { %v2559_v32 = vsel %vm6517_vm15, %v2534_v3, %v2558_v13  ;;  %v3448_v13 = vld [vmem:[#allocation3 + $0x8] sm:$0xc]  ;;  %vm3633_vm15 = vsmask.f32 5376 }
 0x3b3   : > { %2560 = vst [vmem:[#allocation3 + $0x2c] sm:$0x3] %v2559_v32  ;;  %v2882_v31 = vsel %vm2873_vm1, %v2879_v54, %v2881_v56  ;;  %v2668_v28 = vrot.slane %v2666_v36, 1  ;;  %v4631_v54 = vld [vmem:[%s7380_s4 + $0x178] sm:$0xff]  ;;  %v3487_v3 = vunpack.c.l.b16 %v3448_v13  ;;  %v3505_v32 = vrot.slane %v7149_v19, 2 }
 0x3b4   : > { %2961 = vmatmul.bf16.gmra.mxu3 %v2882_v31  ;;  %3404 = vmatpush.bf16.msra.mxu2 %v4631_v54  ;;  %v3646_v31 = vshll.u32 %v7149_v19, 16 }
 0x3b5   : > { %v2669_v49 = vsel %vm2633_vm13, %v2664_v5, %v2668_v28  ;;  %3873 = vmatpush.bf16.msra.mxu1 %v4656_v27  ;;  %v3498_v59 = vpack.c.b16 %v3488_v17, %v3487_v3  ;;  %v3643_v5 = vshrl.u32 %v7149_v19, 16 }
 0x3b6   : > { %2754 = vmatmul.bf16.gmra.mxu2 %v2669_v49  ;;  %v3648_v6 = vrot.slane %v3646_v31, 3 }
 0x3b7   : > { %v3504_v60 = vrot.slane %v3498_v59, 2  ;;  %v3635_v43 = vshrl.u32 %v3498_v59, 16  ;;  %v3638_v49 = vshll.u32 %v3498_v59, 16  ;;  %v3645_v54 = vrot.slane %v3643_v5, 2 }
 0x3b8   : > { %v7108_v42 = vld [vmem:[#allocation3 + $0x24] sm:$0xff]  ;;  %3405 = vmatpush.bf16.msra.mxu2 %v4630_v4 }
 0x3b9   : > { %v2587_v7 = vld [vmem:[#allocation3 + $0x28] sm:$0x1]  ;;  %v3045_v10 = vrot.slane %v7108_v42, 1  ;;  %3874 = vmatpush.bf16.msra.mxu1 %v4655_v57  ;;  %v3204_v2 = vshrl.u32 %v7108_v42, 16  ;;  %v3207_v12 = vshll.u32 %v7108_v42, 16  ;;  %v3640_v39 = vrot.slane %v3638_v49, 3 }
 0x3ba   : > { %v2626_v15 = vunpack.c.l.b16 %v2587_v7  ;;  %v2992_v29 = vld [vmem:[#allocation3 + $0x2c] sm:$0x1]  ;;  %v3637_v7 = vrot.slane %v3635_v43, 2  ;;  %v3612_v43 = vld [vmem:[#allocation3 + $0x30] sm:$0x7] }
 0x3bb   : > { %v3046_v63 = vsel %vm2873_vm1, %v3043_v55, %v3045_v10  ;;  %v3031_v45 = vunpack.c.l.b16 %v2992_v29  ;;  %v2670_v55 = vshrl.u32 %v7070_v1, 16  ;;  %v3206_v34 = vrot.slane %v3204_v2, 1  ;;  %v3146_v11 = vld [vmem:[#allocation3 + $0x2c] sm:$0x3] }
 0x3bc   : > { %v2632_v30 = vpack.c.b16 %v2626_v15, %v2626_v15  ;;  %3125 = vmatmul.bf16.gmra.mxu0 %v3046_v63  ;;  %v3209_v48 = vrot.slane %v3207_v12, 2  ;;  %3406 = vmatpush.bf16.msra.mxu2 %v4629_v41  ;;  %v3165_v47 = vunpack.c.l.b16 %v3146_v11  ;;  %v4902_v15 = vld [vmem:[#allocation3] sm:$0xff]  }
 0x3bd   : > { %v2672_v26 = vor.u32 %v2670_v55, %v2668_v28  ;;  %v3037_v23 = vpack.c.b16 %v3031_v45, %v3031_v45  ;;  %3875 = vmatpush.bf16.msra.mxu1 %v4654_v51 }
 0x3be   : > { %v2674_v16 = vshll.u32 %v2632_v30, 16  ;;  %v2883_v58 = vrot.slane %v2632_v30, 1  ;;  %v3210_v33 = vor.u32 %v3209_v48, %v3206_v34  ;;  %v3166_v28 = vpack.c.b16 %v3165_v47, %v3165_v47 }
 0x3bf   : > { %v3047_v62 = vrot.slane %v3037_v23, 1  ;;  %v4626_v23 = vld [vmem:[%s7380_s4 + $0x150] sm:$0xff] }
 0x3c0   : > { %3292 = vmatmul.bf16.gmra.mxu1 %v3202_v37  ;;  %v2676_v53 = vrot.slane %v2674_v16, 1  ;;  %v2884_v40 = vsel %vm2873_vm1, %v2881_v56, %v2883_v58  ;;  %v3345_v56 = vrot.slane %v7011_v22, 2  ;;  %v3211_v36 = vsel %vm3167_vm3, %v3201_v52, %v3210_v33  ;;  %3407 = vmatpush.bf16.msra.mxu2 %v4628_v35  ;;  %v7170_v16 = vld [vmem:[#allocation3 + $0x18] sm:$0xff]  ;;  %v3458_v35 = vld [vmem:[#allocation3 + $0x30] sm:$0x3] }
 0x3c1   : > { %3876 = vmatpush.bf16.msra.mxu1 %v4653_v14  ;;  %v3048_v46 = vsel %vm2873_vm1, %v3045_v10, %v3047_v62  ;;  %v3506_v22 = vsel %vm3339_vm12, %v3504_v60, %v3505_v32  ;;  %v3213_v44 = vshrl.u32 %v3166_v28, 16  ;;  %v3216_v24 = vshll.u32 %v3166_v28, 16  ;;  %v4634_v62 = vld [vmem:[#allocation3 + $0x20] sm:$0xff] }
 0x3c2   : > { %v2677_v50 = vsel %vm2633_vm13, %v2672_v26, %v2676_v53  ;;  %v7166_v38 = vsel %vm3339_vm12, %v3343_v25, %v3345_v56  ;;  %v3649_v10 = vor.u32 %v3648_v6, %v3645_v54  ;;  %v3641_v52 = vor.u32 %v3640_v39, %v3637_v7  ;;  %v4627_v25 = vld [vmem:[%s7380_s4 + $0x158] sm:$0xff] }
 0x3c3   : > { %v3215_v30 = vrot.slane %v3213_v44, 1  ;;  %v3218_v63 = vrot.slane %v3216_v24, 2  ;;  %v3507_v58 = vrot.slane %v7170_v16, 2  ;;  %v3652_v45 = vshrl.u32 %v7170_v16, 16  ;;  %v3784_v26 = vld [vmem:[#allocation3 + $0x8] sm:$0x8] }
 0x3c4   : > { %2966 = vmatmul.bf16.gmra.mxu3 %v2884_v40  ;;  %v3650_v29 = vsel %vm3633_vm15, %v3641_v52, %v3649_v10  ;;  %v3655_v55 = vshll.u32 %v7170_v16, 16  ;;  %3408 = vmatpush.bf16.msra.mxu2 %v4627_v25  ;;  %v3347_v40 = vrot.slane %v7108_v42, 2  ;;  %v3803_v12 = vunpack.c.l.b16 %v3784_v26 }
 0x3c5   : > { %3877 = vmatpush.bf16.msra.mxu1 %v4652_v18  ;;  %v3219_v27 = vor.u32 %v3218_v63, %v3215_v30  ;;  %v3508_v4 = vsel %vm3339_vm12, %v3505_v32, %v3507_v58  ;;  %v3654_v57 = vrot.slane %v3652_v45, 2  ;;  %v3349_v14 = vrot.slane %v3166_v28, 2  ;;  %v4635_v18 = vld [vmem:[#allocation3 + $0x28] sm:$0xff]  ;;  %v4624_v32 = vld [vmem:[%s7380_s4 + $0x140] sm:$0xff] }
 0x3c6   : > { %2759 = vmatmul.bf16.gmra.mxu2 %v2677_v50  ;;  %v3657_v53 = vrot.slane %v3655_v55, 3  ;;  %v7186_v51 = vsel %vm3339_vm12, %v3345_v56, %v3347_v40  ;;  %v3804_v50 = vpack.c.b16 %v3488_v17, %v3803_v12  ;;  %v3807_v42 = vrot.slane %v7149_v19, 3 }
 0x3c7   : > { %v3220_v37 = vsel %vm3167_vm3, %v3210_v33, %v3219_v27  ;;  %v3509_v13 = vrot.slane %v4634_v62, 2  ;;  %v3661_v11 = vshrl.u32 %v4634_v62, 16  ;;  %v3664_v3 = vshll.u32 %v4634_v62, 16 }
 0x3c8   : > { %v3658_v2 = vor.u32 %v3657_v53, %v3654_v57  ;;  %3409 = vmatpush.bf16.msra.mxu2 %v4626_v23  ;;  %v3806_v34 = vrot.slane %v3804_v50, 3  ;;  %v3809_v59 = vrot.slane %v7170_v16, 3  ;;  %v3670_v5 = vshrl.u32 %v4635_v18, 16 }
 0x3c9   : > { %v3510_v17 = vsel %vm3339_vm12, %v3507_v58, %v3509_v13  ;;  %v3663_v19 = vrot.slane %v3661_v11, 2  ;;  %v3673_v31 = vshll.u32 %v4635_v18, 16  ;;  %v3631_v54 = vunpack.c.l.b16 %v3612_v43 }
 0x3ca   : > { %v3659_v41 = vsel %vm3633_vm15, %v3649_v10, %v3658_v2  ;;  %v3808_v48 = vsel %vm3805_vm2, %v3806_v34, %v3807_v42  ;;  %v3810_v56 = vsel %vm3805_vm2, %v3807_v42, %v3809_v59  ;;  %v3672_v28 = vrot.slane %v3670_v5, 2 }
 0x3cb   : > { %v3675_v60 = vrot.slane %v3673_v31, 3  ;;  %v3811_v44 = vrot.slane %v4634_v62, 3  ;;  %v3632_v7 = vpack.c.b16 %v3631_v54, %v3631_v54 }
 0x3cc   : > { %3130 = vmatmul.bf16.gmra.mxu0 %v3048_v46  ;;  %v3666_v46 = vrot.slane %v3664_v3, 3  ;;  %3410 = vmatpush.bf16.msra.mxu2 %v4625_v21 }
 0x3cd   : > { %v3676_v49 = vor.u32 %v3675_v60, %v3672_v28  ;;  %v3812_v39 = vsel %vm3805_vm2, %v3809_v59, %v3811_v44  ;;  %v3679_v10 = vshrl.u32 %v3632_v7, 16  ;;  %v3682_v30 = vshll.u32 %v3632_v7, 16 }
 0x3ce   : > { %v3667_v33 = vor.u32 %v3666_v46, %v3663_v19 }
 0x3d0   : > { %3297 = vmatmul.bf16.gmra.mxu1 %v3211_v36  ;;  %v3668_v47 = vsel %vm3633_vm15, %v3658_v2, %v3667_v33  ;;  %3411 = vmatpush.bf16.msra.mxu2 %v4624_v32  ;;  %v3511_v36 = vrot.slane %v4635_v18, 2  ;;  %v3677_v6 = vsel %vm3633_vm15, %v3667_v33, %v3676_v49 }
 0x3d4   : > { %3576 = vmatmul.bf16.vlgmr.msra.gmra.mxu3 %v3506_v22  ;;  %v3497_v22 = vunpack.c.l.b16 %v3458_v35 }
 0x3d6   : > { %2826 = vmatmul.bf16.vlgmr.msrb.gmra.mxu2 %v4902_v15  ;;  %v3503_v24 = vpack.c.b16 %v3497_v22, %v3497_v22 }
 0x3d8   : > { %v3513_v15 = vrot.slane %v3503_v24, 2 }
 0x3da   : > { %v3514_v52 = vsel %vm3339_vm12, %v3511_v36, %v3513_v15 }
 0x3dc   : > { %3748 = vmatmul.bf16.vlgmr.msra.gmra.mxu0 %v3650_v29  ;;  %v3684_v29 = vrot.slane %v3682_v30, 3 }
 0x3e0   : > { %3302 = vmatmul.bf16.gmra.mxu1 %v3220_v37  ;;  %v3813_v37 = vrot.slane %v4635_v18, 3 }
 0x3e2   : > { %v3814_v58 = vsel %vm3805_vm2, %v3811_v44, %v3813_v37 }
 0x3e4   : > { %3581 = vmatmul.bf16.gmra.mxu3 %v3508_v4  ;;  %v3815_v4 = vrot.slane %v3632_v7, 3 }
 0x3e6   : > { %2831 = vmatmul.bf16.gmra.mxu2 %v6821_v9  ;;  %v7193_v9 = vsel %vm3339_vm12, %v3347_v40, %v3349_v14 }
 0x3ec   : > { %3753 = vmatmul.bf16.gmra.mxu0 %v3659_v41 }
 0x3f0   : > { %3878 = vmatmul.bf16.vlgmr.msra.gmra.mxu1 %v3808_v48 }
 0x3f4   : > { %3586 = vmatmul.bf16.gmra.mxu3 %v3510_v17 }
 0x3f6   : > { %2836 = vmatmul.bf16.gmra.mxu2 %v6899_v8  ;;  %v3512_v8 = vsel %vm3339_vm12, %v3509_v13, %v3511_v36 }
 0x3fc   : > { %3758 = vmatmul.bf16.gmra.mxu0 %v3668_v47 }
 0x3fd   : > { %v7211_v63 = vpop.f32.mrf.mxu1 }
 0x400   : > { %3883 = vmatmul.bf16.gmra.mxu1 %v3810_v56 }
 0x401   : > { %v2947_v26 = vpop.f32.mrf.mxu3 }
 0x403   : > { %v3111_v40 = vpop.f32.mrf.mxu0 }
 0x404   : > { %3591 = vmatmul.bf16.gmra.mxu3 %v3512_v8 }
 0x405   : > { %v7215_v16 = vpop.f32.mrf.mxu1 }
 0x406   : > { %2841 = vmatmul.bf16.gmra.mxu2 %v6971_v61  ;;  %v3681_v61 = vrot.slane %v3679_v10, 2 }
 0x408   : > { %v3685_v27 = vor.u32 %v3684_v29, %v3681_v61 }
 0x409   : > { %v2949_v12 = vpop.f32.mrf.mxu3 }
 0x40a   : > { %v3686_v25 = vsel %vm3633_vm15, %v3676_v49, %v3685_v27 }
 0x40c   : > { %3763 = vmatmul.bf16.gmra.mxu0 %v3677_v6 }
 0x40d   : > { %v7219_v45 = vpop.f32.mrf.mxu1 }
 0x410   : > { %3888 = vmatmul.bf16.gmra.mxu1 %v3812_v39 }
 0x411   : > { %v2952_v42 = vpop.f32.mrf.mxu3 }
 0x414   : > { %3596 = vmatmul.bf16.gmra.mxu3 %v3514_v52 }
 0x415   : > { %v7224_v57 = vpop.f32.mrf.mxu1 }
 0x416   : > { %2846 = vmatmul.bf16.gmra.mxu2 %v7070_v1  ;;  %v3816_v1 = vsel %vm3805_vm2, %v3813_v37, %v3815_v4 }
 0x419   : > { %v7245_v48 = vpop.f32.mrf.mxu3 }
 0x41c   : > { %3768 = vmatmul.bf16.gmra.mxu0 %v3686_v25 }
 0x41d   : > { %v3283_v23 = vpop.f32.mrf.mxu1 }
 0x420   : > { %3893 = vmatmul.bf16.gmra.mxu1 %v3814_v58 }
 0x421   : > { %v7252_v21 = vpop.f32.mrf.mxu3 }
 0x422   : > { %v7222_v55 = vpop.f32.mrf.mxu2 }
 0x425   : > { %v7234_v14 = vpop.f32.mrf.mxu1 }
 0x426   : > { %3412 = vmatmul.bf16.vlgmr.msra.gmra.mxu2 %v7088_v20  ;;  %v3113_v20 = vpop.f32.mrf.mxu0 }
 0x429   : > { %v7259_v46 = vpop.f32.mrf.mxu3 }
 0x42a   : > { %v7227_v53 = vpop.f32.mrf.mxu2 }
 0x42d   : > { %v7241_v34 = vpop.f32.mrf.mxu1 }
 0x42e   : > { %v7239_v62 = vpop.f32.mrf.mxu0 }
 0x430   : > { %3898 = vmatmul.bf16.gmra.mxu1 %v3816_v1 }
 0x435   : > { %v7250_v11 = vpop.f32.mrf.mxu1 }
 0x436   : > { %3417 = vmatmul.bf16.gmra.mxu2 %v7124_v0  ;;  %v7247_v13 = vpop.f32.mrf.mxu0 }
 0x439   : > { %v7230_v2 = vpop.f32.mrf.mxu2 }
 0x43d   : > { %v7256_v17 = vpop.f32.mrf.mxu1 }
 0x441   : > { %v7232_v50 = vpop.f32.mrf.mxu2 }
 0x445   : > { %v7263_v59 = vpop.f32.mrf.mxu1 }
 0x446   : > { %3422 = vmatmul.bf16.gmra.mxu2 %v7166_v38  ;;  %v7254_v38 = vpop.f32.mrf.mxu0 }
 0x449   : > { %v7237_v41 = vpop.f32.mrf.mxu2 }
 0x44d   : > { %v7269_v56 = vpop.f32.mrf.mxu1 }
 0x44e   : > { %v7261_v47 = vpop.f32.mrf.mxu0 }
 0x451   : > { %v7243_v0 = vpop.f32.mrf.mxu2 }
 0x456   : > { %3427 = vmatmul.bf16.gmra.mxu2 %v7186_v51  ;;  %v7265_v51 = vpop.f32.mrf.mxu3  ;;  %v7267_v32 = vpop.f32.mrf.mxu0 }
 0x459   : > { %v2827_v3 = vpop.f32.mrf.mxu2 }
 0x45a   : > { %v2828_v39 = vadd.f32 %v2827_v3, %v7211_v63 }
 0x45c   : > { %v2972_v10 = vadd.f32 %v2947_v26, %v2828_v39  ;;  %v7305_v26 = vld [vmem:[%s7381_s5] ss:$0 sm:$0xff] }
 0x45e   : > { %v7271_v5 = vpop.f32.mrf.mxu3  ;;  %v7273_v31 = vpop.f32.mrf.mxu0  ;;  %v3136_v29 = vadd.f32 %v3111_v40, %v2972_v10 }
 0x460   : > { %v3308_v58 = vadd.f32 %v3283_v23, %v3136_v29 }
 0x461   : > { %v2829_v19 = vpop.f32.mrf.mxu2 }
 0x462   : > { %v2830_v61 = vadd.f32 %v2829_v19, %v7215_v16 }
 0x464   : > { %v2973_v37 = vadd.f32 %v2949_v12, %v2830_v61 }
 0x466   : > { %3432 = vmatmul.bf16.gmra.mxu2 %v7193_v9  ;;  %v7275_v9 = vpop.f32.mrf.mxu1  ;;  %v7279_v28 = vpop.f32.mrf.mxu3 }
 0x467   : > { %v7281_v60 = vpop.f32.mrf.mxu0 }
 0x469   : > { %v2832_v33 = vpop.f32.mrf.mxu2 }
 0x46e   : > { %v7283_v35 = vpop.f32.mrf.mxu1  ;;  %v7287_v49 = vpop.f32.mrf.mxu3 }
 0x46f   : > { %7522 = vst [vmem:[#allocation6_spill] sm:$0xff] %v7283_v35  ;;  %v7289_v22 = vpop.f32.mrf.mxu0  ;;  %v3137_v35 = vadd.f32 %v3113_v20, %v2973_v37 }
 0x470   : > { %7523 = vst [vmem:[#allocation9_spill] sm:$0xff] %v7289_v22 }
 0x471   : > { %v2834_v18 = vpop.f32.mrf.mxu2  ;;  %v3309_v12 = vadd.f32 %v7234_v14, %v3137_v35 }
 0x472   : > { %v2835_v20 = vadd.f32 %v2834_v18, %v7224_v57 }
 0x476   : > { %v7293_v6 = vpop.f32.mrf.mxu1  ;;  %v3577_v44 = vpop.f32.mrf.mxu3 }
 0x477   : > { %7524 = vst [vmem:[#allocation5_spill] sm:$0xff] %v7293_v6  ;;  %v3749_v7 = vpop.f32.mrf.mxu0  ;;  %v2833_v6 = vadd.f32 %v2832_v33, %v7219_v45 }
 0x479   : > { %v2837_v36 = vpop.f32.mrf.mxu2  ;;  %v2974_v19 = vadd.f32 %v2952_v42, %v2833_v6  ;;  %v2975_v6 = vadd.f32 %v7245_v48, %v2835_v20 }
 0x47a   : > { %v2838_v57 = vadd.f32 %v2837_v36, %v7222_v55 }
 0x47b   : > { %v3138_v42 = vadd.f32 %v7239_v62, %v2974_v19  ;;  %v3139_v62 = vadd.f32 %v7247_v13, %v2975_v6 }
 0x47c   : > { %v2976_v48 = vadd.f32 %v7252_v21, %v2838_v57 }
 0x47e   : > { %v3879_v15 = vpop.f32.mrf.mxu1  ;;  %v3579_v52 = vpop.f32.mrf.mxu3 }
 0x47f   : > { %v3751_v27 = vpop.f32.mrf.mxu0 }
 0x481   : > { %v7277_v8 = vpop.f32.mrf.mxu2 }
 0x482   : > { %v2840_v55 = vadd.f32 %v7277_v8, %v7227_v53 }
 0x486   : > { %v3881_v25 = vpop.f32.mrf.mxu1  ;;  %v3582_v63 = vpop.f32.mrf.mxu3 }
 0x487   : > { %v3754_v16 = vpop.f32.mrf.mxu0 }
 0x489   : > { %v7285_v43 = vpop.f32.mrf.mxu2 }
 0x48a   : > { %v2843_v8 = vadd.f32 %v7285_v43, %v7230_v2 }
 0x48e   : > { %v3884_v23 = vpop.f32.mrf.mxu1  ;;  %v3584_v35 = vpop.f32.mrf.mxu3 }
 0x491   : > { %v7291_v54 = vpop.f32.mrf.mxu2 }
 0x492   : > { %v2845_v2 = vadd.f32 %v7291_v54, %v7232_v50 }
 0x499   : > { %v7295_v24 = vpop.f32.mrf.mxu2 }
 0x49a   : > { %v2848_v50 = vadd.f32 %v7295_v24, %v7237_v41 }
 0x4a1   : > { %v7298_v30 = vpop.f32.mrf.mxu2 }
 0x4a2   : > { %v2850_v41 = vadd.f32 %v7298_v30, %v7243_v0 }
 0x4a9   : > { %v3413_v4 = vpop.f32.mrf.mxu2 }
 0x4aa   : > { %v3438_v1 = vadd.f32 %v3413_v4, %v3308_v58  ;;  %v3886_v58 = vpop.f32.mrf.mxu1  ;;  %v3587_v4 = vpop.f32.mrf.mxu3 }
 0x4ac   : > { %v3602_v22 = vadd.f32 %v3577_v44, %v3438_v1 }
 0x4ae   : > { %v3774_v3 = vadd.f32 %v3749_v7, %v3602_v22  ;;  %v3310_v7 = vadd.f32 %v7241_v34, %v3138_v42  ;;  %v3311_v34 = vadd.f32 %v7250_v11, %v3139_v62  ;;  %v2977_v11 = vadd.f32 %v7259_v46, %v2840_v55 }
 0x4b0   : > { %v3904_v40 = vadd.f32 %v3879_v15, %v3774_v3  ;;  %v3756_v15 = vpop.f32.mrf.mxu0 }
 0x4b1   : > { %v3415_v39 = vpop.f32.mrf.mxu2 }
 0x4b2   : > { %v3918_v10 = vadd.f32 %v7305_v26, %v3904_v40  ;;  %v3439_v45 = vadd.f32 %v3415_v39, %v3309_v12  ;;  %v3589_v53 = vpop.f32.mrf.mxu3 }
 0x4b4   : > { %v3928_v33 = vmax.f32 %v3918_v10, 0.0  ;;  %v3603_v22 = vadd.f32 %v3579_v52, %v3439_v45 }
 0x4b6   : > { %3938 = vst [vmem:[%s7313_s25] sm:$0xff] %v3928_v33  ;;  %v3775_v14 = vadd.f32 %v3751_v27, %v3603_v22  ;;  %v3141_v33 = vadd.f32 %v7261_v47, %v2977_v11 }
 0x4b8   : > { %v3905_v44 = vadd.f32 %v3881_v25, %v3775_v14  ;;  %v3759_v40 = vpop.f32.mrf.mxu0 }
 0x4b9   : > { %v3418_v61 = vpop.f32.mrf.mxu2 }
 0x4ba   : > { %v3919_v29 = vadd.f32 %v7305_v26, %v3905_v44  ;;  %v3440_v37 = vadd.f32 %v3418_v61, %v3310_v7  ;;  %v3592_v61 = vpop.f32.mrf.mxu3 }
 0x4bc   : > { %v3929_v18 = vmax.f32 %v3919_v29, 0.0  ;;  %v3604_v52 = vadd.f32 %v3582_v63, %v3440_v37  ;;  %v3140_v63 = vadd.f32 %v7254_v38, %v2976_v48 }
 0x4be   : > { %4554 = vst [vmem:[%s7313_s25 + $0x6] sm:$0xfc] %v3929_v18  ;;  %v3776_v27 = vadd.f32 %v3754_v16, %v3604_v52  ;;  %v3889_v16 = vpop.f32.mrf.mxu1 }
 0x4c0   : > { %v3906_v25 = vadd.f32 %v3884_v23, %v3776_v27  ;;  %v3312_v23 = vadd.f32 %v7256_v17, %v3140_v63  ;;  %v3761_v22 = vpop.f32.mrf.mxu0  ;;  %v2978_v17 = vadd.f32 %v7265_v51, %v2843_v8  ;;  %v2979_v51 = vadd.f32 %v7271_v5, %v2845_v2 }
 0x4c1   : > { %v3420_v1 = vpop.f32.mrf.mxu2  ;;  %v2980_v5 = vadd.f32 %v7279_v28, %v2848_v50 }
 0x4c2   : > { %v3920_v3 = vadd.f32 %v7305_v26, %v3906_v25  ;;  %v3441_v19 = vadd.f32 %v3420_v1, %v3311_v34  ;;  %v3143_v27 = vadd.f32 %v7273_v31, %v2979_v51  ;;  %v3594_v25 = vpop.f32.mrf.mxu3 }
 0x4c3   : > { %v3144_v55 = vadd.f32 %v7281_v60, %v2980_v5 }
 0x4c4   : > { %v3930_v36 = vmax.f32 %v3920_v3, 0.0  ;;  %v3605_v13 = vadd.f32 %v3584_v35, %v3441_v19  ;;  %v3313_v35 = vadd.f32 %v7263_v59, %v3141_v33 }
 0x4c6   : > { %4555 = vst [vmem:[%s7313_s25 + $0xe] sm:$0x3] %v3930_v36  ;;  %v3777_v21 = vadd.f32 %v3756_v15, %v3605_v13  ;;  %v3891_v46 = vpop.f32.mrf.mxu1  ;;  %v3142_v15 = vadd.f32 %v7267_v32, %v2978_v17  ;;  %v7525_v13 = vld [vmem:[#allocation6_spill] sm:$0xff] }
 0x4c7   : > { %4556 = vst [vmem:[%s7313_s25 + $0xc] sm:$0xf0] %v3930_v36  ;;  %v2981_v36 = vadd.f32 %v7287_v49, %v2850_v41  ;;  %v3316_v63 = vadd.f32 %v7525_v13, %v3144_v55 }
 0x4c8   : > { %v3907_v12 = vadd.f32 %v3886_v58, %v3777_v21  ;;  %v3764_v37 = vpop.f32.mrf.mxu0  ;;  %v3314_v59 = vadd.f32 %v7269_v56, %v3142_v15  ;;  %v3315_v56 = vadd.f32 %v7275_v9, %v3143_v27 }
 0x4c9   : > { %v3423_v39 = vpop.f32.mrf.mxu2 }
 0x4ca   : > { %v3921_v10 = vadd.f32 %v7305_v26, %v3907_v12  ;;  %v3442_v45 = vadd.f32 %v3423_v39, %v3312_v23  ;;  %v7526_v39 = vld [vmem:[#allocation9_spill] sm:$0xff] }
 0x4cc   : > { %v3931_v38 = vmax.f32 %v3921_v10, 0.0  ;;  %v3606_v20 = vadd.f32 %v3587_v4, %v3442_v45  ;;  %v3145_v10 = vadd.f32 %v7526_v39, %v2981_v36 }
 0x4ce   : > { %4557 = vst [vmem:[%s7313_s25 + $0x14] sm:$0xf] %v3931_v38  ;;  %v3778_v42 = vadd.f32 %v3759_v40, %v3606_v20  ;;  %v3894_v57 = vpop.f32.mrf.mxu1 }
 0x4cf   : > { %4558 = vst [vmem:[%s7313_s25 + $0x12] sm:$0xc0] %v3931_v38 }
 0x4d0   : > { %v3908_v14 = vadd.f32 %v3889_v16, %v3778_v42  ;;  %v3766_v4 = vpop.f32.mrf.mxu0  ;;  %v3597_v16 = vpop.f32.mrf.mxu3 }
 0x4d1   : > { %v3425_v6 = vpop.f32.mrf.mxu2 }
 0x4d2   : > { %v3922_v44 = vadd.f32 %v7305_v26, %v3908_v14  ;;  %v3443_v7 = vadd.f32 %v3425_v6, %v3313_v35 }
 0x4d4   : > { %v3932_v43 = vmax.f32 %v3922_v44, 0.0  ;;  %v3607_v47 = vadd.f32 %v3589_v53, %v3443_v7  ;;  %v7527_v53 = vld [vmem:[#allocation5_spill] sm:$0xff] }
 0x4d5   : > { %v3317_v8 = vadd.f32 %v7527_v53, %v3145_v10 }
 0x4d6   : > { %4559 = vst [vmem:[%s7313_s25 + $0x1a] sm:$0x3f] %v3932_v43  ;;  %v3779_v29 = vadd.f32 %v3761_v22, %v3607_v47  ;;  %v3896_v40 = vpop.f32.mrf.mxu1 }
 0x4d8   : > { %v3909_v58 = vadd.f32 %v3891_v46, %v3779_v29  ;;  %v3769_v23 = vpop.f32.mrf.mxu0  ;;  %v3599_v22 = vpop.f32.mrf.mxu3 }
 0x4d9   : > { %v3428_v18 = vpop.f32.mrf.mxu2 }
 0x4da   : > { %v3923_v52 = vadd.f32 %v7305_v26, %v3909_v58  ;;  %v3444_v62 = vadd.f32 %v3428_v18, %v3314_v59 }
 0x4dc   : > { %v3933_v54 = vmax.f32 %v3923_v52, 0.0  ;;  %v3608_v32 = vadd.f32 %v3592_v61, %v3444_v62 }
 0x4de   : > { %4560 = vst [vmem:[%s7313_s25 + $0x20] sm:$0xff] %v3933_v54  ;;  %v3780_v48 = vadd.f32 %v3764_v37, %v3608_v32  ;;  %v3899_v60 = vpop.f32.mrf.mxu1 }
 0x4e0   : > { %v3910_v34 = vadd.f32 %v3894_v57, %v3780_v48  ;;  %v3771_v17 = vpop.f32.mrf.mxu0 }
 0x4e1   : > { %v3430_v1 = vpop.f32.mrf.mxu2 }
 0x4e2   : > { %v3924_v3 = vadd.f32 %v7305_v26, %v3910_v34  ;;  %v3445_v19 = vadd.f32 %v3430_v1, %v3315_v56 }
 0x4e4   : > { %v3934_v24 = vmax.f32 %v3924_v3, 0.0  ;;  %v3609_v31 = vadd.f32 %v3594_v25, %v3445_v19 }
 0x4e6   : > { %4561 = vst [vmem:[%s7313_s25 + $0x26] sm:$0xfc] %v3934_v24  ;;  %v3781_v28 = vadd.f32 %v3766_v4, %v3609_v31  ;;  %v3901_v35 = vpop.f32.mrf.mxu1 }
 0x4e8   : > { %v3911_v9 = vadd.f32 %v3896_v40, %v3781_v28 }
 0x4e9   : > { %v3433_v21 = vpop.f32.mrf.mxu2 }
 0x4ea   : > { %v3925_v11 = vadd.f32 %v7305_v26, %v3911_v9  ;;  %v3446_v12 = vadd.f32 %v3433_v21, %v3316_v63 }
 0x4ec   : > { %v3935_v0 = vmax.f32 %v3925_v11, 0.0  ;;  %v3610_v30 = vadd.f32 %v3597_v16, %v3446_v12 }
 0x4ee   : > { %4562 = vst [vmem:[%s7313_s25 + $0x2e] sm:$0x3] %v3935_v0  ;;  %v3782_v45 = vadd.f32 %v3769_v23, %v3610_v30 }
 0x4ef   : > { %4563 = vst [vmem:[%s7313_s25 + $0x2c] sm:$0xf0] %v3935_v0 }
 0x4f0   : > { %v3912_v49 = vadd.f32 %v3899_v60, %v3782_v45 }
 0x4f1   : > { %v3435_v38 = vpop.f32.mrf.mxu2 }
 0x4f2   : > { %v3926_v20 = vadd.f32 %v7305_v26, %v3912_v49  ;;  %v3447_v33 = vadd.f32 %v3435_v38, %v3317_v8 }
 0x4f4   : > { %v3936_v42 = vmax.f32 %v3926_v20, 0.0  ;;  %v3611_v46 = vadd.f32 %v3599_v22, %v3447_v33 }
 0x4f6   : > { %4564 = vst [vmem:[%s7313_s25 + $0x34] sm:$0xf] %v3936_v42  ;;  %v3783_v14 = vadd.f32 %v3771_v17, %v3611_v46 }
 0x4f7   : > { %4565 = vst [vmem:[%s7313_s25 + $0x32] sm:$0xc0] %v3936_v42 }
 0x4f8   : > { %v3913_v6 = vadd.f32 %v3901_v35, %v3783_v14 }
 0x4fa   : > { %v3927_v44 = vadd.f32 %v7305_v26, %v3913_v6 }
 0x4fc   : > { %v3937_v7 = vmax.f32 %v3927_v44, 0.0 }
 0x4fe   : > { %4566 = vst [vmem:[%s7313_s25 + $0x3a] sm:$0x3f] %v3937_v7 }
 0x4ff PF: > { %s16_s21 = sadd.s32 1, %s4909_s21  }
 0x500   : > { %p13_p4 = scmp.ge.s32.totalorder %s16_s21, 4  }
 0x502   :  { %15 = sbr.rel (!%p13_p4) target bundleno = 1 (0x1), region = 108 }

</bundles_post_ra>
